<compile_context>
chip_gen: v7x
topology: tpu7x:2x2x1
jax: 0.10.0
libtpu: 0.0.40
codegen_flags: <defaults>
</compile_context>

<pallas_src>
import math

import jax
import jax.numpy as jnp
from jax.experimental import pallas as pl
from jax.experimental.pallas import tpu as pltpu

K = 7
PAD = K // 2


def spatial_attention_kernel(w_ref, x_ref, o_ref, pad_ref, sh_ref):
    # w_ref:   (2*K*K,) f32 SMEM       -- conv weight, index [c*49 + ky*7 + kx]
    # x_ref:   (1, C, H, LANES) f32    -- B_TILE images packed along lanes (horiz. halo baked in)
    # o_ref:   (1, H, LANES) f32       -- valid output of slot b at lane cols [b*SLOT, b*SLOT+W)
    # pad_ref: (2, H+6, LANES+8) f32   -- avg/max planes with vertical halo (+6 lane tail room)
    # sh_ref:  (2, K, H+6, LANES) f32  -- the 7 horizontal shifts per pooled channel
    C = x_ref.shape[1]
    H = x_ref.shape[2]
    LANES = x_ref.shape[3]
    HP = pad_ref.shape[1]            # H + 2*PAD
    LANE_BUF = pad_ref.shape[2]      # LANES + 8

    # ---- per-step halo init (vertical halo rows + lane tail only). Done every step so it is
    #      correct under megacore sharding of the "parallel" batch axis (each core owns its own
    #      scratch and may never run grid index 0).
    zrow = jnp.zeros((PAD, LANE_BUF), jnp.float32)
    ztail = jnp.zeros((HP, LANE_BUF - LANES), jnp.float32)
    for c in range(2):
        pad_ref[c, 0:PAD, :] = zrow
        pad_ref[c, PAD + H:PAD + H + PAD, :] = zrow
        pad_ref[c, :, LANES:LANE_BUF] = ztail

    # ---- channel pooling (mean & max over C): lane-dense VPU reduction over the leading axis.
    #      The horizontal zero halo is already embedded in each lane slot, so this interior
    #      store (lane-aligned, full 128*k lanes) is all that is needed.
    xb = x_ref[0]                                        # (C, H, LANES)
    pad_ref[0, PAD:PAD + H, 0:LANES] = jnp.sum(xb, axis=0) * (1.0 / C)
    pad_ref[1, PAD:PAD + H, 0:LANES] = jnp.max(xb, axis=0)

    # ---- precompute the 7 horizontal (kx) shifts per channel: 14 lane-shifted copies, so the
    #      98-tap loop below only varies ky (a sublane/address offset).
    for c in range(2):
        for kx in range(K):
            sh_ref[c, kx] = pad_ref[c, :, kx:kx + LANES]

    # ---- 7x7 conv, 2 -> 1 channels, no bias: 98 scalar-weight FMAs on the VPU, spread over
    #      4 independent accumulators to break the dependency chain (4 VALU slots/bundle).
    accs = [jnp.zeros((H, LANES), jnp.float32) for _ in range(4)]
    t = 0
    for c in range(2):
        for kx in range(K):
            for ky in range(K):
                wt = w_ref[c * K * K + ky * K + kx]
                accs[t % 4] = accs[t % 4] + wt * sh_ref[c, kx, ky:ky + H, :]
                t += 1
    acc = (accs[0] + accs[1]) + (accs[2] + accs[3])

    # sigmoid (exp/logistic -> EUP slot; no explicit f32 divide on the VALU)
    o_ref[0] = jax.nn.sigmoid(acc)


def spatial_attention(x, w_oihw):
    """x: (N, C, H, W) f32; w_oihw: (1, 2, 7, 7) f32 (PyTorch Conv2d weight). Returns (N, 1, H, W)."""
    N, C, H, W = x.shape
    w_flat = w_oihw.reshape(-1).astype(jnp.float32)          # ordering [c, ky, kx]

    # Lane packing: each image gets a SLOT-wide lane slot (>= W + 2*PAD, rounded up to 32);
    # B_TILE images make LANES a multiple of 128 (full vreg width).
    SLOT = ((W + 2 * PAD + 31) // 32) * 32
    B_TILE = 128 // math.gcd(SLOT, 128)
    LANES = B_TILE * SLOT
    LANE_BUF = LANES + 8                                      # room for kx in [0, 7) shifted reads

    G = -(-N // B_TILE)                                       # ceil(N / B_TILE)
    Np = G * B_TILE

    # Pack B_TILE images along the lane axis; bake the horizontal zero halo into each slot.
    x_p = jnp.pad(x.astype(jnp.float32),
                  ((0, Np - N), (0, 0), (0, 0), (PAD, SLOT - W - PAD)))          # (Np, C, H, SLOT)
    x_l = x_p.reshape(G, B_TILE, C, H, SLOT).transpose(0, 2, 3, 1, 4).reshape(G, C, H, LANES)

    out = pl.pallas_call(
        spatial_attention_kernel,
        out_shape=jax.ShapeDtypeStruct((G, H, LANES), jnp.float32),
        grid=(G,),
        in_specs=[
            pl.BlockSpec(memory_space=pltpu.MemorySpace.SMEM),        # conv weights: scalar reads
            pl.BlockSpec((1, C, H, LANES), lambda g: (g, 0, 0, 0)),   # B_TILE images per step
        ],
        out_specs=pl.BlockSpec((1, H, LANES), lambda g: (g, 0, 0)),   # lane-dense, unmasked store
        scratch_shapes=[
            pltpu.VMEM((2, H + 2 * PAD, LANE_BUF), jnp.float32),      # padded avg/max planes
            pltpu.VMEM((2, K, H + 2 * PAD, LANES), jnp.float32),      # kx-shifted copies
        ],
        compiler_params=pltpu.CompilerParams(
            dimension_semantics=("parallel",),
        ),
    )(w_flat, x_l)

    # Unpack lanes -> (N, 1, H, W); valid output of slot b sits at lane cols [0, W) of the slot.
    out = out.reshape(G, H, B_TILE, SLOT).transpose(0, 2, 1, 3).reshape(Np, H, SLOT)
    return out[:N, :, :W].reshape(N, 1, H, W)


def reference(x, w_oihw):
    """Pure-JAX reference of the same forward pass (for a correctness check)."""
    avg = jnp.mean(x, axis=1, keepdims=True)
    mx = jnp.max(x, axis=1, keepdims=True)
    f = jnp.concatenate([avg, mx], axis=1)                    # (N, 2, H, W)
    out = jax.lax.conv_general_dilated(
        f, w_oihw, window_strides=(1, 1), padding=((PAD, PAD), (PAD, PAD)),
        dimension_numbers=("NCHW", "OIHW", "NCHW"))
    return jax.nn.sigmoid(out)


if __name__ == "__main__":
    key = jax.random.PRNGKey(0)
    k_x, k_w = jax.random.split(key)

    N, C, H, W = 2, 4, 16, 16
    x = jax.random.normal(k_x, (N, C, H, W), jnp.float32)
    # PyTorch Conv2d(2, 1, kernel_size=7, padding=3, bias=False) weight, OIHW.
    w = 0.1 * jax.random.normal(k_w, (1, 2, K, K), jnp.float32)

    out = jax.block_until_ready(spatial_attention(x, w))
    ref = jax.block_until_ready(reference(x, w))

    assert out.shape == (N, 1, H, W)
    err = float(jnp.max(jnp.abs(out - ref)))
    assert err < 1e-4, f"Pallas kernel mismatch vs JAX reference: {err}"

    print("KERNEL_OK")
</pallas_src>

<mosaic_0001>
module attributes {stable_mosaic.version = 11 : i64} {
  func.func @spatial_attention_kernel(%arg0: i32, %arg1: memref<98xf32, #tpu.memory_space<smem>>, %arg2: memref<1x4x16x128xf32, #tpu.memory_space<vmem>>, %arg3: memref<1x16x128xf32, #tpu.memory_space<vmem>>, %arg4: memref<2x22x136xf32, #tpu.memory_space<vmem>>, %arg5: memref<2x7x22x128xf32, #tpu.memory_space<vmem>>) attributes {dimension_semantics = [#tpu.dimension_semantics<parallel>], iteration_bounds = array<i64: 1>, scalar_prefetch = 0 : i64, scratch_operands = 2 : i64, tpu.core_type = #tpu.core_type<tc>, window_params = [{transform_indices = @transform_0, window_bounds = array<i64: 98>}, {transform_indices = @transform_1, window_bounds = array<i64: 1, 4, 16, 128>}, {transform_indices = @transform_2, window_bounds = array<i64: 1, 16, 128>}]} {
    %cst = arith.constant 0.000000e+00 : f32
    %0 = vector.broadcast %cst : f32 to vector<3x136xf32>
    %cst_0 = arith.constant 0.000000e+00 : f32
    %1 = vector.broadcast %cst_0 : f32 to vector<22x8xf32>
    %c0 = arith.constant 0 : index
    %c0_1 = arith.constant 0 : index
    %c0_2 = arith.constant 0 : index
    %2 = vector.load %arg4[%c0, %c0_1, %c0_2] : memref<2x22x136xf32, #tpu.memory_space<vmem>>, vector<1x3x136xf32>
    %3 = vector.shape_cast %2 : vector<1x3x136xf32> to vector<3x136xf32>
    %4 = vector.shape_cast %0 : vector<3x136xf32> to vector<1x3x136xf32>
    tpu.vector_store %arg4[%c0, %c0_1, %c0_2], %4 {strides = array<i32>} : memref<2x22x136xf32, #tpu.memory_space<vmem>>, vector<1x3x136xf32>,
    %c0_3 = arith.constant 0 : index
    %c19 = arith.constant 19 : index
    %c0_4 = arith.constant 0 : index
    %5 = vector.load %arg4[%c0_3, %c19, %c0_4] : memref<2x22x136xf32, #tpu.memory_space<vmem>>, vector<1x3x136xf32>
    %6 = vector.shape_cast %5 : vector<1x3x136xf32> to vector<3x136xf32>
    %7 = vector.shape_cast %0 : vector<3x136xf32> to vector<1x3x136xf32>
    tpu.vector_store %arg4[%c0_3, %c19, %c0_4], %7 {strides = array<i32>} : memref<2x22x136xf32, #tpu.memory_space<vmem>>, vector<1x3x136xf32>,
    %c0_5 = arith.constant 0 : index
    %c0_6 = arith.constant 0 : index
    %c128 = arith.constant 128 : index
    %8 = vector.load %arg4[%c0_5, %c0_6, %c128] : memref<2x22x136xf32, #tpu.memory_space<vmem>>, vector<1x22x8xf32>
    %9 = vector.shape_cast %8 : vector<1x22x8xf32> to vector<22x8xf32>
    %10 = vector.shape_cast %1 : vector<22x8xf32> to vector<1x22x8xf32>
    tpu.vector_store %arg4[%c0_5, %c0_6, %c128], %10 {strides = array<i32>} : memref<2x22x136xf32, #tpu.memory_space<vmem>>, vector<1x22x8xf32>,
    %c1 = arith.constant 1 : index
    %c0_7 = arith.constant 0 : index
    %c0_8 = arith.constant 0 : index
    %11 = vector.load %arg4[%c1, %c0_7, %c0_8] : memref<2x22x136xf32, #tpu.memory_space<vmem>>, vector<1x3x136xf32>
    %12 = vector.shape_cast %11 : vector<1x3x136xf32> to vector<3x136xf32>
    %13 = vector.shape_cast %0 : vector<3x136xf32> to vector<1x3x136xf32>
    tpu.vector_store %arg4[%c1, %c0_7, %c0_8], %13 {strides = array<i32>} : memref<2x22x136xf32, #tpu.memory_space<vmem>>, vector<1x3x136xf32>,
    %c1_9 = arith.constant 1 : index
    %c19_10 = arith.constant 19 : index
    %c0_11 = arith.constant 0 : index
    %14 = vector.load %arg4[%c1_9, %c19_10, %c0_11] : memref<2x22x136xf32, #tpu.memory_space<vmem>>, vector<1x3x136xf32>
    %15 = vector.shape_cast %14 : vector<1x3x136xf32> to vector<3x136xf32>
    %16 = vector.shape_cast %0 : vector<3x136xf32> to vector<1x3x136xf32>
    tpu.vector_store %arg4[%c1_9, %c19_10, %c0_11], %16 {strides = array<i32>} : memref<2x22x136xf32, #tpu.memory_space<vmem>>, vector<1x3x136xf32>,
    %c1_12 = arith.constant 1 : index
    %c0_13 = arith.constant 0 : index
    %c128_14 = arith.constant 128 : index
    %17 = vector.load %arg4[%c1_12, %c0_13, %c128_14] : memref<2x22x136xf32, #tpu.memory_space<vmem>>, vector<1x22x8xf32>
    %18 = vector.shape_cast %17 : vector<1x22x8xf32> to vector<22x8xf32>
    %19 = vector.shape_cast %1 : vector<22x8xf32> to vector<1x22x8xf32>
    tpu.vector_store %arg4[%c1_12, %c0_13, %c128_14], %19 {strides = array<i32>} : memref<2x22x136xf32, #tpu.memory_space<vmem>>, vector<1x22x8xf32>,
    %c0_15 = arith.constant 0 : index
    %c0_16 = arith.constant 0 : index
    %c0_17 = arith.constant 0 : index
    %c0_18 = arith.constant 0 : index
    %20 = vector.load %arg2[%c0_15, %c0_16, %c0_17, %c0_18] : memref<1x4x16x128xf32, #tpu.memory_space<vmem>>, vector<1x4x16x128xf32>
    %21 = vector.shape_cast %20 : vector<1x4x16x128xf32> to vector<4x16x128xf32>
    %cst_19 = arith.constant dense<0.000000e+00> : vector<16x128xf32>
    %22 = vector.multi_reduction <add>, %21, %cst_19 [0] : vector<4x16x128xf32> to vector<16x128xf32>
    %cst_20 = arith.constant 2.500000e-01 : f32
    %23 = vector.broadcast %cst_20 : f32 to vector<16x128xf32>
    %24 = arith.mulf %22, %23 : vector<16x128xf32>
    %c0_21 = arith.constant 0 : index
    %c3 = arith.constant 3 : index
    %c0_22 = arith.constant 0 : index
    %25 = vector.load %arg4[%c0_21, %c3, %c0_22] : memref<2x22x136xf32, #tpu.memory_space<vmem>>, vector<1x16x128xf32>
    %26 = vector.shape_cast %25 : vector<1x16x128xf32> to vector<16x128xf32>
    %27 = vector.shape_cast %24 : vector<16x128xf32> to vector<1x16x128xf32>
    tpu.vector_store %arg4[%c0_21, %c3, %c0_22], %27 {strides = array<i32>} : memref<2x22x136xf32, #tpu.memory_space<vmem>>, vector<1x16x128xf32>,
    %cst_23 = arith.constant dense<0xFF800000> : vector<16x128xf32>
    %28 = vector.multi_reduction <maximumf>, %21, %cst_23 [0] : vector<4x16x128xf32> to vector<16x128xf32>
    %c1_24 = arith.constant 1 : index
    %c3_25 = arith.constant 3 : index
    %c0_26 = arith.constant 0 : index
    %29 = vector.load %arg4[%c1_24, %c3_25, %c0_26] : memref<2x22x136xf32, #tpu.memory_space<vmem>>, vector<1x16x128xf32>
    %30 = vector.shape_cast %29 : vector<1x16x128xf32> to vector<16x128xf32>
    %31 = vector.shape_cast %28 : vector<16x128xf32> to vector<1x16x128xf32>
    tpu.vector_store %arg4[%c1_24, %c3_25, %c0_26], %31 {strides = array<i32>} : memref<2x22x136xf32, #tpu.memory_space<vmem>>, vector<1x16x128xf32>,
    %c0_27 = arith.constant 0 : index
    %c0_28 = arith.constant 0 : index
    %c0_29 = arith.constant 0 : index
    %32 = vector.load %arg4[%c0_27, %c0_28, %c0_29] : memref<2x22x136xf32, #tpu.memory_space<vmem>>, vector<1x22x128xf32>
    %33 = vector.shape_cast %32 : vector<1x22x128xf32> to vector<22x128xf32>
    %c0_30 = arith.constant 0 : index
    %c0_31 = arith.constant 0 : index
    %c0_32 = arith.constant 0 : index
    %c0_33 = arith.constant 0 : index
    %34 = vector.load %arg5[%c0_30, %c0_31, %c0_32, %c0_33] : memref<2x7x22x128xf32, #tpu.memory_space<vmem>>, vector<1x1x22x128xf32>
    %35 = vector.shape_cast %34 : vector<1x1x22x128xf32> to vector<22x128xf32>
    %36 = vector.shape_cast %33 : vector<22x128xf32> to vector<1x1x22x128xf32>
    tpu.vector_store %arg5[%c0_30, %c0_31, %c0_32, %c0_33], %36 {strides = array<i32>} : memref<2x7x22x128xf32, #tpu.memory_space<vmem>>, vector<1x1x22x128xf32>,
    %c0_34 = arith.constant 0 : index
    %c0_35 = arith.constant 0 : index
    %c1_36 = arith.constant 1 : index
    %37 = vector.load %arg4[%c0_34, %c0_35, %c1_36] : memref<2x22x136xf32, #tpu.memory_space<vmem>>, vector<1x22x128xf32>
    %38 = vector.shape_cast %37 : vector<1x22x128xf32> to vector<22x128xf32>
    %c0_37 = arith.constant 0 : index
    %c1_38 = arith.constant 1 : index
    %c0_39 = arith.constant 0 : index
    %c0_40 = arith.constant 0 : index
    %39 = vector.load %arg5[%c0_37, %c1_38, %c0_39, %c0_40] : memref<2x7x22x128xf32, #tpu.memory_space<vmem>>, vector<1x1x22x128xf32>
    %40 = vector.shape_cast %39 : vector<1x1x22x128xf32> to vector<22x128xf32>
    %41 = vector.shape_cast %38 : vector<22x128xf32> to vector<1x1x22x128xf32>
    tpu.vector_store %arg5[%c0_37, %c1_38, %c0_39, %c0_40], %41 {strides = array<i32>} : memref<2x7x22x128xf32, #tpu.memory_space<vmem>>, vector<1x1x22x128xf32>,
    %c0_41 = arith.constant 0 : index
    %c0_42 = arith.constant 0 : index
    %c2 = arith.constant 2 : index
    %42 = vector.load %arg4[%c0_41, %c0_42, %c2] : memref<2x22x136xf32, #tpu.memory_space<vmem>>, vector<1x22x128xf32>
    %43 = vector.shape_cast %42 : vector<1x22x128xf32> to vector<22x128xf32>
    %c0_43 = arith.constant 0 : index
    %c2_44 = arith.constant 2 : index
    %c0_45 = arith.constant 0 : index
    %c0_46 = arith.constant 0 : index
    %44 = vector.load %arg5[%c0_43, %c2_44, %c0_45, %c0_46] : memref<2x7x22x128xf32, #tpu.memory_space<vmem>>, vector<1x1x22x128xf32>
    %45 = vector.shape_cast %44 : vector<1x1x22x128xf32> to vector<22x128xf32>
    %46 = vector.shape_cast %43 : vector<22x128xf32> to vector<1x1x22x128xf32>
    tpu.vector_store %arg5[%c0_43, %c2_44, %c0_45, %c0_46], %46 {strides = array<i32>} : memref<2x7x22x128xf32, #tpu.memory_space<vmem>>, vector<1x1x22x128xf32>,
    %c0_47 = arith.constant 0 : index
    %c0_48 = arith.constant 0 : index
    %c3_49 = arith.constant 3 : index
    %47 = vector.load %arg4[%c0_47, %c0_48, %c3_49] : memref<2x22x136xf32, #tpu.memory_space<vmem>>, vector<1x22x128xf32>
    %48 = vector.shape_cast %47 : vector<1x22x128xf32> to vector<22x128xf32>
    %c0_50 = arith.constant 0 : index
    %c3_51 = arith.constant 3 : index
    %c0_52 = arith.constant 0 : index
    %c0_53 = arith.constant 0 : index
    %49 = vector.load %arg5[%c0_50, %c3_51, %c0_52, %c0_53] : memref<2x7x22x128xf32, #tpu.memory_space<vmem>>, vector<1x1x22x128xf32>
    %50 = vector.shape_cast %49 : vector<1x1x22x128xf32> to vector<22x128xf32>
    %51 = vector.shape_cast %48 : vector<22x128xf32> to vector<1x1x22x128xf32>
    tpu.vector_store %arg5[%c0_50, %c3_51, %c0_52, %c0_53], %51 {strides = array<i32>} : memref<2x7x22x128xf32, #tpu.memory_space<vmem>>, vector<1x1x22x128xf32>,
    %c0_54 = arith.constant 0 : index
    %c0_55 = arith.constant 0 : index
    %c4 = arith.constant 4 : index
    %52 = vector.load %arg4[%c0_54, %c0_55, %c4] : memref<2x22x136xf32, #tpu.memory_space<vmem>>, vector<1x22x128xf32>
    %53 = vector.shape_cast %52 : vector<1x22x128xf32> to vector<22x128xf32>
    %c0_56 = arith.constant 0 : index
    %c4_57 = arith.constant 4 : index
    %c0_58 = arith.constant 0 : index
    %c0_59 = arith.constant 0 : index
    %54 = vector.load %arg5[%c0_56, %c4_57, %c0_58, %c0_59] : memref<2x7x22x128xf32, #tpu.memory_space<vmem>>, vector<1x1x22x128xf32>
    %55 = vector.shape_cast %54 : vector<1x1x22x128xf32> to vector<22x128xf32>
    %56 = vector.shape_cast %53 : vector<22x128xf32> to vector<1x1x22x128xf32>
    tpu.vector_store %arg5[%c0_56, %c4_57, %c0_58, %c0_59], %56 {strides = array<i32>} : memref<2x7x22x128xf32, #tpu.memory_space<vmem>>, vector<1x1x22x128xf32>,
    %c0_60 = arith.constant 0 : index
    %c0_61 = arith.constant 0 : index
    %c5 = arith.constant 5 : index
    %57 = vector.load %arg4[%c0_60, %c0_61, %c5] : memref<2x22x136xf32, #tpu.memory_space<vmem>>, vector<1x22x128xf32>
    %58 = vector.shape_cast %57 : vector<1x22x128xf32> to vector<22x128xf32>
    %c0_62 = arith.constant 0 : index
    %c5_63 = arith.constant 5 : index
    %c0_64 = arith.constant 0 : index
    %c0_65 = arith.constant 0 : index
    %59 = vector.load %arg5[%c0_62, %c5_63, %c0_64, %c0_65] : memref<2x7x22x128xf32, #tpu.memory_space<vmem>>, vector<1x1x22x128xf32>
    %60 = vector.shape_cast %59 : vector<1x1x22x128xf32> to vector<22x128xf32>
    %61 = vector.shape_cast %58 : vector<22x128xf32> to vector<1x1x22x128xf32>
    tpu.vector_store %arg5[%c0_62, %c5_63, %c0_64, %c0_65], %61 {strides = array<i32>} : memref<2x7x22x128xf32, #tpu.memory_space<vmem>>, vector<1x1x22x128xf32>,
    %c0_66 = arith.constant 0 : index
    %c0_67 = arith.constant 0 : index
    %c6 = arith.constant 6 : index
    %62 = vector.load %arg4[%c0_66, %c0_67, %c6] : memref<2x22x136xf32, #tpu.memory_space<vmem>>, vector<1x22x128xf32>
    %63 = vector.shape_cast %62 : vector<1x22x128xf32> to vector<22x128xf32>
    %c0_68 = arith.constant 0 : index
    %c6_69 = arith.constant 6 : index
    %c0_70 = arith.constant 0 : index
    %c0_71 = arith.constant 0 : index
    %64 = vector.load %arg5[%c0_68, %c6_69, %c0_70, %c0_71] : memref<2x7x22x128xf32, #tpu.memory_space<vmem>>, vector<1x1x22x128xf32>
    %65 = vector.shape_cast %64 : vector<1x1x22x128xf32> to vector<22x128xf32>
    %66 = vector.shape_cast %63 : vector<22x128xf32> to vector<1x1x22x128xf32>
    tpu.vector_store %arg5[%c0_68, %c6_69, %c0_70, %c0_71], %66 {strides = array<i32>} : memref<2x7x22x128xf32, #tpu.memory_space<vmem>>, vector<1x1x22x128xf32>,
    %c1_72 = arith.constant 1 : index
    %c0_73 = arith.constant 0 : index
    %c0_74 = arith.constant 0 : index
    %67 = vector.load %arg4[%c1_72, %c0_73, %c0_74] : memref<2x22x136xf32, #tpu.memory_space<vmem>>, vector<1x22x128xf32>
    %68 = vector.shape_cast %67 : vector<1x22x128xf32> to vector<22x128xf32>
    %c1_75 = arith.constant 1 : index
    %c0_76 = arith.constant 0 : index
    %c0_77 = arith.constant 0 : index
    %c0_78 = arith.constant 0 : index
    %69 = vector.load %arg5[%c1_75, %c0_76, %c0_77, %c0_78] : memref<2x7x22x128xf32, #tpu.memory_space<vmem>>, vector<1x1x22x128xf32>
    %70 = vector.shape_cast %69 : vector<1x1x22x128xf32> to vector<22x128xf32>
    %71 = vector.shape_cast %68 : vector<22x128xf32> to vector<1x1x22x128xf32>
    tpu.vector_store %arg5[%c1_75, %c0_76, %c0_77, %c0_78], %71 {strides = array<i32>} : memref<2x7x22x128xf32, #tpu.memory_space<vmem>>, vector<1x1x22x128xf32>,
    %c1_79 = arith.constant 1 : index
    %c0_80 = arith.constant 0 : index
    %c1_81 = arith.constant 1 : index
    %72 = vector.load %arg4[%c1_79, %c0_80, %c1_81] : memref<2x22x136xf32, #tpu.memory_space<vmem>>, vector<1x22x128xf32>
    %73 = vector.shape_cast %72 : vector<1x22x128xf32> to vector<22x128xf32>
    %c1_82 = arith.constant 1 : index
    %c1_83 = arith.constant 1 : index
    %c0_84 = arith.constant 0 : index
    %c0_85 = arith.constant 0 : index
    %74 = vector.load %arg5[%c1_82, %c1_83, %c0_84, %c0_85] : memref<2x7x22x128xf32, #tpu.memory_space<vmem>>, vector<1x1x22x128xf32>
    %75 = vector.shape_cast %74 : vector<1x1x22x128xf32> to vector<22x128xf32>
    %76 = vector.shape_cast %73 : vector<22x128xf32> to vector<1x1x22x128xf32>
    tpu.vector_store %arg5[%c1_82, %c1_83, %c0_84, %c0_85], %76 {strides = array<i32>} : memref<2x7x22x128xf32, #tpu.memory_space<vmem>>, vector<1x1x22x128xf32>,
    %c1_86 = arith.constant 1 : index
    %c0_87 = arith.constant 0 : index
    %c2_88 = arith.constant 2 : index
    %77 = vector.load %arg4[%c1_86, %c0_87, %c2_88] : memref<2x22x136xf32, #tpu.memory_space<vmem>>, vector<1x22x128xf32>
    %78 = vector.shape_cast %77 : vector<1x22x128xf32> to vector<22x128xf32>
    %c1_89 = arith.constant 1 : index
    %c2_90 = arith.constant 2 : index
    %c0_91 = arith.constant 0 : index
    %c0_92 = arith.constant 0 : index
    %79 = vector.load %arg5[%c1_89, %c2_90, %c0_91, %c0_92] : memref<2x7x22x128xf32, #tpu.memory_space<vmem>>, vector<1x1x22x128xf32>
    %80 = vector.shape_cast %79 : vector<1x1x22x128xf32> to vector<22x128xf32>
    %81 = vector.shape_cast %78 : vector<22x128xf32> to vector<1x1x22x128xf32>
    tpu.vector_store %arg5[%c1_89, %c2_90, %c0_91, %c0_92], %81 {strides = array<i32>} : memref<2x7x22x128xf32, #tpu.memory_space<vmem>>, vector<1x1x22x128xf32>,
    %c1_93 = arith.constant 1 : index
    %c0_94 = arith.constant 0 : index
    %c3_95 = arith.constant 3 : index
    %82 = vector.load %arg4[%c1_93, %c0_94, %c3_95] : memref<2x22x136xf32, #tpu.memory_space<vmem>>, vector<1x22x128xf32>
    %83 = vector.shape_cast %82 : vector<1x22x128xf32> to vector<22x128xf32>
    %c1_96 = arith.constant 1 : index
    %c3_97 = arith.constant 3 : index
    %c0_98 = arith.constant 0 : index
    %c0_99 = arith.constant 0 : index
    %84 = vector.load %arg5[%c1_96, %c3_97, %c0_98, %c0_99] : memref<2x7x22x128xf32, #tpu.memory_space<vmem>>, vector<1x1x22x128xf32>
    %85 = vector.shape_cast %84 : vector<1x1x22x128xf32> to vector<22x128xf32>
    %86 = vector.shape_cast %83 : vector<22x128xf32> to vector<1x1x22x128xf32>
    tpu.vector_store %arg5[%c1_96, %c3_97, %c0_98, %c0_99], %86 {strides = array<i32>} : memref<2x7x22x128xf32, #tpu.memory_space<vmem>>, vector<1x1x22x128xf32>,
    %c1_100 = arith.constant 1 : index
    %c0_101 = arith.constant 0 : index
    %c4_102 = arith.constant 4 : index
    %87 = vector.load %arg4[%c1_100, %c0_101, %c4_102] : memref<2x22x136xf32, #tpu.memory_space<vmem>>, vector<1x22x128xf32>
    %88 = vector.shape_cast %87 : vector<1x22x128xf32> to vector<22x128xf32>
    %c1_103 = arith.constant 1 : index
    %c4_104 = arith.constant 4 : index
    %c0_105 = arith.constant 0 : index
    %c0_106 = arith.constant 0 : index
    %89 = vector.load %arg5[%c1_103, %c4_104, %c0_105, %c0_106] : memref<2x7x22x128xf32, #tpu.memory_space<vmem>>, vector<1x1x22x128xf32>
    %90 = vector.shape_cast %89 : vector<1x1x22x128xf32> to vector<22x128xf32>
    %91 = vector.shape_cast %88 : vector<22x128xf32> to vector<1x1x22x128xf32>
    tpu.vector_store %arg5[%c1_103, %c4_104, %c0_105, %c0_106], %91 {strides = array<i32>} : memref<2x7x22x128xf32, #tpu.memory_space<vmem>>, vector<1x1x22x128xf32>,
    %c1_107 = arith.constant 1 : index
    %c0_108 = arith.constant 0 : index
    %c5_109 = arith.constant 5 : index
    %92 = vector.load %arg4[%c1_107, %c0_108, %c5_109] : memref<2x22x136xf32, #tpu.memory_space<vmem>>, vector<1x22x128xf32>
    %93 = vector.shape_cast %92 : vector<1x22x128xf32> to vector<22x128xf32>
    %c1_110 = arith.constant 1 : index
    %c5_111 = arith.constant 5 : index
    %c0_112 = arith.constant 0 : index
    %c0_113 = arith.constant 0 : index
    %94 = vector.load %arg5[%c1_110, %c5_111, %c0_112, %c0_113] : memref<2x7x22x128xf32, #tpu.memory_space<vmem>>, vector<1x1x22x128xf32>
    %95 = vector.shape_cast %94 : vector<1x1x22x128xf32> to vector<22x128xf32>
    %96 = vector.shape_cast %93 : vector<22x128xf32> to vector<1x1x22x128xf32>
    tpu.vector_store %arg5[%c1_110, %c5_111, %c0_112, %c0_113], %96 {strides = array<i32>} : memref<2x7x22x128xf32, #tpu.memory_space<vmem>>, vector<1x1x22x128xf32>,
    %c1_114 = arith.constant 1 : index
    %c0_115 = arith.constant 0 : index
    %c6_116 = arith.constant 6 : index
    %97 = vector.load %arg4[%c1_114, %c0_115, %c6_116] : memref<2x22x136xf32, #tpu.memory_space<vmem>>, vector<1x22x128xf32>
    %98 = vector.shape_cast %97 : vector<1x22x128xf32> to vector<22x128xf32>
    %c1_117 = arith.constant 1 : index
    %c6_118 = arith.constant 6 : index
    %c0_119 = arith.constant 0 : index
    %c0_120 = arith.constant 0 : index
    %99 = vector.load %arg5[%c1_117, %c6_118, %c0_119, %c0_120] : memref<2x7x22x128xf32, #tpu.memory_space<vmem>>, vector<1x1x22x128xf32>
    %100 = vector.shape_cast %99 : vector<1x1x22x128xf32> to vector<22x128xf32>
    %101 = vector.shape_cast %98 : vector<22x128xf32> to vector<1x1x22x128xf32>
    tpu.vector_store %arg5[%c1_117, %c6_118, %c0_119, %c0_120], %101 {strides = array<i32>} : memref<2x7x22x128xf32, #tpu.memory_space<vmem>>, vector<1x1x22x128xf32>,
    %cst_121 = arith.constant 0.000000e+00 : f32
    %102 = vector.broadcast %cst_121 : f32 to vector<16x128xf32>
    %cst_122 = arith.constant 0.000000e+00 : f32
    %103 = vector.broadcast %cst_122 : f32 to vector<16x128xf32>
    %cst_123 = arith.constant 0.000000e+00 : f32
    %104 = vector.broadcast %cst_123 : f32 to vector<16x128xf32>
    %cst_124 = arith.constant 0.000000e+00 : f32
    %105 = vector.broadcast %cst_124 : f32 to vector<16x128xf32>
    %c0_125 = arith.constant 0 : index
    %106 = memref.load %arg1[%c0_125] : memref<98xf32, #tpu.memory_space<smem>>
    %c0_126 = arith.constant 0 : index
    %c0_127 = arith.constant 0 : index
    %c0_128 = arith.constant 0 : index
    %c0_129 = arith.constant 0 : index
    %107 = vector.load %arg5[%c0_126, %c0_127, %c0_128, %c0_129] : memref<2x7x22x128xf32, #tpu.memory_space<vmem>>, vector<1x1x16x128xf32>
    %108 = vector.shape_cast %107 : vector<1x1x16x128xf32> to vector<16x128xf32>
    %109 = vector.broadcast %106 : f32 to vector<16x128xf32>
    %110 = arith.mulf %109, %108 : vector<16x128xf32>
    %111 = arith.addf %102, %110 : vector<16x128xf32>
    %c7 = arith.constant 7 : index
    %112 = memref.load %arg1[%c7] : memref<98xf32, #tpu.memory_space<smem>>
    %c0_130 = arith.constant 0 : index
    %c0_131 = arith.constant 0 : index
    %c1_132 = arith.constant 1 : index
    %c0_133 = arith.constant 0 : index
    %113 = vector.load %arg5[%c0_130, %c0_131, %c1_132, %c0_133] : memref<2x7x22x128xf32, #tpu.memory_space<vmem>>, vector<1x1x16x128xf32>
    %114 = vector.shape_cast %113 : vector<1x1x16x128xf32> to vector<16x128xf32>
    %115 = vector.broadcast %112 : f32 to vector<16x128xf32>
    %116 = arith.mulf %115, %114 : vector<16x128xf32>
    %117 = arith.addf %103, %116 : vector<16x128xf32>
    %c14 = arith.constant 14 : index
    %118 = memref.load %arg1[%c14] : memref<98xf32, #tpu.memory_space<smem>>
    %c0_134 = arith.constant 0 : index
    %c0_135 = arith.constant 0 : index
    %c2_136 = arith.constant 2 : index
    %c0_137 = arith.constant 0 : index
    %119 = vector.load %arg5[%c0_134, %c0_135, %c2_136, %c0_137] : memref<2x7x22x128xf32, #tpu.memory_space<vmem>>, vector<1x1x16x128xf32>
    %120 = vector.shape_cast %119 : vector<1x1x16x128xf32> to vector<16x128xf32>
    %121 = vector.broadcast %118 : f32 to vector<16x128xf32>
    %122 = arith.mulf %121, %120 : vector<16x128xf32>
    %123 = arith.addf %104, %122 : vector<16x128xf32>
    %c21 = arith.constant 21 : index
    %124 = memref.load %arg1[%c21] : memref<98xf32, #tpu.memory_space<smem>>
    %c0_138 = arith.constant 0 : index
    %c0_139 = arith.constant 0 : index
    %c3_140 = arith.constant 3 : index
    %c0_141 = arith.constant 0 : index
    %125 = vector.load %arg5[%c0_138, %c0_139, %c3_140, %c0_141] : memref<2x7x22x128xf32, #tpu.memory_space<vmem>>, vector<1x1x16x128xf32>
    %126 = vector.shape_cast %125 : vector<1x1x16x128xf32> to vector<16x128xf32>
    %127 = vector.broadcast %124 : f32 to vector<16x128xf32>
    %128 = arith.mulf %127, %126 : vector<16x128xf32>
    %129 = arith.addf %105, %128 : vector<16x128xf32>
    %c28 = arith.constant 28 : index
    %130 = memref.load %arg1[%c28] : memref<98xf32, #tpu.memory_space<smem>>
    %c0_142 = arith.constant 0 : index
    %c0_143 = arith.constant 0 : index
    %c4_144 = arith.constant 4 : index
    %c0_145 = arith.constant 0 : index
    %131 = vector.load %arg5[%c0_142, %c0_143, %c4_144, %c0_145] : memref<2x7x22x128xf32, #tpu.memory_space<vmem>>, vector<1x1x16x128xf32>
    %132 = vector.shape_cast %131 : vector<1x1x16x128xf32> to vector<16x128xf32>
    %133 = vector.broadcast %130 : f32 to vector<16x128xf32>
    %134 = arith.mulf %133, %132 : vector<16x128xf32>
    %135 = arith.addf %111, %134 : vector<16x128xf32>
    %c35 = arith.constant 35 : index
    %136 = memref.load %arg1[%c35] : memref<98xf32, #tpu.memory_space<smem>>
    %c0_146 = arith.constant 0 : index
    %c0_147 = arith.constant 0 : index
    %c5_148 = arith.constant 5 : index
    %c0_149 = arith.constant 0 : index
    %137 = vector.load %arg5[%c0_146, %c0_147, %c5_148, %c0_149] : memref<2x7x22x128xf32, #tpu.memory_space<vmem>>, vector<1x1x16x128xf32>
    %138 = vector.shape_cast %137 : vector<1x1x16x128xf32> to vector<16x128xf32>
    %139 = vector.broadcast %136 : f32 to vector<16x128xf32>
    %140 = arith.mulf %139, %138 : vector<16x128xf32>
    %141 = arith.addf %117, %140 : vector<16x128xf32>
    %c42 = arith.constant 42 : index
    %142 = memref.load %arg1[%c42] : memref<98xf32, #tpu.memory_space<smem>>
    %c0_150 = arith.constant 0 : index
    %c0_151 = arith.constant 0 : index
    %c6_152 = arith.constant 6 : index
    %c0_153 = arith.constant 0 : index
    %143 = vector.load %arg5[%c0_150, %c0_151, %c6_152, %c0_153] : memref<2x7x22x128xf32, #tpu.memory_space<vmem>>, vector<1x1x16x128xf32>
    %144 = vector.shape_cast %143 : vector<1x1x16x128xf32> to vector<16x128xf32>
    %145 = vector.broadcast %142 : f32 to vector<16x128xf32>
    %146 = arith.mulf %145, %144 : vector<16x128xf32>
    %147 = arith.addf %123, %146 : vector<16x128xf32>
    %c1_154 = arith.constant 1 : index
    %148 = memref.load %arg1[%c1_154] : memref<98xf32, #tpu.memory_space<smem>>
    %c0_155 = arith.constant 0 : index
    %c1_156 = arith.constant 1 : index
    %c0_157 = arith.constant 0 : index
    %c0_158 = arith.constant 0 : index
    %149 = vector.load %arg5[%c0_155, %c1_156, %c0_157, %c0_158] : memref<2x7x22x128xf32, #tpu.memory_space<vmem>>, vector<1x1x16x128xf32>
    %150 = vector.shape_cast %149 : vector<1x1x16x128xf32> to vector<16x128xf32>
    %151 = vector.broadcast %148 : f32 to vector<16x128xf32>
    %152 = arith.mulf %151, %150 : vector<16x128xf32>
    %153 = arith.addf %129, %152 : vector<16x128xf32>
    %c8 = arith.constant 8 : index
    %154 = memref.load %arg1[%c8] : memref<98xf32, #tpu.memory_space<smem>>
    %c0_159 = arith.constant 0 : index
    %c1_160 = arith.constant 1 : index
    %c1_161 = arith.constant 1 : index
    %c0_162 = arith.constant 0 : index
    %155 = vector.load %arg5[%c0_159, %c1_160, %c1_161, %c0_162] : memref<2x7x22x128xf32, #tpu.memory_space<vmem>>, vector<1x1x16x128xf32>
    %156 = vector.shape_cast %155 : vector<1x1x16x128xf32> to vector<16x128xf32>
    %157 = vector.broadcast %154 : f32 to vector<16x128xf32>
    %158 = arith.mulf %157, %156 : vector<16x128xf32>
    %159 = arith.addf %135, %158 : vector<16x128xf32>
    %c15 = arith.constant 15 : index
    %160 = memref.load %arg1[%c15] : memref<98xf32, #tpu.memory_space<smem>>
    %c0_163 = arith.constant 0 : index
    %c1_164 = arith.constant 1 : index
    %c2_165 = arith.constant 2 : index
    %c0_166 = arith.constant 0 : index
    %161 = vector.load %arg5[%c0_163, %c1_164, %c2_165, %c0_166] : memref<2x7x22x128xf32, #tpu.memory_space<vmem>>, vector<1x1x16x128xf32>
    %162 = vector.shape_cast %161 : vector<1x1x16x128xf32> to vector<16x128xf32>
    %163 = vector.broadcast %160 : f32 to vector<16x128xf32>
    %164 = arith.mulf %163, %162 : vector<16x128xf32>
    %165 = arith.addf %141, %164 : vector<16x128xf32>
    %c22 = arith.constant 22 : index
    %166 = memref.load %arg1[%c22] : memref<98xf32, #tpu.memory_space<smem>>
    %c0_167 = arith.constant 0 : index
    %c1_168 = arith.constant 1 : index
    %c3_169 = arith.constant 3 : index
    %c0_170 = arith.constant 0 : index
    %167 = vector.load %arg5[%c0_167, %c1_168, %c3_169, %c0_170] : memref<2x7x22x128xf32, #tpu.memory_space<vmem>>, vector<1x1x16x128xf32>
    %168 = vector.shape_cast %167 : vector<1x1x16x128xf32> to vector<16x128xf32>
    %169 = vector.broadcast %166 : f32 to vector<16x128xf32>
    %170 = arith.mulf %169, %168 : vector<16x128xf32>
    %171 = arith.addf %147, %170 : vector<16x128xf32>
    %c29 = arith.constant 29 : index
    %172 = memref.load %arg1[%c29] : memref<98xf32, #tpu.memory_space<smem>>
    %c0_171 = arith.constant 0 : index
    %c1_172 = arith.constant 1 : index
    %c4_173 = arith.constant 4 : index
    %c0_174 = arith.constant 0 : index
    %173 = vector.load %arg5[%c0_171, %c1_172, %c4_173, %c0_174] : memref<2x7x22x128xf32, #tpu.memory_space<vmem>>, vector<1x1x16x128xf32>
    %174 = vector.shape_cast %173 : vector<1x1x16x128xf32> to vector<16x128xf32>
    %175 = vector.broadcast %172 : f32 to vector<16x128xf32>
    %176 = arith.mulf %175, %174 : vector<16x128xf32>
    %177 = arith.addf %153, %176 : vector<16x128xf32>
    %c36 = arith.constant 36 : index
    %178 = memref.load %arg1[%c36] : memref<98xf32, #tpu.memory_space<smem>>
    %c0_175 = arith.constant 0 : index
    %c1_176 = arith.constant 1 : index
    %c5_177 = arith.constant 5 : index
    %c0_178 = arith.constant 0 : index
    %179 = vector.load %arg5[%c0_175, %c1_176, %c5_177, %c0_178] : memref<2x7x22x128xf32, #tpu.memory_space<vmem>>, vector<1x1x16x128xf32>
    %180 = vector.shape_cast %179 : vector<1x1x16x128xf32> to vector<16x128xf32>
    %181 = vector.broadcast %178 : f32 to vector<16x128xf32>
    %182 = arith.mulf %181, %180 : vector<16x128xf32>
    %183 = arith.addf %159, %182 : vector<16x128xf32>
    %c43 = arith.constant 43 : index
    %184 = memref.load %arg1[%c43] : memref<98xf32, #tpu.memory_space<smem>>
    %c0_179 = arith.constant 0 : index
    %c1_180 = arith.constant 1 : index
    %c6_181 = arith.constant 6 : index
    %c0_182 = arith.constant 0 : index
    %185 = vector.load %arg5[%c0_179, %c1_180, %c6_181, %c0_182] : memref<2x7x22x128xf32, #tpu.memory_space<vmem>>, vector<1x1x16x128xf32>
    %186 = vector.shape_cast %185 : vector<1x1x16x128xf32> to vector<16x128xf32>
    %187 = vector.broadcast %184 : f32 to vector<16x128xf32>
    %188 = arith.mulf %187, %186 : vector<16x128xf32>
    %189 = arith.addf %165, %188 : vector<16x128xf32>
    %c2_183 = arith.constant 2 : index
    %190 = memref.load %arg1[%c2_183] : memref<98xf32, #tpu.memory_space<smem>>
    %c0_184 = arith.constant 0 : index
    %c2_185 = arith.constant 2 : index
    %c0_186 = arith.constant 0 : index
    %c0_187 = arith.constant 0 : index
    %191 = vector.load %arg5[%c0_184, %c2_185, %c0_186, %c0_187] : memref<2x7x22x128xf32, #tpu.memory_space<vmem>>, vector<1x1x16x128xf32>
    %192 = vector.shape_cast %191 : vector<1x1x16x128xf32> to vector<16x128xf32>
    %193 = vector.broadcast %190 : f32 to vector<16x128xf32>
    %194 = arith.mulf %193, %192 : vector<16x128xf32>
    %195 = arith.addf %171, %194 : vector<16x128xf32>
    %c9 = arith.constant 9 : index
    %196 = memref.load %arg1[%c9] : memref<98xf32, #tpu.memory_space<smem>>
    %c0_188 = arith.constant 0 : index
    %c2_189 = arith.constant 2 : index
    %c1_190 = arith.constant 1 : index
    %c0_191 = arith.constant 0 : index
    %197 = vector.load %arg5[%c0_188, %c2_189, %c1_190, %c0_191] : memref<2x7x22x128xf32, #tpu.memory_space<vmem>>, vector<1x1x16x128xf32>
    %198 = vector.shape_cast %197 : vector<1x1x16x128xf32> to vector<16x128xf32>
    %199 = vector.broadcast %196 : f32 to vector<16x128xf32>
    %200 = arith.mulf %199, %198 : vector<16x128xf32>
    %201 = arith.addf %177, %200 : vector<16x128xf32>
    %c16 = arith.constant 16 : index
    %202 = memref.load %arg1[%c16] : memref<98xf32, #tpu.memory_space<smem>>
    %c0_192 = arith.constant 0 : index
    %c2_193 = arith.constant 2 : index
    %c2_194 = arith.constant 2 : index
    %c0_195 = arith.constant 0 : index
    %203 = vector.load %arg5[%c0_192, %c2_193, %c2_194, %c0_195] : memref<2x7x22x128xf32, #tpu.memory_space<vmem>>, vector<1x1x16x128xf32>
    %204 = vector.shape_cast %203 : vector<1x1x16x128xf32> to vector<16x128xf32>
    %205 = vector.broadcast %202 : f32 to vector<16x128xf32>
    %206 = arith.mulf %205, %204 : vector<16x128xf32>
    %207 = arith.addf %183, %206 : vector<16x128xf32>
    %c23 = arith.constant 23 : index
    %208 = memref.load %arg1[%c23] : memref<98xf32, #tpu.memory_space<smem>>
    %c0_196 = arith.constant 0 : index
    %c2_197 = arith.constant 2 : index
    %c3_198 = arith.constant 3 : index
    %c0_199 = arith.constant 0 : index
    %209 = vector.load %arg5[%c0_196, %c2_197, %c3_198, %c0_199] : memref<2x7x22x128xf32, #tpu.memory_space<vmem>>, vector<1x1x16x128xf32>
    %210 = vector.shape_cast %209 : vector<1x1x16x128xf32> to vector<16x128xf32>
    %211 = vector.broadcast %208 : f32 to vector<16x128xf32>
    %212 = arith.mulf %211, %210 : vector<16x128xf32>
    %213 = arith.addf %189, %212 : vector<16x128xf32>
    %c30 = arith.constant 30 : index
    %214 = memref.load %arg1[%c30] : memref<98xf32, #tpu.memory_space<smem>>
    %c0_200 = arith.constant 0 : index
    %c2_201 = arith.constant 2 : index
    %c4_202 = arith.constant 4 : index
    %c0_203 = arith.constant 0 : index
    %215 = vector.load %arg5[%c0_200, %c2_201, %c4_202, %c0_203] : memref<2x7x22x128xf32, #tpu.memory_space<vmem>>, vector<1x1x16x128xf32>
    %216 = vector.shape_cast %215 : vector<1x1x16x128xf32> to vector<16x128xf32>
    %217 = vector.broadcast %214 : f32 to vector<16x128xf32>
    %218 = arith.mulf %217, %216 : vector<16x128xf32>
    %219 = arith.addf %195, %218 : vector<16x128xf32>
    %c37 = arith.constant 37 : index
    %220 = memref.load %arg1[%c37] : memref<98xf32, #tpu.memory_space<smem>>
    %c0_204 = arith.constant 0 : index
    %c2_205 = arith.constant 2 : index
    %c5_206 = arith.constant 5 : index
    %c0_207 = arith.constant 0 : index
    %221 = vector.load %arg5[%c0_204, %c2_205, %c5_206, %c0_207] : memref<2x7x22x128xf32, #tpu.memory_space<vmem>>, vector<1x1x16x128xf32>
    %222 = vector.shape_cast %221 : vector<1x1x16x128xf32> to vector<16x128xf32>
    %223 = vector.broadcast %220 : f32 to vector<16x128xf32>
    %224 = arith.mulf %223, %222 : vector<16x128xf32>
    %225 = arith.addf %201, %224 : vector<16x128xf32>
    %c44 = arith.constant 44 : index
    %226 = memref.load %arg1[%c44] : memref<98xf32, #tpu.memory_space<smem>>
    %c0_208 = arith.constant 0 : index
    %c2_209 = arith.constant 2 : index
    %c6_210 = arith.constant 6 : index
    %c0_211 = arith.constant 0 : index
    %227 = vector.load %arg5[%c0_208, %c2_209, %c6_210, %c0_211] : memref<2x7x22x128xf32, #tpu.memory_space<vmem>>, vector<1x1x16x128xf32>
    %228 = vector.shape_cast %227 : vector<1x1x16x128xf32> to vector<16x128xf32>
    %229 = vector.broadcast %226 : f32 to vector<16x128xf32>
    %230 = arith.mulf %229, %228 : vector<16x128xf32>
    %231 = arith.addf %207, %230 : vector<16x128xf32>
    %c3_212 = arith.constant 3 : index
    %232 = memref.load %arg1[%c3_212] : memref<98xf32, #tpu.memory_space<smem>>
    %c0_213 = arith.constant 0 : index
    %c3_214 = arith.constant 3 : index
    %c0_215 = arith.constant 0 : index
    %c0_216 = arith.constant 0 : index
    %233 = vector.load %arg5[%c0_213, %c3_214, %c0_215, %c0_216] : memref<2x7x22x128xf32, #tpu.memory_space<vmem>>, vector<1x1x16x128xf32>
    %234 = vector.shape_cast %233 : vector<1x1x16x128xf32> to vector<16x128xf32>
    %235 = vector.broadcast %232 : f32 to vector<16x128xf32>
    %236 = arith.mulf %235, %234 : vector<16x128xf32>
    %237 = arith.addf %213, %236 : vector<16x128xf32>
    %c10 = arith.constant 10 : index
    %238 = memref.load %arg1[%c10] : memref<98xf32, #tpu.memory_space<smem>>
    %c0_217 = arith.constant 0 : index
    %c3_218 = arith.constant 3 : index
    %c1_219 = arith.constant 1 : index
    %c0_220 = arith.constant 0 : index
    %239 = vector.load %arg5[%c0_217, %c3_218, %c1_219, %c0_220] : memref<2x7x22x128xf32, #tpu.memory_space<vmem>>, vector<1x1x16x128xf32>
    %240 = vector.shape_cast %239 : vector<1x1x16x128xf32> to vector<16x128xf32>
    %241 = vector.broadcast %238 : f32 to vector<16x128xf32>
    %242 = arith.mulf %241, %240 : vector<16x128xf32>
    %243 = arith.addf %219, %242 : vector<16x128xf32>
    %c17 = arith.constant 17 : index
    %244 = memref.load %arg1[%c17] : memref<98xf32, #tpu.memory_space<smem>>
    %c0_221 = arith.constant 0 : index
    %c3_222 = arith.constant 3 : index
    %c2_223 = arith.constant 2 : index
    %c0_224 = arith.constant 0 : index
    %245 = vector.load %arg5[%c0_221, %c3_222, %c2_223, %c0_224] : memref<2x7x22x128xf32, #tpu.memory_space<vmem>>, vector<1x1x16x128xf32>
    %246 = vector.shape_cast %245 : vector<1x1x16x128xf32> to vector<16x128xf32>
    %247 = vector.broadcast %244 : f32 to vector<16x128xf32>
    %248 = arith.mulf %247, %246 : vector<16x128xf32>
    %249 = arith.addf %225, %248 : vector<16x128xf32>
    %c24 = arith.constant 24 : index
    %250 = memref.load %arg1[%c24] : memref<98xf32, #tpu.memory_space<smem>>
    %c0_225 = arith.constant 0 : index
    %c3_226 = arith.constant 3 : index
    %c3_227 = arith.constant 3 : index
    %c0_228 = arith.constant 0 : index
    %251 = vector.load %arg5[%c0_225, %c3_226, %c3_227, %c0_228] : memref<2x7x22x128xf32, #tpu.memory_space<vmem>>, vector<1x1x16x128xf32>
    %252 = vector.shape_cast %251 : vector<1x1x16x128xf32> to vector<16x128xf32>
    %253 = vector.broadcast %250 : f32 to vector<16x128xf32>
    %254 = arith.mulf %253, %252 : vector<16x128xf32>
    %255 = arith.addf %231, %254 : vector<16x128xf32>
    %c31 = arith.constant 31 : index
    %256 = memref.load %arg1[%c31] : memref<98xf32, #tpu.memory_space<smem>>
    %c0_229 = arith.constant 0 : index
    %c3_230 = arith.constant 3 : index
    %c4_231 = arith.constant 4 : index
    %c0_232 = arith.constant 0 : index
    %257 = vector.load %arg5[%c0_229, %c3_230, %c4_231, %c0_232] : memref<2x7x22x128xf32, #tpu.memory_space<vmem>>, vector<1x1x16x128xf32>
    %258 = vector.shape_cast %257 : vector<1x1x16x128xf32> to vector<16x128xf32>
    %259 = vector.broadcast %256 : f32 to vector<16x128xf32>
    %260 = arith.mulf %259, %258 : vector<16x128xf32>
    %261 = arith.addf %237, %260 : vector<16x128xf32>
    %c38 = arith.constant 38 : index
    %262 = memref.load %arg1[%c38] : memref<98xf32, #tpu.memory_space<smem>>
    %c0_233 = arith.constant 0 : index
    %c3_234 = arith.constant 3 : index
    %c5_235 = arith.constant 5 : index
    %c0_236 = arith.constant 0 : index
    %263 = vector.load %arg5[%c0_233, %c3_234, %c5_235, %c0_236] : memref<2x7x22x128xf32, #tpu.memory_space<vmem>>, vector<1x1x16x128xf32>
    %264 = vector.shape_cast %263 : vector<1x1x16x128xf32> to vector<16x128xf32>
    %265 = vector.broadcast %262 : f32 to vector<16x128xf32>
    %266 = arith.mulf %265, %264 : vector<16x128xf32>
    %267 = arith.addf %243, %266 : vector<16x128xf32>
    %c45 = arith.constant 45 : index
    %268 = memref.load %arg1[%c45] : memref<98xf32, #tpu.memory_space<smem>>
    %c0_237 = arith.constant 0 : index
    %c3_238 = arith.constant 3 : index
    %c6_239 = arith.constant 6 : index
    %c0_240 = arith.constant 0 : index
    %269 = vector.load %arg5[%c0_237, %c3_238, %c6_239, %c0_240] : memref<2x7x22x128xf32, #tpu.memory_space<vmem>>, vector<1x1x16x128xf32>
    %270 = vector.shape_cast %269 : vector<1x1x16x128xf32> to vector<16x128xf32>
    %271 = vector.broadcast %268 : f32 to vector<16x128xf32>
    %272 = arith.mulf %271, %270 : vector<16x128xf32>
    %273 = arith.addf %249, %272 : vector<16x128xf32>
    %c4_241 = arith.constant 4 : index
    %274 = memref.load %arg1[%c4_241] : memref<98xf32, #tpu.memory_space<smem>>
    %c0_242 = arith.constant 0 : index
    %c4_243 = arith.constant 4 : index
    %c0_244 = arith.constant 0 : index
    %c0_245 = arith.constant 0 : index
    %275 = vector.load %arg5[%c0_242, %c4_243, %c0_244, %c0_245] : memref<2x7x22x128xf32, #tpu.memory_space<vmem>>, vector<1x1x16x128xf32>
    %276 = vector.shape_cast %275 : vector<1x1x16x128xf32> to vector<16x128xf32>
    %277 = vector.broadcast %274 : f32 to vector<16x128xf32>
    %278 = arith.mulf %277, %276 : vector<16x128xf32>
    %279 = arith.addf %255, %278 : vector<16x128xf32>
    %c11 = arith.constant 11 : index
    %280 = memref.load %arg1[%c11] : memref<98xf32, #tpu.memory_space<smem>>
    %c0_246 = arith.constant 0 : index
    %c4_247 = arith.constant 4 : index
    %c1_248 = arith.constant 1 : index
    %c0_249 = arith.constant 0 : index
    %281 = vector.load %arg5[%c0_246, %c4_247, %c1_248, %c0_249] : memref<2x7x22x128xf32, #tpu.memory_space<vmem>>, vector<1x1x16x128xf32>
    %282 = vector.shape_cast %281 : vector<1x1x16x128xf32> to vector<16x128xf32>
    %283 = vector.broadcast %280 : f32 to vector<16x128xf32>
    %284 = arith.mulf %283, %282 : vector<16x128xf32>
    %285 = arith.addf %261, %284 : vector<16x128xf32>
    %c18 = arith.constant 18 : index
    %286 = memref.load %arg1[%c18] : memref<98xf32, #tpu.memory_space<smem>>
    %c0_250 = arith.constant 0 : index
    %c4_251 = arith.constant 4 : index
    %c2_252 = arith.constant 2 : index
    %c0_253 = arith.constant 0 : index
    %287 = vector.load %arg5[%c0_250, %c4_251, %c2_252, %c0_253] : memref<2x7x22x128xf32, #tpu.memory_space<vmem>>, vector<1x1x16x128xf32>
    %288 = vector.shape_cast %287 : vector<1x1x16x128xf32> to vector<16x128xf32>
    %289 = vector.broadcast %286 : f32 to vector<16x128xf32>
    %290 = arith.mulf %289, %288 : vector<16x128xf32>
    %291 = arith.addf %267, %290 : vector<16x128xf32>
    %c25 = arith.constant 25 : index
    %292 = memref.load %arg1[%c25] : memref<98xf32, #tpu.memory_space<smem>>
    %c0_254 = arith.constant 0 : index
    %c4_255 = arith.constant 4 : index
    %c3_256 = arith.constant 3 : index
    %c0_257 = arith.constant 0 : index
    %293 = vector.load %arg5[%c0_254, %c4_255, %c3_256, %c0_257] : memref<2x7x22x128xf32, #tpu.memory_space<vmem>>, vector<1x1x16x128xf32>
    %294 = vector.shape_cast %293 : vector<1x1x16x128xf32> to vector<16x128xf32>
    %295 = vector.broadcast %292 : f32 to vector<16x128xf32>
    %296 = arith.mulf %295, %294 : vector<16x128xf32>
    %297 = arith.addf %273, %296 : vector<16x128xf32>
    %c32 = arith.constant 32 : index
    %298 = memref.load %arg1[%c32] : memref<98xf32, #tpu.memory_space<smem>>
    %c0_258 = arith.constant 0 : index
    %c4_259 = arith.constant 4 : index
    %c4_260 = arith.constant 4 : index
    %c0_261 = arith.constant 0 : index
    %299 = vector.load %arg5[%c0_258, %c4_259, %c4_260, %c0_261] : memref<2x7x22x128xf32, #tpu.memory_space<vmem>>, vector<1x1x16x128xf32>
    %300 = vector.shape_cast %299 : vector<1x1x16x128xf32> to vector<16x128xf32>
    %301 = vector.broadcast %298 : f32 to vector<16x128xf32>
    %302 = arith.mulf %301, %300 : vector<16x128xf32>
    %303 = arith.addf %279, %302 : vector<16x128xf32>
    %c39 = arith.constant 39 : index
    %304 = memref.load %arg1[%c39] : memref<98xf32, #tpu.memory_space<smem>>
    %c0_262 = arith.constant 0 : index
    %c4_263 = arith.constant 4 : index
    %c5_264 = arith.constant 5 : index
    %c0_265 = arith.constant 0 : index
    %305 = vector.load %arg5[%c0_262, %c4_263, %c5_264, %c0_265] : memref<2x7x22x128xf32, #tpu.memory_space<vmem>>, vector<1x1x16x128xf32>
    %306 = vector.shape_cast %305 : vector<1x1x16x128xf32> to vector<16x128xf32>
    %307 = vector.broadcast %304 : f32 to vector<16x128xf32>
    %308 = arith.mulf %307, %306 : vector<16x128xf32>
    %309 = arith.addf %285, %308 : vector<16x128xf32>
    %c46 = arith.constant 46 : index
    %310 = memref.load %arg1[%c46] : memref<98xf32, #tpu.memory_space<smem>>
    %c0_266 = arith.constant 0 : index
    %c4_267 = arith.constant 4 : index
    %c6_268 = arith.constant 6 : index
    %c0_269 = arith.constant 0 : index
    %311 = vector.load %arg5[%c0_266, %c4_267, %c6_268, %c0_269] : memref<2x7x22x128xf32, #tpu.memory_space<vmem>>, vector<1x1x16x128xf32>
    %312 = vector.shape_cast %311 : vector<1x1x16x128xf32> to vector<16x128xf32>
    %313 = vector.broadcast %310 : f32 to vector<16x128xf32>
    %314 = arith.mulf %313, %312 : vector<16x128xf32>
    %315 = arith.addf %291, %314 : vector<16x128xf32>
    %c5_270 = arith.constant 5 : index
    %316 = memref.load %arg1[%c5_270] : memref<98xf32, #tpu.memory_space<smem>>
    %c0_271 = arith.constant 0 : index
    %c5_272 = arith.constant 5 : index
    %c0_273 = arith.constant 0 : index
    %c0_274 = arith.constant 0 : index
    %317 = vector.load %arg5[%c0_271, %c5_272, %c0_273, %c0_274] : memref<2x7x22x128xf32, #tpu.memory_space<vmem>>, vector<1x1x16x128xf32>
    %318 = vector.shape_cast %317 : vector<1x1x16x128xf32> to vector<16x128xf32>
    %319 = vector.broadcast %316 : f32 to vector<16x128xf32>
    %320 = arith.mulf %319, %318 : vector<16x128xf32>
    %321 = arith.addf %297, %320 : vector<16x128xf32>
    %c12 = arith.constant 12 : index
    %322 = memref.load %arg1[%c12] : memref<98xf32, #tpu.memory_space<smem>>
    %c0_275 = arith.constant 0 : index
    %c5_276 = arith.constant 5 : index
    %c1_277 = arith.constant 1 : index
    %c0_278 = arith.constant 0 : index
    %323 = vector.load %arg5[%c0_275, %c5_276, %c1_277, %c0_278] : memref<2x7x22x128xf32, #tpu.memory_space<vmem>>, vector<1x1x16x128xf32>
    %324 = vector.shape_cast %323 : vector<1x1x16x128xf32> to vector<16x128xf32>
    %325 = vector.broadcast %322 : f32 to vector<16x128xf32>
    %326 = arith.mulf %325, %324 : vector<16x128xf32>
    %327 = arith.addf %303, %326 : vector<16x128xf32>
    %c19_279 = arith.constant 19 : index
    %328 = memref.load %arg1[%c19_279] : memref<98xf32, #tpu.memory_space<smem>>
    %c0_280 = arith.constant 0 : index
    %c5_281 = arith.constant 5 : index
    %c2_282 = arith.constant 2 : index
    %c0_283 = arith.constant 0 : index
    %329 = vector.load %arg5[%c0_280, %c5_281, %c2_282, %c0_283] : memref<2x7x22x128xf32, #tpu.memory_space<vmem>>, vector<1x1x16x128xf32>
    %330 = vector.shape_cast %329 : vector<1x1x16x128xf32> to vector<16x128xf32>
    %331 = vector.broadcast %328 : f32 to vector<16x128xf32>
    %332 = arith.mulf %331, %330 : vector<16x128xf32>
    %333 = arith.addf %309, %332 : vector<16x128xf32>
    %c26 = arith.constant 26 : index
    %334 = memref.load %arg1[%c26] : memref<98xf32, #tpu.memory_space<smem>>
    %c0_284 = arith.constant 0 : index
    %c5_285 = arith.constant 5 : index
    %c3_286 = arith.constant 3 : index
    %c0_287 = arith.constant 0 : index
    %335 = vector.load %arg5[%c0_284, %c5_285, %c3_286, %c0_287] : memref<2x7x22x128xf32, #tpu.memory_space<vmem>>, vector<1x1x16x128xf32>
    %336 = vector.shape_cast %335 : vector<1x1x16x128xf32> to vector<16x128xf32>
    %337 = vector.broadcast %334 : f32 to vector<16x128xf32>
    %338 = arith.mulf %337, %336 : vector<16x128xf32>
    %339 = arith.addf %315, %338 : vector<16x128xf32>
    %c33 = arith.constant 33 : index
    %340 = memref.load %arg1[%c33] : memref<98xf32, #tpu.memory_space<smem>>
    %c0_288 = arith.constant 0 : index
    %c5_289 = arith.constant 5 : index
    %c4_290 = arith.constant 4 : index
    %c0_291 = arith.constant 0 : index
    %341 = vector.load %arg5[%c0_288, %c5_289, %c4_290, %c0_291] : memref<2x7x22x128xf32, #tpu.memory_space<vmem>>, vector<1x1x16x128xf32>
    %342 = vector.shape_cast %341 : vector<1x1x16x128xf32> to vector<16x128xf32>
    %343 = vector.broadcast %340 : f32 to vector<16x128xf32>
    %344 = arith.mulf %343, %342 : vector<16x128xf32>
    %345 = arith.addf %321, %344 : vector<16x128xf32>
    %c40 = arith.constant 40 : index
    %346 = memref.load %arg1[%c40] : memref<98xf32, #tpu.memory_space<smem>>
    %c0_292 = arith.constant 0 : index
    %c5_293 = arith.constant 5 : index
    %c5_294 = arith.constant 5 : index
    %c0_295 = arith.constant 0 : index
    %347 = vector.load %arg5[%c0_292, %c5_293, %c5_294, %c0_295] : memref<2x7x22x128xf32, #tpu.memory_space<vmem>>, vector<1x1x16x128xf32>
    %348 = vector.shape_cast %347 : vector<1x1x16x128xf32> to vector<16x128xf32>
    %349 = vector.broadcast %346 : f32 to vector<16x128xf32>
    %350 = arith.mulf %349, %348 : vector<16x128xf32>
    %351 = arith.addf %327, %350 : vector<16x128xf32>
    %c47 = arith.constant 47 : index
    %352 = memref.load %arg1[%c47] : memref<98xf32, #tpu.memory_space<smem>>
    %c0_296 = arith.constant 0 : index
    %c5_297 = arith.constant 5 : index
    %c6_298 = arith.constant 6 : index
    %c0_299 = arith.constant 0 : index
    %353 = vector.load %arg5[%c0_296, %c5_297, %c6_298, %c0_299] : memref<2x7x22x128xf32, #tpu.memory_space<vmem>>, vector<1x1x16x128xf32>
    %354 = vector.shape_cast %353 : vector<1x1x16x128xf32> to vector<16x128xf32>
    %355 = vector.broadcast %352 : f32 to vector<16x128xf32>
    %356 = arith.mulf %355, %354 : vector<16x128xf32>
    %357 = arith.addf %333, %356 : vector<16x128xf32>
    %c6_300 = arith.constant 6 : index
    %358 = memref.load %arg1[%c6_300] : memref<98xf32, #tpu.memory_space<smem>>
    %c0_301 = arith.constant 0 : index
    %c6_302 = arith.constant 6 : index
    %c0_303 = arith.constant 0 : index
    %c0_304 = arith.constant 0 : index
    %359 = vector.load %arg5[%c0_301, %c6_302, %c0_303, %c0_304] : memref<2x7x22x128xf32, #tpu.memory_space<vmem>>, vector<1x1x16x128xf32>
    %360 = vector.shape_cast %359 : vector<1x1x16x128xf32> to vector<16x128xf32>
    %361 = vector.broadcast %358 : f32 to vector<16x128xf32>
    %362 = arith.mulf %361, %360 : vector<16x128xf32>
    %363 = arith.addf %339, %362 : vector<16x128xf32>
    %c13 = arith.constant 13 : index
    %364 = memref.load %arg1[%c13] : memref<98xf32, #tpu.memory_space<smem>>
    %c0_305 = arith.constant 0 : index
    %c6_306 = arith.constant 6 : index
    %c1_307 = arith.constant 1 : index
    %c0_308 = arith.constant 0 : index
    %365 = vector.load %arg5[%c0_305, %c6_306, %c1_307, %c0_308] : memref<2x7x22x128xf32, #tpu.memory_space<vmem>>, vector<1x1x16x128xf32>
    %366 = vector.shape_cast %365 : vector<1x1x16x128xf32> to vector<16x128xf32>
    %367 = vector.broadcast %364 : f32 to vector<16x128xf32>
    %368 = arith.mulf %367, %366 : vector<16x128xf32>
    %369 = arith.addf %345, %368 : vector<16x128xf32>
    %c20 = arith.constant 20 : index
    %370 = memref.load %arg1[%c20] : memref<98xf32, #tpu.memory_space<smem>>
    %c0_309 = arith.constant 0 : index
    %c6_310 = arith.constant 6 : index
    %c2_311 = arith.constant 2 : index
    %c0_312 = arith.constant 0 : index
    %371 = vector.load %arg5[%c0_309, %c6_310, %c2_311, %c0_312] : memref<2x7x22x128xf32, #tpu.memory_space<vmem>>, vector<1x1x16x128xf32>
    %372 = vector.shape_cast %371 : vector<1x1x16x128xf32> to vector<16x128xf32>
    %373 = vector.broadcast %370 : f32 to vector<16x128xf32>
    %374 = arith.mulf %373, %372 : vector<16x128xf32>
    %375 = arith.addf %351, %374 : vector<16x128xf32>
    %c27 = arith.constant 27 : index
    %376 = memref.load %arg1[%c27] : memref<98xf32, #tpu.memory_space<smem>>
    %c0_313 = arith.constant 0 : index
    %c6_314 = arith.constant 6 : index
    %c3_315 = arith.constant 3 : index
    %c0_316 = arith.constant 0 : index
    %377 = vector.load %arg5[%c0_313, %c6_314, %c3_315, %c0_316] : memref<2x7x22x128xf32, #tpu.memory_space<vmem>>, vector<1x1x16x128xf32>
    %378 = vector.shape_cast %377 : vector<1x1x16x128xf32> to vector<16x128xf32>
    %379 = vector.broadcast %376 : f32 to vector<16x128xf32>
    %380 = arith.mulf %379, %378 : vector<16x128xf32>
    %381 = arith.addf %357, %380 : vector<16x128xf32>
    %c34 = arith.constant 34 : index
    %382 = memref.load %arg1[%c34] : memref<98xf32, #tpu.memory_space<smem>>
    %c0_317 = arith.constant 0 : index
    %c6_318 = arith.constant 6 : index
    %c4_319 = arith.constant 4 : index
    %c0_320 = arith.constant 0 : index
    %383 = vector.load %arg5[%c0_317, %c6_318, %c4_319, %c0_320] : memref<2x7x22x128xf32, #tpu.memory_space<vmem>>, vector<1x1x16x128xf32>
    %384 = vector.shape_cast %383 : vector<1x1x16x128xf32> to vector<16x128xf32>
    %385 = vector.broadcast %382 : f32 to vector<16x128xf32>
    %386 = arith.mulf %385, %384 : vector<16x128xf32>
    %387 = arith.addf %363, %386 : vector<16x128xf32>
    %c41 = arith.constant 41 : index
    %388 = memref.load %arg1[%c41] : memref<98xf32, #tpu.memory_space<smem>>
    %c0_321 = arith.constant 0 : index
    %c6_322 = arith.constant 6 : index
    %c5_323 = arith.constant 5 : index
    %c0_324 = arith.constant 0 : index
    %389 = vector.load %arg5[%c0_321, %c6_322, %c5_323, %c0_324] : memref<2x7x22x128xf32, #tpu.memory_space<vmem>>, vector<1x1x16x128xf32>
    %390 = vector.shape_cast %389 : vector<1x1x16x128xf32> to vector<16x128xf32>
    %391 = vector.broadcast %388 : f32 to vector<16x128xf32>
    %392 = arith.mulf %391, %390 : vector<16x128xf32>
    %393 = arith.addf %369, %392 : vector<16x128xf32>
    %c48 = arith.constant 48 : index
    %394 = memref.load %arg1[%c48] : memref<98xf32, #tpu.memory_space<smem>>
    %c0_325 = arith.constant 0 : index
    %c6_326 = arith.constant 6 : index
    %c6_327 = arith.constant 6 : index
    %c0_328 = arith.constant 0 : index
    %395 = vector.load %arg5[%c0_325, %c6_326, %c6_327, %c0_328] : memref<2x7x22x128xf32, #tpu.memory_space<vmem>>, vector<1x1x16x128xf32>
    %396 = vector.shape_cast %395 : vector<1x1x16x128xf32> to vector<16x128xf32>
    %397 = vector.broadcast %394 : f32 to vector<16x128xf32>
    %398 = arith.mulf %397, %396 : vector<16x128xf32>
    %399 = arith.addf %375, %398 : vector<16x128xf32>
    %c49 = arith.constant 49 : index
    %400 = memref.load %arg1[%c49] : memref<98xf32, #tpu.memory_space<smem>>
    %c1_329 = arith.constant 1 : index
    %c0_330 = arith.constant 0 : index
    %c0_331 = arith.constant 0 : index
    %c0_332 = arith.constant 0 : index
    %401 = vector.load %arg5[%c1_329, %c0_330, %c0_331, %c0_332] : memref<2x7x22x128xf32, #tpu.memory_space<vmem>>, vector<1x1x16x128xf32>
    %402 = vector.shape_cast %401 : vector<1x1x16x128xf32> to vector<16x128xf32>
    %403 = vector.broadcast %400 : f32 to vector<16x128xf32>
    %404 = arith.mulf %403, %402 : vector<16x128xf32>
    %405 = arith.addf %381, %404 : vector<16x128xf32>
    %c56 = arith.constant 56 : index
    %406 = memref.load %arg1[%c56] : memref<98xf32, #tpu.memory_space<smem>>
    %c1_333 = arith.constant 1 : index
    %c0_334 = arith.constant 0 : index
    %c1_335 = arith.constant 1 : index
    %c0_336 = arith.constant 0 : index
    %407 = vector.load %arg5[%c1_333, %c0_334, %c1_335, %c0_336] : memref<2x7x22x128xf32, #tpu.memory_space<vmem>>, vector<1x1x16x128xf32>
    %408 = vector.shape_cast %407 : vector<1x1x16x128xf32> to vector<16x128xf32>
    %409 = vector.broadcast %406 : f32 to vector<16x128xf32>
    %410 = arith.mulf %409, %408 : vector<16x128xf32>
    %411 = arith.addf %387, %410 : vector<16x128xf32>
    %c63 = arith.constant 63 : index
    %412 = memref.load %arg1[%c63] : memref<98xf32, #tpu.memory_space<smem>>
    %c1_337 = arith.constant 1 : index
    %c0_338 = arith.constant 0 : index
    %c2_339 = arith.constant 2 : index
    %c0_340 = arith.constant 0 : index
    %413 = vector.load %arg5[%c1_337, %c0_338, %c2_339, %c0_340] : memref<2x7x22x128xf32, #tpu.memory_space<vmem>>, vector<1x1x16x128xf32>
    %414 = vector.shape_cast %413 : vector<1x1x16x128xf32> to vector<16x128xf32>
    %415 = vector.broadcast %412 : f32 to vector<16x128xf32>
    %416 = arith.mulf %415, %414 : vector<16x128xf32>
    %417 = arith.addf %393, %416 : vector<16x128xf32>
    %c70 = arith.constant 70 : index
    %418 = memref.load %arg1[%c70] : memref<98xf32, #tpu.memory_space<smem>>
    %c1_341 = arith.constant 1 : index
    %c0_342 = arith.constant 0 : index
    %c3_343 = arith.constant 3 : index
    %c0_344 = arith.constant 0 : index
    %419 = vector.load %arg5[%c1_341, %c0_342, %c3_343, %c0_344] : memref<2x7x22x128xf32, #tpu.memory_space<vmem>>, vector<1x1x16x128xf32>
    %420 = vector.shape_cast %419 : vector<1x1x16x128xf32> to vector<16x128xf32>
    %421 = vector.broadcast %418 : f32 to vector<16x128xf32>
    %422 = arith.mulf %421, %420 : vector<16x128xf32>
    %423 = arith.addf %399, %422 : vector<16x128xf32>
    %c77 = arith.constant 77 : index
    %424 = memref.load %arg1[%c77] : memref<98xf32, #tpu.memory_space<smem>>
    %c1_345 = arith.constant 1 : index
    %c0_346 = arith.constant 0 : index
    %c4_347 = arith.constant 4 : index
    %c0_348 = arith.constant 0 : index
    %425 = vector.load %arg5[%c1_345, %c0_346, %c4_347, %c0_348] : memref<2x7x22x128xf32, #tpu.memory_space<vmem>>, vector<1x1x16x128xf32>
    %426 = vector.shape_cast %425 : vector<1x1x16x128xf32> to vector<16x128xf32>
    %427 = vector.broadcast %424 : f32 to vector<16x128xf32>
    %428 = arith.mulf %427, %426 : vector<16x128xf32>
    %429 = arith.addf %405, %428 : vector<16x128xf32>
    %c84 = arith.constant 84 : index
    %430 = memref.load %arg1[%c84] : memref<98xf32, #tpu.memory_space<smem>>
    %c1_349 = arith.constant 1 : index
    %c0_350 = arith.constant 0 : index
    %c5_351 = arith.constant 5 : index
    %c0_352 = arith.constant 0 : index
    %431 = vector.load %arg5[%c1_349, %c0_350, %c5_351, %c0_352] : memref<2x7x22x128xf32, #tpu.memory_space<vmem>>, vector<1x1x16x128xf32>
    %432 = vector.shape_cast %431 : vector<1x1x16x128xf32> to vector<16x128xf32>
    %433 = vector.broadcast %430 : f32 to vector<16x128xf32>
    %434 = arith.mulf %433, %432 : vector<16x128xf32>
    %435 = arith.addf %411, %434 : vector<16x128xf32>
    %c91 = arith.constant 91 : index
    %436 = memref.load %arg1[%c91] : memref<98xf32, #tpu.memory_space<smem>>
    %c1_353 = arith.constant 1 : index
    %c0_354 = arith.constant 0 : index
    %c6_355 = arith.constant 6 : index
    %c0_356 = arith.constant 0 : index
    %437 = vector.load %arg5[%c1_353, %c0_354, %c6_355, %c0_356] : memref<2x7x22x128xf32, #tpu.memory_space<vmem>>, vector<1x1x16x128xf32>
    %438 = vector.shape_cast %437 : vector<1x1x16x128xf32> to vector<16x128xf32>
    %439 = vector.broadcast %436 : f32 to vector<16x128xf32>
    %440 = arith.mulf %439, %438 : vector<16x128xf32>
    %441 = arith.addf %417, %440 : vector<16x128xf32>
    %c50 = arith.constant 50 : index
    %442 = memref.load %arg1[%c50] : memref<98xf32, #tpu.memory_space<smem>>
    %c1_357 = arith.constant 1 : index
    %c1_358 = arith.constant 1 : index
    %c0_359 = arith.constant 0 : index
    %c0_360 = arith.constant 0 : index
    %443 = vector.load %arg5[%c1_357, %c1_358, %c0_359, %c0_360] : memref<2x7x22x128xf32, #tpu.memory_space<vmem>>, vector<1x1x16x128xf32>
    %444 = vector.shape_cast %443 : vector<1x1x16x128xf32> to vector<16x128xf32>
    %445 = vector.broadcast %442 : f32 to vector<16x128xf32>
    %446 = arith.mulf %445, %444 : vector<16x128xf32>
    %447 = arith.addf %423, %446 : vector<16x128xf32>
    %c57 = arith.constant 57 : index
    %448 = memref.load %arg1[%c57] : memref<98xf32, #tpu.memory_space<smem>>
    %c1_361 = arith.constant 1 : index
    %c1_362 = arith.constant 1 : index
    %c1_363 = arith.constant 1 : index
    %c0_364 = arith.constant 0 : index
    %449 = vector.load %arg5[%c1_361, %c1_362, %c1_363, %c0_364] : memref<2x7x22x128xf32, #tpu.memory_space<vmem>>, vector<1x1x16x128xf32>
    %450 = vector.shape_cast %449 : vector<1x1x16x128xf32> to vector<16x128xf32>
    %451 = vector.broadcast %448 : f32 to vector<16x128xf32>
    %452 = arith.mulf %451, %450 : vector<16x128xf32>
    %453 = arith.addf %429, %452 : vector<16x128xf32>
    %c64 = arith.constant 64 : index
    %454 = memref.load %arg1[%c64] : memref<98xf32, #tpu.memory_space<smem>>
    %c1_365 = arith.constant 1 : index
    %c1_366 = arith.constant 1 : index
    %c2_367 = arith.constant 2 : index
    %c0_368 = arith.constant 0 : index
    %455 = vector.load %arg5[%c1_365, %c1_366, %c2_367, %c0_368] : memref<2x7x22x128xf32, #tpu.memory_space<vmem>>, vector<1x1x16x128xf32>
    %456 = vector.shape_cast %455 : vector<1x1x16x128xf32> to vector<16x128xf32>
    %457 = vector.broadcast %454 : f32 to vector<16x128xf32>
    %458 = arith.mulf %457, %456 : vector<16x128xf32>
    %459 = arith.addf %435, %458 : vector<16x128xf32>
    %c71 = arith.constant 71 : index
    %460 = memref.load %arg1[%c71] : memref<98xf32, #tpu.memory_space<smem>>
    %c1_369 = arith.constant 1 : index
    %c1_370 = arith.constant 1 : index
    %c3_371 = arith.constant 3 : index
    %c0_372 = arith.constant 0 : index
    %461 = vector.load %arg5[%c1_369, %c1_370, %c3_371, %c0_372] : memref<2x7x22x128xf32, #tpu.memory_space<vmem>>, vector<1x1x16x128xf32>
    %462 = vector.shape_cast %461 : vector<1x1x16x128xf32> to vector<16x128xf32>
    %463 = vector.broadcast %460 : f32 to vector<16x128xf32>
    %464 = arith.mulf %463, %462 : vector<16x128xf32>
    %465 = arith.addf %441, %464 : vector<16x128xf32>
    %c78 = arith.constant 78 : index
    %466 = memref.load %arg1[%c78] : memref<98xf32, #tpu.memory_space<smem>>
    %c1_373 = arith.constant 1 : index
    %c1_374 = arith.constant 1 : index
    %c4_375 = arith.constant 4 : index
    %c0_376 = arith.constant 0 : index
    %467 = vector.load %arg5[%c1_373, %c1_374, %c4_375, %c0_376] : memref<2x7x22x128xf32, #tpu.memory_space<vmem>>, vector<1x1x16x128xf32>
    %468 = vector.shape_cast %467 : vector<1x1x16x128xf32> to vector<16x128xf32>
    %469 = vector.broadcast %466 : f32 to vector<16x128xf32>
    %470 = arith.mulf %469, %468 : vector<16x128xf32>
    %471 = arith.addf %447, %470 : vector<16x128xf32>
    %c85 = arith.constant 85 : index
    %472 = memref.load %arg1[%c85] : memref<98xf32, #tpu.memory_space<smem>>
    %c1_377 = arith.constant 1 : index
    %c1_378 = arith.constant 1 : index
    %c5_379 = arith.constant 5 : index
    %c0_380 = arith.constant 0 : index
    %473 = vector.load %arg5[%c1_377, %c1_378, %c5_379, %c0_380] : memref<2x7x22x128xf32, #tpu.memory_space<vmem>>, vector<1x1x16x128xf32>
    %474 = vector.shape_cast %473 : vector<1x1x16x128xf32> to vector<16x128xf32>
    %475 = vector.broadcast %472 : f32 to vector<16x128xf32>
    %476 = arith.mulf %475, %474 : vector<16x128xf32>
    %477 = arith.addf %453, %476 : vector<16x128xf32>
    %c92 = arith.constant 92 : index
    %478 = memref.load %arg1[%c92] : memref<98xf32, #tpu.memory_space<smem>>
    %c1_381 = arith.constant 1 : index
    %c1_382 = arith.constant 1 : index
    %c6_383 = arith.constant 6 : index
    %c0_384 = arith.constant 0 : index
    %479 = vector.load %arg5[%c1_381, %c1_382, %c6_383, %c0_384] : memref<2x7x22x128xf32, #tpu.memory_space<vmem>>, vector<1x1x16x128xf32>
    %480 = vector.shape_cast %479 : vector<1x1x16x128xf32> to vector<16x128xf32>
    %481 = vector.broadcast %478 : f32 to vector<16x128xf32>
    %482 = arith.mulf %481, %480 : vector<16x128xf32>
    %483 = arith.addf %459, %482 : vector<16x128xf32>
    %c51 = arith.constant 51 : index
    %484 = memref.load %arg1[%c51] : memref<98xf32, #tpu.memory_space<smem>>
    %c1_385 = arith.constant 1 : index
    %c2_386 = arith.constant 2 : index
    %c0_387 = arith.constant 0 : index
    %c0_388 = arith.constant 0 : index
    %485 = vector.load %arg5[%c1_385, %c2_386, %c0_387, %c0_388] : memref<2x7x22x128xf32, #tpu.memory_space<vmem>>, vector<1x1x16x128xf32>
    %486 = vector.shape_cast %485 : vector<1x1x16x128xf32> to vector<16x128xf32>
    %487 = vector.broadcast %484 : f32 to vector<16x128xf32>
    %488 = arith.mulf %487, %486 : vector<16x128xf32>
    %489 = arith.addf %465, %488 : vector<16x128xf32>
    %c58 = arith.constant 58 : index
    %490 = memref.load %arg1[%c58] : memref<98xf32, #tpu.memory_space<smem>>
    %c1_389 = arith.constant 1 : index
    %c2_390 = arith.constant 2 : index
    %c1_391 = arith.constant 1 : index
    %c0_392 = arith.constant 0 : index
    %491 = vector.load %arg5[%c1_389, %c2_390, %c1_391, %c0_392] : memref<2x7x22x128xf32, #tpu.memory_space<vmem>>, vector<1x1x16x128xf32>
    %492 = vector.shape_cast %491 : vector<1x1x16x128xf32> to vector<16x128xf32>
    %493 = vector.broadcast %490 : f32 to vector<16x128xf32>
    %494 = arith.mulf %493, %492 : vector<16x128xf32>
    %495 = arith.addf %471, %494 : vector<16x128xf32>
    %c65 = arith.constant 65 : index
    %496 = memref.load %arg1[%c65] : memref<98xf32, #tpu.memory_space<smem>>
    %c1_393 = arith.constant 1 : index
    %c2_394 = arith.constant 2 : index
    %c2_395 = arith.constant 2 : index
    %c0_396 = arith.constant 0 : index
    %497 = vector.load %arg5[%c1_393, %c2_394, %c2_395, %c0_396] : memref<2x7x22x128xf32, #tpu.memory_space<vmem>>, vector<1x1x16x128xf32>
    %498 = vector.shape_cast %497 : vector<1x1x16x128xf32> to vector<16x128xf32>
    %499 = vector.broadcast %496 : f32 to vector<16x128xf32>
    %500 = arith.mulf %499, %498 : vector<16x128xf32>
    %501 = arith.addf %477, %500 : vector<16x128xf32>
    %c72 = arith.constant 72 : index
    %502 = memref.load %arg1[%c72] : memref<98xf32, #tpu.memory_space<smem>>
    %c1_397 = arith.constant 1 : index
    %c2_398 = arith.constant 2 : index
    %c3_399 = arith.constant 3 : index
    %c0_400 = arith.constant 0 : index
    %503 = vector.load %arg5[%c1_397, %c2_398, %c3_399, %c0_400] : memref<2x7x22x128xf32, #tpu.memory_space<vmem>>, vector<1x1x16x128xf32>
    %504 = vector.shape_cast %503 : vector<1x1x16x128xf32> to vector<16x128xf32>
    %505 = vector.broadcast %502 : f32 to vector<16x128xf32>
    %506 = arith.mulf %505, %504 : vector<16x128xf32>
    %507 = arith.addf %483, %506 : vector<16x128xf32>
    %c79 = arith.constant 79 : index
    %508 = memref.load %arg1[%c79] : memref<98xf32, #tpu.memory_space<smem>>
    %c1_401 = arith.constant 1 : index
    %c2_402 = arith.constant 2 : index
    %c4_403 = arith.constant 4 : index
    %c0_404 = arith.constant 0 : index
    %509 = vector.load %arg5[%c1_401, %c2_402, %c4_403, %c0_404] : memref<2x7x22x128xf32, #tpu.memory_space<vmem>>, vector<1x1x16x128xf32>
    %510 = vector.shape_cast %509 : vector<1x1x16x128xf32> to vector<16x128xf32>
    %511 = vector.broadcast %508 : f32 to vector<16x128xf32>
    %512 = arith.mulf %511, %510 : vector<16x128xf32>
    %513 = arith.addf %489, %512 : vector<16x128xf32>
    %c86 = arith.constant 86 : index
    %514 = memref.load %arg1[%c86] : memref<98xf32, #tpu.memory_space<smem>>
    %c1_405 = arith.constant 1 : index
    %c2_406 = arith.constant 2 : index
    %c5_407 = arith.constant 5 : index
    %c0_408 = arith.constant 0 : index
    %515 = vector.load %arg5[%c1_405, %c2_406, %c5_407, %c0_408] : memref<2x7x22x128xf32, #tpu.memory_space<vmem>>, vector<1x1x16x128xf32>
    %516 = vector.shape_cast %515 : vector<1x1x16x128xf32> to vector<16x128xf32>
    %517 = vector.broadcast %514 : f32 to vector<16x128xf32>
    %518 = arith.mulf %517, %516 : vector<16x128xf32>
    %519 = arith.addf %495, %518 : vector<16x128xf32>
    %c93 = arith.constant 93 : index
    %520 = memref.load %arg1[%c93] : memref<98xf32, #tpu.memory_space<smem>>
    %c1_409 = arith.constant 1 : index
    %c2_410 = arith.constant 2 : index
    %c6_411 = arith.constant 6 : index
    %c0_412 = arith.constant 0 : index
    %521 = vector.load %arg5[%c1_409, %c2_410, %c6_411, %c0_412] : memref<2x7x22x128xf32, #tpu.memory_space<vmem>>, vector<1x1x16x128xf32>
    %522 = vector.shape_cast %521 : vector<1x1x16x128xf32> to vector<16x128xf32>
    %523 = vector.broadcast %520 : f32 to vector<16x128xf32>
    %524 = arith.mulf %523, %522 : vector<16x128xf32>
    %525 = arith.addf %501, %524 : vector<16x128xf32>
    %c52 = arith.constant 52 : index
    %526 = memref.load %arg1[%c52] : memref<98xf32, #tpu.memory_space<smem>>
    %c1_413 = arith.constant 1 : index
    %c3_414 = arith.constant 3 : index
    %c0_415 = arith.constant 0 : index
    %c0_416 = arith.constant 0 : index
    %527 = vector.load %arg5[%c1_413, %c3_414, %c0_415, %c0_416] : memref<2x7x22x128xf32, #tpu.memory_space<vmem>>, vector<1x1x16x128xf32>
    %528 = vector.shape_cast %527 : vector<1x1x16x128xf32> to vector<16x128xf32>
    %529 = vector.broadcast %526 : f32 to vector<16x128xf32>
    %530 = arith.mulf %529, %528 : vector<16x128xf32>
    %531 = arith.addf %507, %530 : vector<16x128xf32>
    %c59 = arith.constant 59 : index
    %532 = memref.load %arg1[%c59] : memref<98xf32, #tpu.memory_space<smem>>
    %c1_417 = arith.constant 1 : index
    %c3_418 = arith.constant 3 : index
    %c1_419 = arith.constant 1 : index
    %c0_420 = arith.constant 0 : index
    %533 = vector.load %arg5[%c1_417, %c3_418, %c1_419, %c0_420] : memref<2x7x22x128xf32, #tpu.memory_space<vmem>>, vector<1x1x16x128xf32>
    %534 = vector.shape_cast %533 : vector<1x1x16x128xf32> to vector<16x128xf32>
    %535 = vector.broadcast %532 : f32 to vector<16x128xf32>
    %536 = arith.mulf %535, %534 : vector<16x128xf32>
    %537 = arith.addf %513, %536 : vector<16x128xf32>
    %c66 = arith.constant 66 : index
    %538 = memref.load %arg1[%c66] : memref<98xf32, #tpu.memory_space<smem>>
    %c1_421 = arith.constant 1 : index
    %c3_422 = arith.constant 3 : index
    %c2_423 = arith.constant 2 : index
    %c0_424 = arith.constant 0 : index
    %539 = vector.load %arg5[%c1_421, %c3_422, %c2_423, %c0_424] : memref<2x7x22x128xf32, #tpu.memory_space<vmem>>, vector<1x1x16x128xf32>
    %540 = vector.shape_cast %539 : vector<1x1x16x128xf32> to vector<16x128xf32>
    %541 = vector.broadcast %538 : f32 to vector<16x128xf32>
    %542 = arith.mulf %541, %540 : vector<16x128xf32>
    %543 = arith.addf %519, %542 : vector<16x128xf32>
    %c73 = arith.constant 73 : index
    %544 = memref.load %arg1[%c73] : memref<98xf32, #tpu.memory_space<smem>>
    %c1_425 = arith.constant 1 : index
    %c3_426 = arith.constant 3 : index
    %c3_427 = arith.constant 3 : index
    %c0_428 = arith.constant 0 : index
    %545 = vector.load %arg5[%c1_425, %c3_426, %c3_427, %c0_428] : memref<2x7x22x128xf32, #tpu.memory_space<vmem>>, vector<1x1x16x128xf32>
    %546 = vector.shape_cast %545 : vector<1x1x16x128xf32> to vector<16x128xf32>
    %547 = vector.broadcast %544 : f32 to vector<16x128xf32>
    %548 = arith.mulf %547, %546 : vector<16x128xf32>
    %549 = arith.addf %525, %548 : vector<16x128xf32>
    %c80 = arith.constant 80 : index
    %550 = memref.load %arg1[%c80] : memref<98xf32, #tpu.memory_space<smem>>
    %c1_429 = arith.constant 1 : index
    %c3_430 = arith.constant 3 : index
    %c4_431 = arith.constant 4 : index
    %c0_432 = arith.constant 0 : index
    %551 = vector.load %arg5[%c1_429, %c3_430, %c4_431, %c0_432] : memref<2x7x22x128xf32, #tpu.memory_space<vmem>>, vector<1x1x16x128xf32>
    %552 = vector.shape_cast %551 : vector<1x1x16x128xf32> to vector<16x128xf32>
    %553 = vector.broadcast %550 : f32 to vector<16x128xf32>
    %554 = arith.mulf %553, %552 : vector<16x128xf32>
    %555 = arith.addf %531, %554 : vector<16x128xf32>
    %c87 = arith.constant 87 : index
    %556 = memref.load %arg1[%c87] : memref<98xf32, #tpu.memory_space<smem>>
    %c1_433 = arith.constant 1 : index
    %c3_434 = arith.constant 3 : index
    %c5_435 = arith.constant 5 : index
    %c0_436 = arith.constant 0 : index
    %557 = vector.load %arg5[%c1_433, %c3_434, %c5_435, %c0_436] : memref<2x7x22x128xf32, #tpu.memory_space<vmem>>, vector<1x1x16x128xf32>
    %558 = vector.shape_cast %557 : vector<1x1x16x128xf32> to vector<16x128xf32>
    %559 = vector.broadcast %556 : f32 to vector<16x128xf32>
    %560 = arith.mulf %559, %558 : vector<16x128xf32>
    %561 = arith.addf %537, %560 : vector<16x128xf32>
    %c94 = arith.constant 94 : index
    %562 = memref.load %arg1[%c94] : memref<98xf32, #tpu.memory_space<smem>>
    %c1_437 = arith.constant 1 : index
    %c3_438 = arith.constant 3 : index
    %c6_439 = arith.constant 6 : index
    %c0_440 = arith.constant 0 : index
    %563 = vector.load %arg5[%c1_437, %c3_438, %c6_439, %c0_440] : memref<2x7x22x128xf32, #tpu.memory_space<vmem>>, vector<1x1x16x128xf32>
    %564 = vector.shape_cast %563 : vector<1x1x16x128xf32> to vector<16x128xf32>
    %565 = vector.broadcast %562 : f32 to vector<16x128xf32>
    %566 = arith.mulf %565, %564 : vector<16x128xf32>
    %567 = arith.addf %543, %566 : vector<16x128xf32>
    %c53 = arith.constant 53 : index
    %568 = memref.load %arg1[%c53] : memref<98xf32, #tpu.memory_space<smem>>
    %c1_441 = arith.constant 1 : index
    %c4_442 = arith.constant 4 : index
    %c0_443 = arith.constant 0 : index
    %c0_444 = arith.constant 0 : index
    %569 = vector.load %arg5[%c1_441, %c4_442, %c0_443, %c0_444] : memref<2x7x22x128xf32, #tpu.memory_space<vmem>>, vector<1x1x16x128xf32>
    %570 = vector.shape_cast %569 : vector<1x1x16x128xf32> to vector<16x128xf32>
    %571 = vector.broadcast %568 : f32 to vector<16x128xf32>
    %572 = arith.mulf %571, %570 : vector<16x128xf32>
    %573 = arith.addf %549, %572 : vector<16x128xf32>
    %c60 = arith.constant 60 : index
    %574 = memref.load %arg1[%c60] : memref<98xf32, #tpu.memory_space<smem>>
    %c1_445 = arith.constant 1 : index
    %c4_446 = arith.constant 4 : index
    %c1_447 = arith.constant 1 : index
    %c0_448 = arith.constant 0 : index
    %575 = vector.load %arg5[%c1_445, %c4_446, %c1_447, %c0_448] : memref<2x7x22x128xf32, #tpu.memory_space<vmem>>, vector<1x1x16x128xf32>
    %576 = vector.shape_cast %575 : vector<1x1x16x128xf32> to vector<16x128xf32>
    %577 = vector.broadcast %574 : f32 to vector<16x128xf32>
    %578 = arith.mulf %577, %576 : vector<16x128xf32>
    %579 = arith.addf %555, %578 : vector<16x128xf32>
    %c67 = arith.constant 67 : index
    %580 = memref.load %arg1[%c67] : memref<98xf32, #tpu.memory_space<smem>>
    %c1_449 = arith.constant 1 : index
    %c4_450 = arith.constant 4 : index
    %c2_451 = arith.constant 2 : index
    %c0_452 = arith.constant 0 : index
    %581 = vector.load %arg5[%c1_449, %c4_450, %c2_451, %c0_452] : memref<2x7x22x128xf32, #tpu.memory_space<vmem>>, vector<1x1x16x128xf32>
    %582 = vector.shape_cast %581 : vector<1x1x16x128xf32> to vector<16x128xf32>
    %583 = vector.broadcast %580 : f32 to vector<16x128xf32>
    %584 = arith.mulf %583, %582 : vector<16x128xf32>
    %585 = arith.addf %561, %584 : vector<16x128xf32>
    %c74 = arith.constant 74 : index
    %586 = memref.load %arg1[%c74] : memref<98xf32, #tpu.memory_space<smem>>
    %c1_453 = arith.constant 1 : index
    %c4_454 = arith.constant 4 : index
    %c3_455 = arith.constant 3 : index
    %c0_456 = arith.constant 0 : index
    %587 = vector.load %arg5[%c1_453, %c4_454, %c3_455, %c0_456] : memref<2x7x22x128xf32, #tpu.memory_space<vmem>>, vector<1x1x16x128xf32>
    %588 = vector.shape_cast %587 : vector<1x1x16x128xf32> to vector<16x128xf32>
    %589 = vector.broadcast %586 : f32 to vector<16x128xf32>
    %590 = arith.mulf %589, %588 : vector<16x128xf32>
    %591 = arith.addf %567, %590 : vector<16x128xf32>
    %c81 = arith.constant 81 : index
    %592 = memref.load %arg1[%c81] : memref<98xf32, #tpu.memory_space<smem>>
    %c1_457 = arith.constant 1 : index
    %c4_458 = arith.constant 4 : index
    %c4_459 = arith.constant 4 : index
    %c0_460 = arith.constant 0 : index
    %593 = vector.load %arg5[%c1_457, %c4_458, %c4_459, %c0_460] : memref<2x7x22x128xf32, #tpu.memory_space<vmem>>, vector<1x1x16x128xf32>
    %594 = vector.shape_cast %593 : vector<1x1x16x128xf32> to vector<16x128xf32>
    %595 = vector.broadcast %592 : f32 to vector<16x128xf32>
    %596 = arith.mulf %595, %594 : vector<16x128xf32>
    %597 = arith.addf %573, %596 : vector<16x128xf32>
    %c88 = arith.constant 88 : index
    %598 = memref.load %arg1[%c88] : memref<98xf32, #tpu.memory_space<smem>>
    %c1_461 = arith.constant 1 : index
    %c4_462 = arith.constant 4 : index
    %c5_463 = arith.constant 5 : index
    %c0_464 = arith.constant 0 : index
    %599 = vector.load %arg5[%c1_461, %c4_462, %c5_463, %c0_464] : memref<2x7x22x128xf32, #tpu.memory_space<vmem>>, vector<1x1x16x128xf32>
    %600 = vector.shape_cast %599 : vector<1x1x16x128xf32> to vector<16x128xf32>
    %601 = vector.broadcast %598 : f32 to vector<16x128xf32>
    %602 = arith.mulf %601, %600 : vector<16x128xf32>
    %603 = arith.addf %579, %602 : vector<16x128xf32>
    %c95 = arith.constant 95 : index
    %604 = memref.load %arg1[%c95] : memref<98xf32, #tpu.memory_space<smem>>
    %c1_465 = arith.constant 1 : index
    %c4_466 = arith.constant 4 : index
    %c6_467 = arith.constant 6 : index
    %c0_468 = arith.constant 0 : index
    %605 = vector.load %arg5[%c1_465, %c4_466, %c6_467, %c0_468] : memref<2x7x22x128xf32, #tpu.memory_space<vmem>>, vector<1x1x16x128xf32>
    %606 = vector.shape_cast %605 : vector<1x1x16x128xf32> to vector<16x128xf32>
    %607 = vector.broadcast %604 : f32 to vector<16x128xf32>
    %608 = arith.mulf %607, %606 : vector<16x128xf32>
    %609 = arith.addf %585, %608 : vector<16x128xf32>
    %c54 = arith.constant 54 : index
    %610 = memref.load %arg1[%c54] : memref<98xf32, #tpu.memory_space<smem>>
    %c1_469 = arith.constant 1 : index
    %c5_470 = arith.constant 5 : index
    %c0_471 = arith.constant 0 : index
    %c0_472 = arith.constant 0 : index
    %611 = vector.load %arg5[%c1_469, %c5_470, %c0_471, %c0_472] : memref<2x7x22x128xf32, #tpu.memory_space<vmem>>, vector<1x1x16x128xf32>
    %612 = vector.shape_cast %611 : vector<1x1x16x128xf32> to vector<16x128xf32>
    %613 = vector.broadcast %610 : f32 to vector<16x128xf32>
    %614 = arith.mulf %613, %612 : vector<16x128xf32>
    %615 = arith.addf %591, %614 : vector<16x128xf32>
    %c61 = arith.constant 61 : index
    %616 = memref.load %arg1[%c61] : memref<98xf32, #tpu.memory_space<smem>>
    %c1_473 = arith.constant 1 : index
    %c5_474 = arith.constant 5 : index
    %c1_475 = arith.constant 1 : index
    %c0_476 = arith.constant 0 : index
    %617 = vector.load %arg5[%c1_473, %c5_474, %c1_475, %c0_476] : memref<2x7x22x128xf32, #tpu.memory_space<vmem>>, vector<1x1x16x128xf32>
    %618 = vector.shape_cast %617 : vector<1x1x16x128xf32> to vector<16x128xf32>
    %619 = vector.broadcast %616 : f32 to vector<16x128xf32>
    %620 = arith.mulf %619, %618 : vector<16x128xf32>
    %621 = arith.addf %597, %620 : vector<16x128xf32>
    %c68 = arith.constant 68 : index
    %622 = memref.load %arg1[%c68] : memref<98xf32, #tpu.memory_space<smem>>
    %c1_477 = arith.constant 1 : index
    %c5_478 = arith.constant 5 : index
    %c2_479 = arith.constant 2 : index
    %c0_480 = arith.constant 0 : index
    %623 = vector.load %arg5[%c1_477, %c5_478, %c2_479, %c0_480] : memref<2x7x22x128xf32, #tpu.memory_space<vmem>>, vector<1x1x16x128xf32>
    %624 = vector.shape_cast %623 : vector<1x1x16x128xf32> to vector<16x128xf32>
    %625 = vector.broadcast %622 : f32 to vector<16x128xf32>
    %626 = arith.mulf %625, %624 : vector<16x128xf32>
    %627 = arith.addf %603, %626 : vector<16x128xf32>
    %c75 = arith.constant 75 : index
    %628 = memref.load %arg1[%c75] : memref<98xf32, #tpu.memory_space<smem>>
    %c1_481 = arith.constant 1 : index
    %c5_482 = arith.constant 5 : index
    %c3_483 = arith.constant 3 : index
    %c0_484 = arith.constant 0 : index
    %629 = vector.load %arg5[%c1_481, %c5_482, %c3_483, %c0_484] : memref<2x7x22x128xf32, #tpu.memory_space<vmem>>, vector<1x1x16x128xf32>
    %630 = vector.shape_cast %629 : vector<1x1x16x128xf32> to vector<16x128xf32>
    %631 = vector.broadcast %628 : f32 to vector<16x128xf32>
    %632 = arith.mulf %631, %630 : vector<16x128xf32>
    %633 = arith.addf %609, %632 : vector<16x128xf32>
    %c82 = arith.constant 82 : index
    %634 = memref.load %arg1[%c82] : memref<98xf32, #tpu.memory_space<smem>>
    %c1_485 = arith.constant 1 : index
    %c5_486 = arith.constant 5 : index
    %c4_487 = arith.constant 4 : index
    %c0_488 = arith.constant 0 : index
    %635 = vector.load %arg5[%c1_485, %c5_486, %c4_487, %c0_488] : memref<2x7x22x128xf32, #tpu.memory_space<vmem>>, vector<1x1x16x128xf32>
    %636 = vector.shape_cast %635 : vector<1x1x16x128xf32> to vector<16x128xf32>
    %637 = vector.broadcast %634 : f32 to vector<16x128xf32>
    %638 = arith.mulf %637, %636 : vector<16x128xf32>
    %639 = arith.addf %615, %638 : vector<16x128xf32>
    %c89 = arith.constant 89 : index
    %640 = memref.load %arg1[%c89] : memref<98xf32, #tpu.memory_space<smem>>
    %c1_489 = arith.constant 1 : index
    %c5_490 = arith.constant 5 : index
    %c5_491 = arith.constant 5 : index
    %c0_492 = arith.constant 0 : index
    %641 = vector.load %arg5[%c1_489, %c5_490, %c5_491, %c0_492] : memref<2x7x22x128xf32, #tpu.memory_space<vmem>>, vector<1x1x16x128xf32>
    %642 = vector.shape_cast %641 : vector<1x1x16x128xf32> to vector<16x128xf32>
    %643 = vector.broadcast %640 : f32 to vector<16x128xf32>
    %644 = arith.mulf %643, %642 : vector<16x128xf32>
    %645 = arith.addf %621, %644 : vector<16x128xf32>
    %c96 = arith.constant 96 : index
    %646 = memref.load %arg1[%c96] : memref<98xf32, #tpu.memory_space<smem>>
    %c1_493 = arith.constant 1 : index
    %c5_494 = arith.constant 5 : index
    %c6_495 = arith.constant 6 : index
    %c0_496 = arith.constant 0 : index
    %647 = vector.load %arg5[%c1_493, %c5_494, %c6_495, %c0_496] : memref<2x7x22x128xf32, #tpu.memory_space<vmem>>, vector<1x1x16x128xf32>
    %648 = vector.shape_cast %647 : vector<1x1x16x128xf32> to vector<16x128xf32>
    %649 = vector.broadcast %646 : f32 to vector<16x128xf32>
    %650 = arith.mulf %649, %648 : vector<16x128xf32>
    %651 = arith.addf %627, %650 : vector<16x128xf32>
    %c55 = arith.constant 55 : index
    %652 = memref.load %arg1[%c55] : memref<98xf32, #tpu.memory_space<smem>>
    %c1_497 = arith.constant 1 : index
    %c6_498 = arith.constant 6 : index
    %c0_499 = arith.constant 0 : index
    %c0_500 = arith.constant 0 : index
    %653 = vector.load %arg5[%c1_497, %c6_498, %c0_499, %c0_500] : memref<2x7x22x128xf32, #tpu.memory_space<vmem>>, vector<1x1x16x128xf32>
    %654 = vector.shape_cast %653 : vector<1x1x16x128xf32> to vector<16x128xf32>
    %655 = vector.broadcast %652 : f32 to vector<16x128xf32>
    %656 = arith.mulf %655, %654 : vector<16x128xf32>
    %657 = arith.addf %633, %656 : vector<16x128xf32>
    %c62 = arith.constant 62 : index
    %658 = memref.load %arg1[%c62] : memref<98xf32, #tpu.memory_space<smem>>
    %c1_501 = arith.constant 1 : index
    %c6_502 = arith.constant 6 : index
    %c1_503 = arith.constant 1 : index
    %c0_504 = arith.constant 0 : index
    %659 = vector.load %arg5[%c1_501, %c6_502, %c1_503, %c0_504] : memref<2x7x22x128xf32, #tpu.memory_space<vmem>>, vector<1x1x16x128xf32>
    %660 = vector.shape_cast %659 : vector<1x1x16x128xf32> to vector<16x128xf32>
    %661 = vector.broadcast %658 : f32 to vector<16x128xf32>
    %662 = arith.mulf %661, %660 : vector<16x128xf32>
    %663 = arith.addf %639, %662 : vector<16x128xf32>
    %c69 = arith.constant 69 : index
    %664 = memref.load %arg1[%c69] : memref<98xf32, #tpu.memory_space<smem>>
    %c1_505 = arith.constant 1 : index
    %c6_506 = arith.constant 6 : index
    %c2_507 = arith.constant 2 : index
    %c0_508 = arith.constant 0 : index
    %665 = vector.load %arg5[%c1_505, %c6_506, %c2_507, %c0_508] : memref<2x7x22x128xf32, #tpu.memory_space<vmem>>, vector<1x1x16x128xf32>
    %666 = vector.shape_cast %665 : vector<1x1x16x128xf32> to vector<16x128xf32>
    %667 = vector.broadcast %664 : f32 to vector<16x128xf32>
    %668 = arith.mulf %667, %666 : vector<16x128xf32>
    %669 = arith.addf %645, %668 : vector<16x128xf32>
    %c76 = arith.constant 76 : index
    %670 = memref.load %arg1[%c76] : memref<98xf32, #tpu.memory_space<smem>>
    %c1_509 = arith.constant 1 : index
    %c6_510 = arith.constant 6 : index
    %c3_511 = arith.constant 3 : index
    %c0_512 = arith.constant 0 : index
    %671 = vector.load %arg5[%c1_509, %c6_510, %c3_511, %c0_512] : memref<2x7x22x128xf32, #tpu.memory_space<vmem>>, vector<1x1x16x128xf32>
    %672 = vector.shape_cast %671 : vector<1x1x16x128xf32> to vector<16x128xf32>
    %673 = vector.broadcast %670 : f32 to vector<16x128xf32>
    %674 = arith.mulf %673, %672 : vector<16x128xf32>
    %675 = arith.addf %651, %674 : vector<16x128xf32>
    %c83 = arith.constant 83 : index
    %676 = memref.load %arg1[%c83] : memref<98xf32, #tpu.memory_space<smem>>
    %c1_513 = arith.constant 1 : index
    %c6_514 = arith.constant 6 : index
    %c4_515 = arith.constant 4 : index
    %c0_516 = arith.constant 0 : index
    %677 = vector.load %arg5[%c1_513, %c6_514, %c4_515, %c0_516] : memref<2x7x22x128xf32, #tpu.memory_space<vmem>>, vector<1x1x16x128xf32>
    %678 = vector.shape_cast %677 : vector<1x1x16x128xf32> to vector<16x128xf32>
    %679 = vector.broadcast %676 : f32 to vector<16x128xf32>
    %680 = arith.mulf %679, %678 : vector<16x128xf32>
    %681 = arith.addf %657, %680 : vector<16x128xf32>
    %c90 = arith.constant 90 : index
    %682 = memref.load %arg1[%c90] : memref<98xf32, #tpu.memory_space<smem>>
    %c1_517 = arith.constant 1 : index
    %c6_518 = arith.constant 6 : index
    %c5_519 = arith.constant 5 : index
    %c0_520 = arith.constant 0 : index
    %683 = vector.load %arg5[%c1_517, %c6_518, %c5_519, %c0_520] : memref<2x7x22x128xf32, #tpu.memory_space<vmem>>, vector<1x1x16x128xf32>
    %684 = vector.shape_cast %683 : vector<1x1x16x128xf32> to vector<16x128xf32>
    %685 = vector.broadcast %682 : f32 to vector<16x128xf32>
    %686 = arith.mulf %685, %684 : vector<16x128xf32>
    %687 = arith.addf %663, %686 : vector<16x128xf32>
    %c97 = arith.constant 97 : index
    %688 = memref.load %arg1[%c97] : memref<98xf32, #tpu.memory_space<smem>>
    %c1_521 = arith.constant 1 : index
    %c6_522 = arith.constant 6 : index
    %c6_523 = arith.constant 6 : index
    %c0_524 = arith.constant 0 : index
    %689 = vector.load %arg5[%c1_521, %c6_522, %c6_523, %c0_524] : memref<2x7x22x128xf32, #tpu.memory_space<vmem>>, vector<1x1x16x128xf32>
    %690 = vector.shape_cast %689 : vector<1x1x16x128xf32> to vector<16x128xf32>
    %691 = vector.broadcast %688 : f32 to vector<16x128xf32>
    %692 = arith.mulf %691, %690 : vector<16x128xf32>
    %693 = arith.addf %669, %692 : vector<16x128xf32>
    %694 = arith.addf %687, %693 : vector<16x128xf32>
    %695 = arith.addf %675, %681 : vector<16x128xf32>
    %696 = arith.addf %694, %695 : vector<16x128xf32>
    %697 = arith.negf %696 : vector<16x128xf32>
    %698 = math.exp %697 : vector<16x128xf32>
    %cst_525 = arith.constant 1.000000e+00 : f32
    %699 = vector.broadcast %cst_525 : f32 to vector<16x128xf32>
    %700 = arith.addf %699, %698 : vector<16x128xf32>
    %701 = arith.divf %699, %700 : vector<16x128xf32>
    %c0_526 = arith.constant 0 : index
    %c0_527 = arith.constant 0 : index
    %c0_528 = arith.constant 0 : index
    %702 = vector.load %arg3[%c0_526, %c0_527, %c0_528] : memref<1x16x128xf32, #tpu.memory_space<vmem>>, vector<1x16x128xf32>
    %703 = vector.shape_cast %702 : vector<1x16x128xf32> to vector<16x128xf32>
    %704 = vector.shape_cast %701 : vector<16x128xf32> to vector<1x16x128xf32>
    tpu.vector_store %arg3[%c0_526, %c0_527, %c0_528], %704 {strides = array<i32>} : memref<1x16x128xf32, #tpu.memory_space<vmem>>, vector<1x16x128xf32>,
    return
  }
  func.func @transform_0(%arg0: i32) -> i32 {
    %c0_i32 = arith.constant 0 : i32
    %c0_i32_0 = arith.constant 0 : i32
    return %c0_i32 : i32
  }
  func.func @transform_1(%arg0: i32) -> (i32, i32, i32, i32) {
    %c0_i32 = arith.constant 0 : i32
    %c0_i32_0 = arith.constant 0 : i32
    %c0_i32_1 = arith.constant 0 : i32
    %c0_i32_2 = arith.constant 0 : i32
    return %arg0, %c0_i32, %c0_i32_0, %c0_i32_1 : i32, i32, i32, i32
  }
  func.func @transform_2(%arg0: i32) -> (i32, i32, i32) {
    %c0_i32 = arith.constant 0 : i32
    %c0_i32_0 = arith.constant 0 : i32
    %c0_i32_1 = arith.constant 0 : i32
    return %arg0, %c0_i32, %c0_i32_0 : i32, i32, i32
  }
}

</mosaic_0001>

<bundles_post_ra>
// kernel: tpu_custom_call.1
= control target key start
LH: loop header
LB: loop body
LE: loop exit
PB: predicated region body
PF: predicated region fallthrough
CT: control target
= control target key end

     0   :  { %s2555_s0 = inlined_call_operand.hbm [shape: f32[98], index: 0, kind: input, shape index: {}]   ;;  %s2556_s1 = inlined_call_operand.hbm [shape: f32[1,4,16,128], index: 1, kind: input, shape index: {}]   ;;  %s2557_s2 = inlined_call_operand.hbm [shape: f32[1,16,128], index: 2, kind: output, shape index: {}]  }
   0x1   :  { %2649 = sst [smem:[#allocation57_spill]] %s2557_s2 }
   0x2   :  { %7 = vsyncpa [#allocation7], 0 }
   0x3   :  { %8 = vsyncpa [#allocation5], 0 }
   0x4   :  { %9 = vsyncpa [#allocation6], 0  ;;  %s1469_s11 = scalar_lea.hbm %s2555_s0, 16 }
   0x5   :  { %p1470_p0 = scmp.ne.s32.totalorder %s2555_s0, %s1469_s11  ;;  %p1473_p1 = scmp.lt.u32.totalorder %s1469_s11, %s2555_s0 }
   0x7   :  { %p1475_p2 = pnand %p1473_p1, %p1470_p0 }
   0x9   :  { %1478 = shalt.err (!%p1475_p2)
}
   0xa   :  { %s1529_s16 = smov [#allocation4]   ;;  %s1530_s19 = smov [#allocation8]  }
   0xb   :  { %17 = dma.hbm_to_smem %s2555_s0, 16, %s1529_s16, [#allocation7]  }
   0xc   :  { %s23_s20 = sshll.u32 %s1530_s19, 4  ;;  %s1479_s23 = scalar_lea.hbm %s2556_s1, 1024  ;;  %s24_s20 = int_to_ptr.vmem [resolvable:$true] %s23_s20 }
   0xd   :  { %p1480_p3 = scmp.ne.s32.totalorder %s2556_s1, %s1479_s23  ;;  %p1483_p4 = scmp.lt.u32.totalorder %s1479_s23, %s2556_s1 }
   0xf   :  { %p1485_p5 = pnand %p1483_p4, %p1480_p3 }
  0x11   :  { %1488 = shalt.err (!%p1485_p5)
}
  0x12   :  { %s1489_s28 = scalar_lea.vmem %s24_s20, 1024  ;;  %p1494_p7 = scmp.lt.s32.totalorder %s24_s20, %s24_s20 }
  0x13   :  { %p1490_p6 = scmp.ne.s32.totalorder %s24_s20, %s1489_s28  ;;  %p1495_p8 = scmp.lt.s32.totalorder %s1489_s28, %s1489_s28 }
  0x15   :  { %p1496_p9 = por %p1495_p8, %p1494_p7 }
  0x17   :  { %p1497_p10 = pnand %p1496_p9, %p1490_p6 }
  0x19   :  { %1500 = shalt.err (!%p1497_p10)
}
  0x1a   :  { %s2558_s0 = smov 128   ;;  %s2559_s29 = smov 8  }
  0x1b   :  { %29 = dma.hbm_to_vmem [thread:$0]  %s2556_s1, 1024, %s24_s20, [#allocation5], %s2558_s0, %s2558_s0, %s2559_s29  }
  0x1c   :  { %1523 = dma.done.wait [#allocation7], 16  }
  0x1d   :  { %1524 = vsyncadd [#allocation7], 4294967280 }
  0x1e   :  { %1525 = dma.done.wait [#allocation5], 1024  }
  0x1f   :  { %1526 = vsyncadd [#allocation5], 4294966272 }
  0x20   :  { %36 = sfence }
  0x21   :  { %vm43_vm0 = vcmask 64512   ;;  %vm41_vm1 = vcmask 62467   ;;  %vm46_vm2 = vcmask 62464   ;;  %v1533_v0 = vmov 0.0   ;;  %v56_v1 = vld [vmem:[#allocation8] sm:$0xff]  ;;  %v58_v2 = vld [vmem:[#allocation8 + $0x10] sm:$0xff] }
  0x22   :  { %45 = vst.msk [vmem:[#allocation2 + $0x18] sm:$0xff] %vm43_vm0, %v1533_v0  ;;  %37 = vst [vmem:[#allocation2] sm:$0x7] %v1533_v0  ;;  %vm38_vm3 = vcmask 59392   ;;  %v60_v3 = vld [vmem:[#allocation8 + $0x20] sm:$0xff]  ;;  %v62_v4 = vld [vmem:[#allocation8 + $0x30] sm:$0xff]  ;;  %v64_v5 = vadd.f32 %v58_v2, %v56_v1 }
  0x23   :  { %40 = vst [vmem:[#allocation2 + $0x20] sm:$0x38] %v1533_v0  ;;  %49 = vst [vmem:[#allocation2 + $0x30] sm:$0x7] %v1533_v0  ;;  %v57_v6 = vld [vmem:[#allocation8 + $0x8] sm:$0xff]  ;;  %v59_v7 = vld [vmem:[#allocation8 + $0x18] sm:$0xff]  ;;  %v84_v8 = vmax.f32 %v56_v1, %v60_v3  ;;  %v85_v12 = vmax.f32 %v58_v2, %v62_v4 }
  0x24   :  { %51 = vst [vmem:[#allocation2 + $0x50] sm:$0x38] %v1533_v0  ;;  %54 = vst.msk [vmem:[#allocation2 + $0x48] sm:$0xff] %vm43_vm0, %v1533_v0  ;;  %v61_v9 = vld [vmem:[#allocation8 + $0x28] sm:$0xff]  ;;  %v63_v10 = vld [vmem:[#allocation8 + $0x38] sm:$0xff]  ;;  %v67_v11 = vadd.f32 %v59_v7, %v57_v6  ;;  %v65_v13 = vadd.f32 %v64_v5, %v60_v3  ;;  %s1534_s1 = smov 127  }
  0x25   :  { %42 = vst.msk [vmem:[#allocation2 + $0x28] sm:$0x38] %vm41_vm1, %v1533_v0  ;;  %52 = vst.msk [vmem:[#allocation2 + $0x58] sm:$0x38] %vm41_vm1, %v1533_v0  ;;  %v87_v14 = vmax.f32 %v57_v6, %v61_v9  ;;  %v88_v15 = vmax.f32 %v59_v7, %v63_v10  ;;  %v86_v17 = vmax.f32 %v84_v8, %v85_v12  ;;  %vm74_vm4 = vcmask 1042432   ;;  %s1535_s4 = smov 126  }
  0x26   :  { %47 = vst.msk [vmem:[#allocation2 + $0x28] sm:$0x3f] %vm46_vm2, %v1533_v0  ;;  %55 = vst.msk [vmem:[#allocation2 + $0x58] sm:$0x3f] %vm46_vm2, %v1533_v0  ;;  %v68_v16 = vadd.f32 %v67_v11, %v61_v9  ;;  %v66_v18 = vadd.f32 %v65_v13, %v62_v4  ;;  %s1536_s5 = smov 125   ;;  %s1537_s6 = smov 124  }
  0x27   :  { %39 = vst.msk [vmem:[#allocation2 + $0x8] sm:$0x7] %vm38_vm3, %v1533_v0  ;;  %50 = vst.msk [vmem:[#allocation2 + $0x38] sm:$0x7] %vm38_vm3, %v1533_v0  ;;  %v89_v19 = vmax.f32 %v87_v14, %v88_v15  ;;  %v92_v21 = vrot.slane %v86_v17, 5  ;;  %s1538_s7 = smov 123  }
  0x28   :  { %44 = vst.msk [vmem:[#allocation2 + $0x8] sm:$0xff] %vm43_vm0, %v1533_v0  ;;  %53 = vst.msk [vmem:[#allocation2 + $0x38] sm:$0xff] %vm43_vm0, %v1533_v0  ;;  %v69_v20 = vadd.f32 %v68_v16, %v63_v10  ;;  %v70_v23 = vmul.f32 0.25, %v66_v18  ;;  %s1539_s8 = smov 122   ;;  %vm131_vm5 = vcmask 1039360   ;;  %vm166_vm6 = vcmask 1031168  }
  0x29   :  { %v1589_v22 = vld [vmem:[#allocation2 + $0x18] sm:$0xff]  ;;  %v93_v24 = vrot.slane %v89_v19, 5  ;;  %98 = vst [vmem:[#allocation2 + $0x30] sm:$0xf8] %v92_v21  ;;  %s1713_s9 = sld [smem:[#allocation4]]  ;;  %s1719_s10 = sld [smem:[#allocation4 + $0x1c]] }
  0x2a   :  { %125 = vrot.lane.b32.xlu1 %v1589_v22, %s1534_s1  ;;  %v71_v25 = vmul.f32 0.25, %v69_v20  ;;  %v75_v28 = vrot.slane %v70_v23, 5  ;;  %s1724_s11 = sld [smem:[#allocation4 + $0x15]]  ;;  %s1726_s12 = sld [smem:[#allocation4 + $0x1]]  ;;  %vm201_vm7 = vcmask 1022976   ;;  %vm236_vm8 = vcmask 1014784  }
  0x2b   :  { %v1593_v29 = vsel %vm74_vm4, %v92_v21, %v93_v24  ;;  %100 = vst [vmem:[#allocation2 + $0x50] sm:$0x7] %v93_v24  ;;  %v1657_v48 = vld [vmem:[#allocation2 + $0x48] sm:$0xff]  ;;  %s1728_s13 = sld [smem:[#allocation4 + $0x7]]  ;;  %s1730_s14 = sld [smem:[#allocation4 + $0xe]]  ;;  %vm271_vm9 = vcmask 1006592  }
  0x2c   :  { %v76_v30 = vrot.slane %v71_v25, 5  ;;  %322 = vst [vmem:[#allocation3 + $0xb0] sm:$0xff] %v1593_v29  ;;  %81 = vst [vmem:[#allocation2] sm:$0xf8] %v75_v28  ;;  %s1733_s15 = sld [smem:[#allocation4 + $0x23]]  ;;  %s1735_s16 = sld [smem:[#allocation4 + $0x2a]] }
  0x2d   :  { %v112_v26 = vld [vmem:[#allocation2 + $0x28] sm:$0x3f]  ;;  %v329_v49 = vld [vmem:[#allocation2 + $0x58] sm:$0x3f]  ;;  %s1739_s17 = sld [smem:[#allocation4 + $0x2]]  ;;  %s1741_s18 = sld [smem:[#allocation4 + $0x8]] }
  0x2e   :  { %129 = vrot.lane.b32.xlu1 %v112_v26, %s1534_s1  ;;  %83 = vst [vmem:[#allocation2 + $0x20] sm:$0x7] %v76_v30  ;;  %v1598_v31 = vsel %vm74_vm4, %v75_v28, %v76_v30  ;;  %v147_v37 = vld [vmem:[#allocation2 + $0x28] sm:$0x3f]  ;;  %v363_v51 = vld [vmem:[#allocation2 + $0x58] sm:$0x3f] }
  0x2f   :  { %v108_v27 = vld [vmem:[#allocation2 + $0x8] sm:$0xff]  ;;  %105 = vst [vmem:[#allocation3 + $0x8] sm:$0xff] %v1598_v31  ;;  %v325_v46 = vld [vmem:[#allocation2 + $0x38] sm:$0xff]  ;;  %v531_v16 = vstv %s1713_s9  ;;  %s1750_s19 = sld [smem:[#allocation4 + $0xf]]  ;;  %s1752_s20 = sld [smem:[#allocation4 + $0x16]]  ;;  %v563_v17 = vstv %s1719_s10  ;;  %vm306_vm10 = vcmask 998400  }
  0x30   :  { %121 = vrot.lane.b32.xlu0 %v108_v27, %s1534_s1  ;;  %v1601_v32 = vld [vmem:[#allocation2 + $0x30] sm:$0xff]  ;;  %v182_v39 = vld [vmem:[#allocation2 + $0x28] sm:$0x3f]  ;;  %v397_v53 = vld [vmem:[#allocation2 + $0x58] sm:$0x3f]  ;;  %s1758_s21 = sld [smem:[#allocation4 + $0x1d]]  ;;  %v555_v21 = vstv %s1724_s11 }
  0x31   :  { %321 = vst [vmem:[#allocation3 + $0xa8] sm:$0xff] %v1601_v32  ;;  %v217_v41 = vld [vmem:[#allocation2 + $0x28] sm:$0x3f]  ;;  %v431_v55 = vld [vmem:[#allocation2 + $0x58] sm:$0x3f]  ;;  %s1760_s22 = sld [smem:[#allocation4 + $0x24]]  ;;  %v539_v24 = vstv %s1728_s13  ;;  %v547_v26 = vstv %s1730_s14 }
  0x32   :  { %156 = vrot.lane.b32.xlu1 %v108_v27, %s1535_s4  ;;  %v319_v33 = vld [vmem:[#allocation2 + $0x50] sm:$0x3f]  ;;  %v252_v43 = vld [vmem:[#allocation2 + $0x28] sm:$0x3f]  ;;  %v465_v62 = vld [vmem:[#allocation2 + $0x58] sm:$0x3f] }
  0x33   :  { %323 = vst [vmem:[#allocation3 + $0xb8] sm:$0x3f] %v319_v33  ;;  %v1605_v34 = vld [vmem:[#allocation2] sm:$0xff]  ;;  %v287_v45 = vld [vmem:[#allocation2 + $0x28] sm:$0x3f]  ;;  %2650 = sst [smem:[#allocation13_spill]] %s1739_s17 }
  0x34   :  { %119 = vrot.lane.b32.xlu0 %v1605_v34, %s1534_s1  ;;  %104 = vst [vmem:[#allocation3] sm:$0xff] %v1605_v34  ;;  %v328_v50 = vld [vmem:[#allocation2 + $0x50] sm:$0x3f]  ;;  %v499_v10 = vld [vmem:[#allocation2 + $0x58] sm:$0x3f]  ;;  %s1762_s23 = sld [smem:[#allocation4 + $0x2b]] }
  0x35   :  { %v103_v35 = vld [vmem:[#allocation2 + $0x20] sm:$0x3f]  ;;  %v362_v52 = vld [vmem:[#allocation2 + $0x50] sm:$0x3f]  ;;  %s1768_s24 = sld [smem:[#allocation4 + $0x10]]  ;;  %s1774_s25 = sld [smem:[#allocation4 + $0x3]] }
  0x36   :  { %160 = vrot.lane.b32.xlu1 %v1589_v22, %s1535_s4  ;;  %106 = vst [vmem:[#allocation3 + $0x10] sm:$0x3f] %v103_v35  ;;  %v111_v36 = vld [vmem:[#allocation2 + $0x20] sm:$0x3f]  ;;  %v396_v54 = vld [vmem:[#allocation2 + $0x50] sm:$0x3f]  ;;  %v579_v35 = vstv %s1735_s16 }
  0x37   :  { %v146_v38 = vld [vmem:[#allocation2 + $0x20] sm:$0x3f]  ;;  %v430_v59 = vld [vmem:[#allocation2 + $0x50] sm:$0x3f]  ;;  %2651 = sst [smem:[#allocation14_spill]] %s1760_s22  ;;  %s1785_s27 = sld [smem:[#allocation4 + $0x17]] }
  0x38   :  { %127 = vrot.lane.b32.xlu0 %v111_v36, %s1534_s1  ;;  %v181_v40 = vld [vmem:[#allocation2 + $0x20] sm:$0x3f]  ;;  %v464_v4 = vld [vmem:[#allocation2 + $0x50] sm:$0x3f]  ;;  %s1780_s26 = sld [smem:[#allocation4 + $0x9]]  ;;  %s1787_s28 = sld [smem:[#allocation4 + $0x1e]] }
  0x39   :  { %v216_v42 = vld [vmem:[#allocation2 + $0x20] sm:$0x3f]  ;;  %v498_v19 = vld [vmem:[#allocation2 + $0x50] sm:$0x3f]  ;;  %s1796_s30 = sld [smem:[#allocation4 + $0x25]]  ;;  %s1798_s3 = sld [smem:[#allocation4 + $0x2c]] }
  0x3a   :  { %164 = vrot.lane.b32.xlu1 %v147_v37, %s1535_s4  ;;  %v251_v44 = vld [vmem:[#allocation2 + $0x20] sm:$0x3f]  ;;  %2652 = sst [smem:[#allocation15_spill]] %s1762_s23  ;;  %v587_v37 = vstv %s1726_s12  ;;  %s1829_s9 = sld [smem:[#allocation4 + $0x4]] }
  0x3b   :  { %v286_v47 = vld [vmem:[#allocation2 + $0x20] sm:$0x3f]  ;;  %2653 = sst [smem:[#allocation16_spill]] %s1768_s24  ;;  %s1842_s11 = sld [smem:[#allocation4 + $0x12]] }
  0x3c   :  { %154 = vrot.lane.b32.xlu0 %v1605_v34, %s1535_s4  ;;  %v561_v18 = vld [vmem:[#allocation3 + $0x4] sm:$0xff]  ;;  %2654 = sst [smem:[#allocation17_spill]] %s1774_s25  ;;  %s1840_s10 = sld [smem:[#allocation4 + $0xb]] }
  0x3d   :  { %v538_v23 = vld [vmem:[#allocation3 + $0x9] sm:$0xff]  ;;  %v564_v36 = vmul.f32 %v563_v17, %v561_v18  ;;  %2655 = sst [smem:[#allocation18_spill]] %s1785_s27  ;;  %v699_v18 = vstv %s1774_s25  ;;  %s1850_s13 = sld [smem:[#allocation4 + $0x19]] }
  0x3e   :  { %123 = vrot.lane.b32.xlu1 %v1598_v31, %s1534_s1  ;;  %v546_v25 = vld [vmem:[#allocation3 + $0xa] sm:$0xff]  ;;  %2656 = sst [smem:[#allocation19_spill]] %s1787_s28  ;;  %s1852_s14 = sld [smem:[#allocation4 + $0x20]] }
  0x3f   :  { %v570_v30 = vld [vmem:[#allocation3 + $0xd] sm:$0xff]  ;;  %2657 = sst [smem:[#allocation20_spill]] %s1798_s3  ;;  %s1865_s16 = sld [smem:[#allocation4 + $0x2e]] }
  0x40   :  { %162 = vrot.lane.b32.xlu0 %v146_v38, %s1535_s4  ;;  %v578_v33 = vld [vmem:[#allocation3 + $0xe] sm:$0xff]  ;;  %v643_v38 = vstv %s1739_s17  ;;  %2662 = sst [smem:[#allocation25_spill]] %s1829_s9  ;;  %s1870_s12 = sld [smem:[#allocation4 + $0x5]] }
  0x41   :  { %2664 = sst [smem:[#allocation27_spill]] %s1842_s11  ;;  %s1879_s0 = sld [smem:[#allocation4 + $0x1a]] }
  0x42   :  { %191 = vrot.lane.b32.xlu1 %v108_v27, %s1536_s5  ;;  %2663 = sst [smem:[#allocation26_spill]] %s1840_s10  ;;  %s1883_s29 = sld [smem:[#allocation4 + $0x21]] }
  0x43   :  { %s1885_s2 = sld [smem:[#allocation4 + $0x28]]  ;;  %s1904_s25 = sld [smem:[#allocation4 + $0x14]] }
  0x44   :  { %158 = vrot.lane.b32.xlu0 %v1598_v31, %s1535_s4  ;;  %2665 = sst [smem:[#allocation28_spill]] %s1852_s14  ;;  %s1919_s17 = sld [smem:[#allocation4 + $0x31]] }
  0x45   :  { %2667 = sst [smem:[#allocation30_spill]] %s1865_s16  ;;  %s1924_s11 = sld [smem:[#allocation4 + $0x30]] }
  0x46   :  { %195 = vrot.lane.b32.xlu1 %v1589_v22, %s1536_s5  ;;  %s1938_s14 = sld [smem:[#allocation4 + $0x46]]  ;;  %s1949_s16 = sld [smem:[#allocation4 + $0x5b]] }
  0x47   :  { %2670 = sst [smem:[#allocation33_spill]] %s1879_s0 }
  0x48   :  { %189 = vrot.lane.b32.xlu0 %v1605_v34, %s1536_s5  ;;  %2671 = sst [smem:[#allocation34_spill]] %s1883_s29  ;;  %s1976_s0 = sld [smem:[#allocation4 + $0x5c]] }
  0x49   :  { %2672 = sst [smem:[#allocation35_spill]] %s1885_s2  ;;  %s1966_s2 = sld [smem:[#allocation4 + $0x47]] }
  0x4a   :  { %199 = vrot.lane.b32.xlu1 %v182_v39, %s1536_s5  ;;  %v554_v39 = vld [vmem:[#allocation3 + $0xb] sm:$0xff]  ;;  %2676 = sst [smem:[#allocation39_spill]] %s1904_s25  ;;  %s1974_s29 = sld [smem:[#allocation4 + $0x55]] }
  0x4b   :  { %2680 = sst [smem:[#allocation43_spill]] %s1924_s11  ;;  %s2010_s11 = sld [smem:[#allocation4 + $0x34]] }
  0x4c   :  { %193 = vrot.lane.b32.xlu0 %v1598_v31, %s1536_s5  ;;  %s2066_s25 = sld [smem:[#allocation4 + $0x4a]] }
  0x4e   :  { %226 = vrot.lane.b32.xlu1 %v108_v27, %s1537_s6 }
  0x50   :  { %197 = vrot.lane.b32.xlu0 %v181_v40, %s1536_s5  ;;  %v595_v40 = vstv %s1741_s18  ;;  %2683 = sst [smem:[#allocation46_spill]] %s1974_s29  ;;  %s2096_s29 = sld [smem:[#allocation4 + $0x44]] }
  0x51   :  { %s2121_s18 = sld [smem:[#allocation4 + $0x4b]] }
  0x52   :  { %230 = vrot.lane.b32.xlu1 %v1589_v22, %s1537_s6 }
  0x54   :  { %224 = vrot.lane.b32.xlu0 %v1605_v34, %s1537_s6 }
  0x56   :  { %234 = vrot.lane.b32.xlu1 %v217_v41, %s1537_s6  ;;  %2692 = sst [smem:[#allocation55_spill]] %s2096_s29  ;;  %s2172_s29 = sld [smem:[#allocation4 + $0x59]] }
  0x57   :  { %2693 = sst [smem:[#allocation56_spill]] %s2121_s18 }
  0x58   :  { %228 = vrot.lane.b32.xlu0 %v1598_v31, %s1537_s6 }
  0x5a   :  { %261 = vrot.lane.b32.xlu1 %v108_v27, %s1538_s7 }
  0x5c   :  { %232 = vrot.lane.b32.xlu0 %v216_v42, %s1537_s6  ;;  %2705 = sst [smem:[#allocation15_spill]] %s2172_s29 }
  0x5e   :  { %265 = vrot.lane.b32.xlu1 %v1589_v22, %s1538_s7 }
  0x60   :  { %259 = vrot.lane.b32.xlu0 %v1605_v34, %s1538_s7 }
  0x62   :  { %269 = vrot.lane.b32.xlu1 %v252_v43, %s1538_s7  ;;  %v533_v43 = vmul.f32 %v531_v16, %v1598_v31 }
  0x64   :  { %263 = vrot.lane.b32.xlu0 %v1598_v31, %s1538_s7 }
  0x66   :  { %296 = vrot.lane.b32.xlu1 %v108_v27, %s1539_s8  ;;  %v532_v27 = vmul.f32 %v531_v16, %v1605_v34 }
  0x68   :  { %267 = vrot.lane.b32.xlu0 %v251_v44, %s1538_s7  ;;  %v541_v44 = vmul.f32 %v539_v24, %v538_v23 }
  0x6a   :  { %300 = vrot.lane.b32.xlu1 %v1589_v22, %s1539_s8  ;;  %v553_v22 = vld [vmem:[#allocation3 + $0x3] sm:$0xff] }
  0x6b   :  { %v1782_v42 = vmul.f32 %v555_v21, %v553_v22 }
  0x6c   :  { %294 = vrot.lane.b32.xlu0 %v1605_v34, %s1539_s8  ;;  %v537_v34 = vld [vmem:[#allocation3 + $0x1] sm:$0xff] }
  0x6e   :  { %304 = vrot.lane.b32.xlu1 %v287_v45, %s1539_s8  ;;  %v549_v45 = vmul.f32 %v547_v26, %v546_v25 }
  0x70   :  { %298 = vrot.lane.b32.xlu0 %v1598_v31, %s1539_s8 }
  0x72   :  { %338 = vrot.lane.b32.xlu1 %v325_v46, %s1534_s1 }
  0x74   :  { %302 = vrot.lane.b32.xlu0 %v286_v47, %s1539_s8  ;;  %v569_v47 = vld [vmem:[#allocation3 + $0x5] sm:$0xff] }
  0x76   :  { %342 = vrot.lane.b32.xlu1 %v1657_v48, %s1534_s1 }
  0x78   :  { %336 = vrot.lane.b32.xlu0 %v1601_v32, %s1534_s1 }
  0x7a   :  { %346 = vrot.lane.b32.xlu1 %v329_v49, %s1534_s1 }
  0x7c   :  { %340 = vrot.lane.b32.xlu0 %v1593_v29, %s1534_s1 }
  0x7e   :  { %372 = vrot.lane.b32.xlu1 %v325_v46, %s1535_s4 }
  0x80   :  { %344 = vrot.lane.b32.xlu0 %v328_v50, %s1534_s1  ;;  %s1802_s1 = sld [smem:[#allocation4 + $0xa]] }
  0x82   :  { %376 = vrot.lane.b32.xlu1 %v1657_v48, %s1535_s4 }
  0x84   :  { %370 = vrot.lane.b32.xlu0 %v1601_v32, %s1535_s4 }
  0x86   :  { %380 = vrot.lane.b32.xlu1 %v363_v51, %s1535_s4  ;;  %2658 = sst [smem:[#allocation21_spill]] %s1802_s1 }
  0x88   :  { %374 = vrot.lane.b32.xlu0 %v1593_v29, %s1535_s4 }
  0x8a   :  { %406 = vrot.lane.b32.xlu1 %v325_v46, %s1536_s5 }
  0x8c   :  { %378 = vrot.lane.b32.xlu0 %v362_v52, %s1535_s4  ;;  %v581_v52 = vmul.f32 %v579_v35, %v578_v33  ;;  %s1804_s4 = sld [smem:[#allocation4 + $0x11]] }
  0x8e   :  { %410 = vrot.lane.b32.xlu1 %v1657_v48, %s1536_s5 }
  0x90   :  { %404 = vrot.lane.b32.xlu0 %v1601_v32, %s1536_s5 }
  0x92   :  { %414 = vrot.lane.b32.xlu1 %v397_v53, %s1536_s5 }
  0x94   :  { %408 = vrot.lane.b32.xlu0 %v1593_v29, %s1536_s5 }
  0x96   :  { %440 = vrot.lane.b32.xlu1 %v325_v46, %s1537_s6 }
  0x98   :  { %412 = vrot.lane.b32.xlu0 %v396_v54, %s1536_s5  ;;  %v1792_v54 = vmul.f32 %v555_v21, %v554_v39  ;;  %s1810_s5 = sld [smem:[#allocation4 + $0x18]]  ;;  %v651_v21 = vstv %s1780_s26  ;;  %s1877_s26 = sld [smem:[#allocation4 + $0x13]] }
  0x9a   :  { %444 = vrot.lane.b32.xlu1 %v1657_v48, %s1537_s6 }
  0x9c   :  { %v126_v56 = vpop.permute.xlu1 %125  ;;  %438 = vrot.lane.b32.xlu0 %v1601_v32, %s1537_s6 }
  0x9e   :  { %448 = vrot.lane.b32.xlu1 %v431_v55, %s1537_s6  ;;  %v540_v55 = vmul.f32 %v539_v24, %v537_v34  ;;  %2659 = sst [smem:[#allocation22_spill]] %s1810_s5  ;;  %v683_v34 = vstv %s1796_s30  ;;  %s1947_s30 = sld [smem:[#allocation4 + $0x54]] }
  0x9f   :  { %2669 = sst [smem:[#allocation32_spill]] %s1877_s26  ;;  %s1958_s26 = sld [smem:[#allocation4 + $0x40]] }
  0xa0   :  { %v130_v57 = vpop.permute.xlu1 %129  ;;  %442 = vrot.lane.b32.xlu0 %v1593_v29, %s1537_s6 }
  0xa2   :  { %v122_v58 = vpop.permute.xlu0 %121  ;;  %474 = vrot.lane.b32.xlu1 %v325_v46, %s1538_s7 }
  0xa4   :  { %v157_v60 = vpop.permute.xlu1 %156  ;;  %446 = vrot.lane.b32.xlu0 %v430_v59, %s1537_s6  ;;  %s1812_s6 = sld [smem:[#allocation4 + $0x1f]] }
  0xa6   :  { %478 = vrot.lane.b32.xlu1 %v1657_v48, %s1538_s7  ;;  %v120_v61 = vpop.permute.xlu0 %119 }
  0xa7   :  { %v1699_v63 = vsel %vm131_vm5, %v120_v61, %v122_v58  ;;  %v603_v58 = vstv %s1750_s19 }
  0xa8   :  { %v161_v0 = vpop.permute.xlu1 %160  ;;  %139 = vst [vmem:[#allocation3 + $0x18] sm:$0xff] %v1699_v63  ;;  %472 = vrot.lane.b32.xlu0 %v1601_v32, %s1538_s7  ;;  %v588_v16 = vmul.f32 %v587_v37, %v1699_v63 }
  0xaa   :  { %482 = vrot.lane.b32.xlu1 %v465_v62, %s1538_s7  ;;  %v128_v1 = vpop.permute.xlu0 %127  ;;  %v611_v62 = vstv %s1752_s20  ;;  %2660 = sst [smem:[#allocation23_spill]] %s1812_s6 }
  0xab   :  { %v134_v2 = vsel %vm131_vm5, %v128_v1, %v130_v57  ;;  %v627_v1 = vstv %s1760_s22  ;;  %s2088_s22 = sld [smem:[#allocation4 + $0x36]] }
  0xac   :  { %v165_v3 = vpop.permute.xlu1 %164  ;;  %141 = vst [vmem:[#allocation3 + $0x28] sm:$0x3f] %v134_v2  ;;  %476 = vrot.lane.b32.xlu0 %v1593_v29, %s1538_s7  ;;  %v635_v2 = vstv %s1762_s23  ;;  %s2086_s23 = sld [smem:[#allocation4 + $0x5f]] }
  0xae   :  { %508 = vrot.lane.b32.xlu1 %v325_v46, %s1539_s8  ;;  %v155_v5 = vpop.permute.xlu0 %154  ;;  %v545_v46 = vld [vmem:[#allocation3 + $0x2] sm:$0xff] }
  0xaf   :  { %v1710_v6 = vsel %vm166_vm6, %v155_v5, %v157_v60  ;;  %v548_v59 = vmul.f32 %v547_v26, %v545_v46  ;;  %v667_v26 = vstv %s1785_s27  ;;  %s1932_s27 = sld [smem:[#allocation4 + $0x32]] }
  0xb0   :  { %v124_v7 = vpop.permute.xlu1 %123  ;;  %174 = vst [vmem:[#allocation3 + $0x30] sm:$0xff] %v1710_v6  ;;  %480 = vrot.lane.b32.xlu0 %v464_v4, %s1538_s7  ;;  %s1821_s7 = sld [smem:[#allocation4 + $0x26]] }
  0xb1   :  { %v1716_v8 = vsel %vm131_vm5, %v124_v7, %v126_v56  ;;  %v566_v56 = vadd.f32 %v564_v36, %v532_v27  ;;  %v1818_v7 = vadd.f32 %v581_v52, %v549_v45  ;;  %v590_v36 = vadd.f32 %v588_v16, %v1782_v42  ;;  %2690 = sst [smem:[#allocation53_spill]] %s2088_s22 }
  0xb2   :  { %140 = vst [vmem:[#allocation3 + $0x20] sm:$0xff] %v1716_v8  ;;  %512 = vrot.lane.b32.xlu1 %v1657_v48, %s1539_s8  ;;  %v163_v9 = vpop.permute.xlu0 %162  ;;  %v577_v48 = vld [vmem:[#allocation3 + $0x6] sm:$0xff]  ;;  %v715_v45 = vstv %s1804_s4  ;;  %s1894_s4 = sld [smem:[#allocation4 + $0x2f]] }
  0xb3   :  { %v169_v11 = vsel %vm166_vm6, %v163_v9, %v165_v3  ;;  %v580_v61 = vmul.f32 %v579_v35, %v577_v48  ;;  %v731_v48 = vstv %s1812_s6  ;;  %s1896_s6 = sld [smem:[#allocation4 + $0x6]]  ;;  %2689 = sst [smem:[#allocation52_spill]] %s2086_s23 }
  0xb4   :  { %v192_v12 = vpop.permute.xlu1 %191  ;;  %176 = vst [vmem:[#allocation3 + $0x40] sm:$0x3f] %v169_v11  ;;  %506 = vrot.lane.b32.xlu0 %v1601_v32, %s1539_s8  ;;  %v571_v32 = vstv %s1733_s15  ;;  %v659_v11 = vstv %s1768_s24  ;;  %s1863_s15 = sld [smem:[#allocation4 + $0x27]]  ;;  %s1940_s24 = sld [smem:[#allocation4 + $0x4d]] }
  0xb5   :  { %v573_v51 = vmul.f32 %v571_v32, %v570_v30  ;;  %v572_v60 = vmul.f32 %v571_v32, %v569_v47  ;;  %v675_v30 = vstv %s1787_s28  ;;  %v723_v47 = vstv %s1810_s5  ;;  %s1917_s28 = sld [smem:[#allocation4 + $0x29]]  ;;  %s1930_s5 = sld [smem:[#allocation4 + $0x3f]] }
  0xb6   :  { %516 = vrot.lane.b32.xlu1 %v499_v10, %s1539_s8  ;;  %v159_v13 = vpop.permute.xlu0 %158  ;;  %2661 = sst [smem:[#allocation24_spill]] %s1821_s7  ;;  %s1902_s7 = sld [smem:[#allocation4 + $0xd]] }
  0xb7   :  { %v1745_v14 = vsel %vm166_vm6, %v159_v13, %v161_v0  ;;  %v619_v0 = vstv %s1758_s21  ;;  %v1816_v5 = vadd.f32 %v573_v51, %v541_v44  ;;  %s1872_s21 = sld [smem:[#allocation4 + $0xc]]  ;;  %v707_v44 = vstv %s1802_s1  ;;  %s1911_s1 = sld [smem:[#allocation4 + $0x22]] }
  0xb8   :  { %v1747_v15 = vpop.permute.xlu1 %195  ;;  %175 = vst [vmem:[#allocation3 + $0x38] sm:$0xff] %v1745_v14  ;;  %510 = vrot.lane.b32.xlu0 %v1593_v29, %s1539_s8  ;;  %v562_v29 = vld [vmem:[#allocation3 + $0xc] sm:$0xff]  ;;  %2673 = sst [smem:[#allocation36_spill]] %s1894_s4  ;;  %s1968_s4 = sld [smem:[#allocation4 + $0x4e]] }
  0xb9   :  { %v593_v41 = vld [vmem:[#allocation3 + $0x19] sm:$0xff]  ;;  %v565_v50 = vmul.f32 %v563_v17, %v562_v29  ;;  %v618_v23 = vld [vmem:[#allocation3 + $0x24] sm:$0xff]  ;;  %2674 = sst [smem:[#allocation37_spill]] %s1896_s6  ;;  %s1983_s6 = sld [smem:[#allocation4 + $0x3a]] }
  0xba   :  { %v190_v20 = vpop.permute.xlu0 %189  ;;  %v596_v57 = vmul.f32 %v595_v40, %v593_v41  ;;  %v617_v9 = vld [vmem:[#allocation3 + $0x1c] sm:$0xff]  ;;  %2666 = sst [smem:[#allocation29_spill]] %s1863_s15  ;;  %v691_v41 = vstv %s1798_s3  ;;  %s1909_s3 = sld [smem:[#allocation4 + $0x1b]] }
  0xbb   :  { %v1790_v53 = vsel %vm201_vm7, %v190_v20, %v192_v12  ;;  %v1814_v4 = vadd.f32 %v565_v50, %v533_v43  ;;  %v625_v10 = vld [vmem:[#allocation3 + $0x1d] sm:$0xff]  ;;  %v1833_v20 = vadd.f32 %v580_v61, %v548_v59  ;;  %v620_v24 = vmul.f32 %v619_v0, %v617_v9  ;;  %2679 = sst [smem:[#allocation42_spill]] %s1917_s28  ;;  %s1956_s15 = sld [smem:[#allocation4 + $0x39]] }
  0xbc   :  { %v1770_v28 = vpop.permute.xlu1 %199  ;;  %514 = vrot.lane.b32.xlu0 %v498_v19, %s1539_s8  ;;  %209 = vst [vmem:[#allocation3 + $0x48] sm:$0xff] %v1790_v53  ;;  %v598_v17 = vadd.f32 %v596_v57, %v566_v56  ;;  %s1827_s8 = sld [smem:[#allocation4 + $0x2d]]  ;;  %v1831_v19 = vadd.f32 %v572_v60, %v540_v55  ;;  %v628_v25 = vmul.f32 %v627_v1, %v625_v10  ;;  %2675 = sst [smem:[#allocation38_spill]] %s1902_s7  ;;  %v763_v9 = vstv %s1840_s10 }
  0xbd   :  { %2668 = sst [smem:[#allocation31_spill]] %s1872_s21  ;;  %v622_v42 = vadd.f32 %v620_v24, %v590_v36  ;;  %s1926_s10 = sld [smem:[#allocation4 + $0x38]] }
  0xbe   :  { %v194_v49 = vpop.permute.xlu0 %193  ;;  %v630_v39 = vadd.f32 %v628_v25, %v598_v17  ;;  %2678 = sst [smem:[#allocation41_spill]] %s1911_s1  ;;  %v779_v25 = vstv %s1850_s13  ;;  %s1981_s7 = sld [smem:[#allocation4 + $0x33]] }
  0xbf   :  { %v657_v12 = vld [vmem:[#allocation3 + $0x32] sm:$0xff]  ;;  %v1838_v63 = vsel %vm201_vm7, %v194_v49, %v1747_v15  ;;  %v589_v15 = vmul.f32 %v587_v37, %v1716_v8  ;;  %2681 = sst [smem:[#allocation44_spill]] %s1932_s27  ;;  %s1995_s28 = sld [smem:[#allocation4 + $0x48]] }
  0xc0   :  { %v227_v31 = vpop.permute.xlu1 %226  ;;  %v649_v22 = vld [vmem:[#allocation3 + $0x31] sm:$0xff]  ;;  %v660_v27 = vmul.f32 %v659_v11, %v657_v12  ;;  %210 = vst [vmem:[#allocation3 + $0x50] sm:$0xff] %v1838_v63  ;;  %v650_v8 = vld [vmem:[#allocation3 + $0x39] sm:$0xff]  ;;  %2677 = sst [smem:[#allocation40_spill]] %s1909_s3  ;;  %s2008_s1 = sld [smem:[#allocation4 + $0x5d]] }
  0xc1   :  { %v652_v37 = vmul.f32 %v651_v21, %v649_v22  ;;  %v689_v43 = vld [vmem:[#allocation3 + $0x36] sm:$0xff]  ;;  %v591_v50 = vadd.f32 %v589_v15, %v1792_v54  ;;  %v653_v51 = vmul.f32 %v651_v21, %v650_v8  ;;  %2682 = sst [smem:[#allocation45_spill]] %s1968_s4  ;;  %s2021_s13 = sld [smem:[#allocation4 + $0x42]] }
  0xc2   :  { %v198_v3 = vpop.permute.xlu0 %197  ;;  %v662_v46 = vadd.f32 %v660_v27, %v630_v39  ;;  %v681_v52 = vld [vmem:[#allocation3 + $0x35] sm:$0xff]  ;;  %v692_v59 = vmul.f32 %v691_v41, %v689_v43  ;;  %v747_v54 = vstv %s1827_s8  ;;  %v682_v12 = vld [vmem:[#allocation3 + $0x3d] sm:$0xff]  ;;  %v811_v43 = vstv %s1870_s12  ;;  %s2000_s8 = sld [smem:[#allocation4 + $0x4f]]  ;;  %s2054_s27 = sld [smem:[#allocation4 + $0x3c]] }
  0xc3   :  { %v204_v32 = vsel %vm201_vm7, %v198_v3, %v1770_v28  ;;  %v621_v28 = vmul.f32 %v619_v0, %v618_v23  ;;  %v654_v57 = vadd.f32 %v652_v37, %v622_v42  ;;  %v2608_v3 = vstv %s1829_s9  ;;  %v954_v39 = vld [vmem:[#allocation3 + $0xb4] sm:$0xff]  ;;  %s2040_s12 = sld [smem:[#allocation4 + $0x57]]  ;;  %s2064_s3 = sld [smem:[#allocation4 + $0x43]] }
  0xc4   :  { %v231_v13 = vpop.permute.xlu1 %230  ;;  %211 = vst [vmem:[#allocation3 + $0x58] sm:$0x3f] %v204_v32  ;;  %v694_v16 = vadd.f32 %v692_v59, %v662_v46  ;;  %v685_v37 = vmul.f32 %v683_v34, %v682_v12  ;;  %s2077_s21 = sld [smem:[#allocation4 + $0x51]]  ;;  %s2079_s9 = sld [smem:[#allocation4 + $0x58]] }
  0xc5   :  { %v623_v60 = vadd.f32 %v621_v28, %v591_v50  ;;  %s2094_s4 = sld [smem:[#allocation4 + $0x3d]]  ;;  %s2716_s20 = sld [smem:[#allocation31_spill]] }
  0xc6   :  { %v225_v29 = vpop.permute.xlu0 %224  ;;  %s2718_s19 = sld [smem:[#allocation29_spill]] }
  0xc7   :  { %v1861_v33 = vsel %vm236_vm8, %v225_v29, %v227_v31  ;;  %v713_v61 = vld [vmem:[#allocation3 + $0x4a] sm:$0xff]  ;;  %v655_v23 = vadd.f32 %v653_v51, %v623_v60 }
  0xc8   :  { %v235_v35 = vpop.permute.xlu1 %234  ;;  %244 = vst [vmem:[#allocation3 + $0x60] sm:$0xff] %v1861_v33  ;;  %v721_v0 = vld [vmem:[#allocation3 + $0x4b] sm:$0xff]  ;;  %v716_v17 = vmul.f32 %v715_v45, %v713_v61  ;;  %2685 = sst [smem:[#allocation48_spill]] %s2054_s27 }
  0xc9   :  { %v724_v21 = vmul.f32 %v723_v47, %v721_v0  ;;  %v930_v60 = vld [vmem:[#allocation3 + $0xb1] sm:$0xff]  ;;  %2686 = sst [smem:[#allocation49_spill]] %s2064_s3  ;;  %v705_v31 = vld [vmem:[#allocation3 + $0x49] sm:$0xff]  ;;  %s2708_s27 = sld [smem:[#allocation24_spill]] }
  0xca   :  { %v229_v49 = vpop.permute.xlu0 %228  ;;  %2687 = sst [smem:[#allocation50_spill]] %s2077_s21  ;;  %s2709_s3 = sld [smem:[#allocation27_spill]] }
  0xcb   :  { %v1890_v55 = vsel %vm236_vm8, %v229_v49, %v231_v13  ;;  %v684_v13 = vmul.f32 %v683_v34, %v681_v52  ;;  %v714_v24 = vld [vmem:[#allocation3 + $0x52] sm:$0xff]  ;;  %v726_v36 = vadd.f32 %v724_v21, %v694_v16  ;;  %v756_v49 = vmul.f32 %v2608_v3, %v1861_v33  ;;  %2688 = sst [smem:[#allocation51_spill]] %s2079_s9  ;;  %s2140_s9 = sld [smem:[#allocation4 + $0x52]] }
  0xcc   :  { %v1892_v56 = vpop.permute.xlu1 %261  ;;  %245 = vst [vmem:[#allocation3 + $0x68] sm:$0xff] %v1890_v55  ;;  %v717_v28 = vmul.f32 %v715_v45, %v714_v24  ;;  %v687_v45 = vadd.f32 %v685_v37, %v655_v23  ;;  %v746_v0 = vld [vmem:[#allocation3 + $0x56] sm:$0xff]  ;;  %v921_v37 = vld [vmem:[#allocation3 + $0xa8] sm:$0xff]  ;;  %2691 = sst [smem:[#allocation54_spill]] %s2094_s4  ;;  %s2270_s4 = sld [smem:[#allocation4 + $0x37]] }
  0xcd   :  { %v686_v32 = vadd.f32 %v684_v13, %v654_v57  ;;  %v1962_v12 = vadd.f32 %v756_v49, %v726_v36  ;;  %v929_v49 = vld [vmem:[#allocation3 + $0xa9] sm:$0xff]  ;;  %v931_v36 = vstv %s1926_s10  ;;  %s2002_s10 = sld [smem:[#allocation4 + $0x56]]  ;;  %v706_v10 = vld [vmem:[#allocation3 + $0x51] sm:$0xff]  ;;  %s2722_s21 = sld [smem:[#allocation30_spill]] }
  0xce   :  { %v233_v22 = vpop.permute.xlu0 %232  ;;  %v945_v23 = vld [vmem:[#allocation3 + $0xab] sm:$0xff]  ;;  %v2016_v57 = vmul.f32 %v931_v36, %v929_v49 }
  0xcf   :  { %v239_v29 = vsel %vm236_vm8, %v233_v22, %v235_v35  ;;  %v745_v35 = vld [vmem:[#allocation3 + $0x4e] sm:$0xff]  ;;  %v718_v46 = vadd.f32 %v716_v17, %v686_v32  ;;  %v719_v17 = vadd.f32 %v717_v28, %v687_v45  ;;  %v749_v28 = vmul.f32 %v747_v54, %v746_v0 }
  0xd0   :  { %v266_v15 = vpop.permute.xlu1 %265  ;;  %246 = vst [vmem:[#allocation3 + $0x70] sm:$0x3f] %v239_v29  ;;  %v748_v33 = vmul.f32 %v747_v54, %v745_v35  ;;  %v923_v35 = vstv %s1919_s17  ;;  %v937_v32 = vld [vmem:[#allocation3 + $0xaa] sm:$0xff]  ;;  %s1993_s17 = sld [smem:[#allocation4 + $0x41]] }
  0xd1   :  { %v751_v22 = vadd.f32 %v749_v28, %v719_v17  ;;  %v922_v13 = vld [vmem:[#allocation3 + $0xb0] sm:$0xff]  ;;  %v2014_v59 = vmul.f32 %v923_v35, %v921_v37  ;;  %v963_v28 = vstv %s1947_s30  ;;  %v971_v37 = vstv %s1949_s16  ;;  %s2042_s30 = sld [smem:[#allocation4 + $0x5e]]  ;;  %s2052_s16 = sld [smem:[#allocation4 + $0x35]] }
  0xd2   :  { %v260_v50 = vpop.permute.xlu0 %259  ;;  %v750_v24 = vadd.f32 %v748_v33, %v718_v46  ;;  %v938_v17 = vld [vmem:[#allocation3 + $0xb2] sm:$0xff]  ;;  %2699 = sst [smem:[#allocation14_spill]] %s2140_s9 }
  0xd3   :  { %v777_v52 = vld [vmem:[#allocation3 + $0x63] sm:$0xff] }
  0xd4   :  { %v1954_v61 = vpop.permute.xlu1 %269  ;;  %v780_v21 = vmul.f32 %v779_v25, %v777_v52  ;;  %v272_v52 = vsel %vm271_vm9, %v260_v50, %v1892_v56  ;;  %v939_v56 = vstv %s1930_s5  ;;  %v953_v50 = vld [vmem:[#allocation3 + $0xac] sm:$0xff]  ;;  %s2019_s5 = sld [smem:[#allocation4 + $0x3b]] }
  0xd5   :  { %279 = vst [vmem:[#allocation3 + $0x78] sm:$0xff] %v272_v52  ;;  %v2034_v42 = vmul.f32 %v939_v56, %v937_v32  ;;  %v2056_v32 = vmul.f32 %v939_v56, %v938_v17 }
  0xd6   :  { %v264_v29 = vpop.permute.xlu0 %263  ;;  %v782_v54 = vadd.f32 %v780_v21, %v750_v24  ;;  %v947_v21 = vstv %s1938_s14  ;;  %v955_v24 = vstv %s1940_s24  ;;  %s2028_s24 = sld [smem:[#allocation4 + $0x49]]  ;;  %s2030_s14 = sld [smem:[#allocation4 + $0x50]] }
  0xd7   :  { %v778_v45 = vld [vmem:[#allocation3 + $0x6b] sm:$0xff]  ;;  %v273_v46 = vsel %vm271_vm9, %v264_v29, %v266_v15  ;;  %v812_v29 = vmul.f32 %v811_v43, %v272_v52  ;;  %v946_v52 = vld [vmem:[#allocation3 + $0xb3] sm:$0xff]  ;;  %v2036_v3 = vmul.f32 %v947_v21, %v945_v23  ;;  %2684 = sst [smem:[#allocation47_spill]] %s2042_s30  ;;  %s2711_s30 = sld [smem:[#allocation25_spill]] }
  0xd8   :  { %v1990_v33 = vpop.permute.xlu1 %296  ;;  %280 = vst [vmem:[#allocation3 + $0x80] sm:$0xff] %v273_v46  ;;  %v961_v15 = vld [vmem:[#allocation3 + $0xad] sm:$0xff]  ;;  %v781_v16 = vmul.f32 %v779_v25, %v778_v45  ;;  %v813_v34 = vmul.f32 %v811_v43, %v273_v46  ;;  %v962_v43 = vld [vmem:[#allocation3 + $0xb5] sm:$0xff]  ;;  %v2046_v46 = vmul.f32 %v923_v35, %v922_v13 }
  0xd9   :  { %v969_v25 = vld [vmem:[#allocation3 + $0xae] sm:$0xff]  ;;  %v2032_v49 = vadd.f32 %v812_v29, %v782_v54  ;;  %v2048_v54 = vmul.f32 %v931_v36, %v930_v60  ;;  %v2072_v35 = vmul.f32 %v963_v28, %v962_v43  ;;  %v1203_v29 = vstv %s2088_s22  ;;  %s2287_s22 = sld [smem:[#allocation4 + $0x4c]] }
  0xda   :  { %v268_v0 = vpop.permute.xlu0 %267  ;;  %v783_v45 = vadd.f32 %v781_v16, %v751_v22  ;;  %v2038_v16 = vmul.f32 %v955_v24, %v953_v50  ;;  %v970_v22 = vld [vmem:[#allocation3 + $0xb6] sm:$0xff]  ;;  %v2062_v13 = vmul.f32 %v971_v37, %v969_v25  ;;  %v633_v25 = vld [vmem:[#allocation3 + $0x1e] sm:$0xff] }
  0xdb   :  { %v274_v8 = vsel %vm271_vm9, %v268_v0, %v1954_v61  ;;  %v2058_v0 = vmul.f32 %v947_v21, %v946_v52  ;;  %v2074_v56 = vmul.f32 %v971_v37, %v970_v22  ;;  %v594_v21 = vld [vmem:[#allocation3 + $0x21] sm:$0xff] }
  0xdc   :  { %v301_v51 = vpop.permute.xlu1 %300  ;;  %281 = vst [vmem:[#allocation3 + $0x88] sm:$0x3f] %v274_v8  ;;  %v2044_v61 = vadd.f32 %v813_v34, %v783_v45  ;;  %v2050_v8 = vmul.f32 %v963_v28, %v961_v15  ;;  %v2060_v34 = vmul.f32 %v955_v24, %v954_v39  ;;  %v601_v24 = vld [vmem:[#allocation3 + $0x1a] sm:$0xff]  ;;  %v602_v52 = vld [vmem:[#allocation3 + $0x22] sm:$0xff]  ;;  %v597_v50 = vmul.f32 %v595_v40, %v594_v21 }
  0xdd   :  { %v609_v37 = vld [vmem:[#allocation3 + $0x1b] sm:$0xff]  ;;  %v604_v22 = vmul.f32 %v603_v58, %v601_v24  ;;  %v626_v40 = vld [vmem:[#allocation3 + $0x25] sm:$0xff] }
  0xde   :  { %v295_v23 = vpop.permute.xlu0 %294  ;;  %v599_v24 = vadd.f32 %v597_v50, %v1814_v4  ;;  %v634_v39 = vld [vmem:[#allocation3 + $0x26] sm:$0xff]  ;;  %v629_v4 = vmul.f32 %v627_v1, %v626_v40 }
  0xdf   :  { %v2070_v60 = vsel %vm306_vm10, %v295_v23, %v1990_v33  ;;  %v610_v23 = vld [vmem:[#allocation3 + $0x23] sm:$0xff]  ;;  %v606_v27 = vadd.f32 %v604_v22, %v1831_v19  ;;  %v673_v33 = vld [vmem:[#allocation3 + $0x34] sm:$0xff]  ;;  %v636_v19 = vmul.f32 %v635_v2, %v633_v25 }
  0xe0   :  { %v305_v36 = vpop.permute.xlu1 %304  ;;  %314 = vst [vmem:[#allocation3 + $0x90] sm:$0xff] %v2070_v60  ;;  %v613_v28 = vmul.f32 %v611_v62, %v610_v23  ;;  %v1195_v23 = vstv %s2086_s23  ;;  %v631_v40 = vadd.f32 %v629_v4, %v599_v24  ;;  %s2289_s23 = sld [smem:[#allocation4 + $0x53]] }
  0xe2   :  { %v299_v43 = vpop.permute.xlu0 %298 }
  0xe3   :  { %v2103_v45 = vsel %vm306_vm10, %v299_v43, %v301_v51  ;;  %v605_v51 = vmul.f32 %v603_v58, %v602_v52  ;;  %v612_v43 = vmul.f32 %v611_v62, %v609_v37  ;;  %v658_v58 = vld [vmem:[#allocation3 + $0x3a] sm:$0xff] }
  0xe4   :  { %v339_v17 = vpop.permute.xlu1 %338  ;;  %315 = vst [vmem:[#allocation3 + $0x98] sm:$0xff] %v2103_v45  ;;  %v665_v52 = vld [vmem:[#allocation3 + $0x33] sm:$0xff]  ;;  %v666_v62 = vld [vmem:[#allocation3 + $0x3b] sm:$0xff]  ;;  %v661_v50 = vmul.f32 %v659_v11, %v658_v58  ;;  %v644_v11 = vmul.f32 %v643_v38, %v1710_v6  ;;  %v638_v58 = vadd.f32 %v636_v19, %v606_v27 }
  0xe5   :  { %v668_v22 = vmul.f32 %v667_v26, %v665_v52  ;;  %v676_v52 = vmul.f32 %v675_v30, %v673_v33  ;;  %v708_v33 = vmul.f32 %v707_v44, %v705_v31 }
  0xe6   :  { %v303_v21 = vpop.permute.xlu0 %302  ;;  %v663_v27 = vadd.f32 %v661_v50, %v631_v40 }
  0xe7   :  { %v309_v37 = vsel %vm306_vm10, %v303_v21, %v305_v36  ;;  %v607_v36 = vadd.f32 %v605_v51, %v1816_v5  ;;  %v614_v21 = vadd.f32 %v612_v43, %v1833_v20  ;;  %v615_v20 = vadd.f32 %v613_v28, %v1818_v7 }
  0xe8   :  { %v343_v15 = vpop.permute.xlu1 %342  ;;  %316 = vst [vmem:[#allocation3 + $0xa0] sm:$0x3f] %v309_v37  ;;  %v674_v37 = vld [vmem:[#allocation3 + $0x3c] sm:$0xff]  ;;  %v637_v51 = vmul.f32 %v635_v2, %v634_v39  ;;  %v669_v43 = vmul.f32 %v667_v26, %v666_v62  ;;  %v645_v7 = vmul.f32 %v643_v38, %v1745_v14  ;;  %v1227_v28 = vstv %s2121_s18  ;;  %v722_v62 = vld [vmem:[#allocation3 + $0x53] sm:$0xff]  ;;  %s2710_s18 = sld [smem:[#allocation28_spill]] }
  0xe9   :  { %v677_v26 = vmul.f32 %v675_v30, %v674_v37  ;;  %v690_v39 = vld [vmem:[#allocation3 + $0x3e] sm:$0xff]  ;;  %v646_v6 = vadd.f32 %v644_v11, %v614_v21  ;;  %v670_v24 = vadd.f32 %v668_v22, %v638_v58  ;;  %v709_v30 = vmul.f32 %v707_v44, %v706_v10  ;;  %v737_v10 = vld [vmem:[#allocation3 + $0x4d] sm:$0xff] }
  0xea   :  { %v337_v5 = vpop.permute.xlu0 %336  ;;  %v639_v2 = vadd.f32 %v637_v51, %v607_v36  ;;  %v647_v14 = vadd.f32 %v645_v7, %v615_v20  ;;  %v761_v36 = vld [vmem:[#allocation3 + $0x61] sm:$0xff]  ;;  %v693_v31 = vmul.f32 %v691_v41, %v690_v39  ;;  %v700_v22 = vmul.f32 %v699_v18, %v1790_v53  ;;  %v738_v51 = vld [vmem:[#allocation3 + $0x55] sm:$0xff]  ;;  %v770_v7 = vld [vmem:[#allocation3 + $0x6a] sm:$0xff] }
  0xeb   :  { %v2156_v1 = vsel %vm131_vm5, %v337_v5, %v339_v17  ;;  %v729_v17 = vld [vmem:[#allocation3 + $0x4c] sm:$0xff]  ;;  %v678_v50 = vadd.f32 %v676_v52, %v646_v6  ;;  %v730_v5 = vld [vmem:[#allocation3 + $0x54] sm:$0xff]  ;;  %v701_v44 = vmul.f32 %v699_v18, %v1838_v63  ;;  %v1235_v41 = vstv %s2140_s9  ;;  %v785_v52 = vld [vmem:[#allocation3 + $0x64] sm:$0xff]  ;;  %s2262_s9 = sld [smem:[#allocation4 + $0x60]] }
  0xec   :  { %v347_v25 = vpop.permute.xlu1 %346  ;;  %355 = vst [vmem:[#allocation3 + $0xc0] sm:$0xff] %v2156_v1  ;;  %v671_v38 = vadd.f32 %v669_v43, %v639_v2  ;;  %v732_v37 = vmul.f32 %v731_v48, %v729_v17  ;;  %v679_v20 = vadd.f32 %v677_v26, %v647_v14  ;;  %v769_v43 = vld [vmem:[#allocation3 + $0x62] sm:$0xff]  ;;  %v695_v11 = vadd.f32 %v693_v31, %v663_v27 }
  0xed   :  { %v702_v53 = vadd.f32 %v700_v22, %v670_v24  ;;  %v710_v40 = vadd.f32 %v708_v33, %v678_v50  ;;  %v764_v58 = vmul.f32 %v763_v9, %v761_v36  ;;  %v762_v2 = vld [vmem:[#allocation3 + $0x69] sm:$0xff]  ;;  %v733_v26 = vmul.f32 %v731_v48, %v730_v5  ;;  %v817_v36 = vld [vmem:[#allocation3 + $0x79] sm:$0xff] }
  0xee   :  { %v341_v4 = vpop.permute.xlu0 %340  ;;  %v703_v63 = vadd.f32 %v701_v44, %v671_v38  ;;  %v2712_v27 = vstv %s2708_s27  ;;  %v2715_v31 = vstv %s2710_s18  ;;  %v765_v48 = vmul.f32 %v763_v9, %v762_v2  ;;  %v786_v5 = vld [vmem:[#allocation3 + $0x6c] sm:$0xff]  ;;  %s2720_s27 = sld [smem:[#allocation32_spill]]  ;;  %v833_v2 = vld [vmem:[#allocation3 + $0x7b] sm:$0xff]  ;;  %s2732_s18 = sld [smem:[#allocation35_spill]] }
  0xef   :  { %v2177_v19 = vsel %vm131_vm5, %v341_v4, %v343_v15  ;;  %v725_v15 = vmul.f32 %v723_v47, %v722_v62  ;;  %v711_v47 = vadd.f32 %v709_v30, %v679_v20  ;;  %v734_v6 = vadd.f32 %v732_v37, %v702_v53  ;;  %v793_v30 = vld [vmem:[#allocation3 + $0x65] sm:$0xff]  ;;  %v825_v37 = vld [vmem:[#allocation3 + $0x7a] sm:$0xff] }
  0xf0   :  { %v373_v21 = vpop.permute.xlu1 %372  ;;  %356 = vst [vmem:[#allocation3 + $0xc8] sm:$0xff] %v2177_v19  ;;  %v740_v24 = vmul.f32 %v2712_v27, %v737_v10  ;;  %v2713_v33 = vmov %v2712_v27  ;;  %v2714_v4 = vstv %s2709_s3  ;;  %v788_v38 = vmul.f32 %v2715_v31, %v785_v52  ;;  %v801_v52 = vld [vmem:[#allocation3 + $0x66] sm:$0xff]  ;;  %s2723_s3 = sld [smem:[#allocation33_spill]] }
  0xf1   :  { %v741_v62 = vmul.f32 %v2713_v33, %v738_v51  ;;  %v772_v14 = vmul.f32 %v2714_v4, %v769_v43  ;;  %v727_v50 = vadd.f32 %v725_v15, %v695_v11  ;;  %v2719_v44 = vstv %s2711_s30  ;;  %v802_v33 = vld [vmem:[#allocation3 + $0x6e] sm:$0xff]  ;;  %s2727_s30 = sld [smem:[#allocation34_spill]] }
  0xf2   :  { %v345_v18 = vpop.permute.xlu0 %344  ;;  %v742_v20 = vadd.f32 %v740_v24, %v710_v40  ;;  %v757_v10 = vmul.f32 %v2719_v44, %v1890_v55  ;;  %v766_v51 = vadd.f32 %v764_v58, %v734_v6  ;;  %v1243_v15 = vstv %s2172_s29  ;;  %s2734_s29 = sld [smem:[#allocation36_spill]] }
  0xf3   :  { %v350_v39 = vsel %vm131_vm5, %v345_v18, %v347_v25  ;;  %v2717_v25 = vmov %v2714_v4  ;;  %v735_v11 = vadd.f32 %v733_v26, %v703_v63  ;;  %v743_v53 = vadd.f32 %v741_v62, %v711_v47  ;;  %v794_v18 = vld [vmem:[#allocation3 + $0x6d] sm:$0xff]  ;;  %v841_v26 = vld [vmem:[#allocation3 + $0x7c] sm:$0xff] }
  0xf4   :  { %v377_v17 = vpop.permute.xlu1 %376  ;;  %357 = vst [vmem:[#allocation3 + $0xd0] sm:$0x3f] %v350_v39  ;;  %v773_v22 = vmul.f32 %v2717_v25, %v770_v7  ;;  %v2721_v39 = vstv %s2716_s20  ;;  %v774_v27 = vadd.f32 %v772_v14, %v742_v20  ;;  %v2724_v55 = vstv %s2718_s19  ;;  %s2735_s19 = sld [smem:[#allocation37_spill]] }
  0xf5   :  { %v820_v9 = vmul.f32 %v2721_v39, %v817_v36  ;;  %v796_v24 = vmul.f32 %v2724_v55, %v793_v30  ;;  %v2725_v58 = vmov %v2715_v31  ;;  %v2726_v63 = vstv %s2720_s27  ;;  %v818_v31 = vld [vmem:[#allocation3 + $0x81] sm:$0xff] }
  0xf6   :  { %v371_v43 = vpop.permute.xlu0 %370  ;;  %v789_v6 = vmul.f32 %v2725_v58, %v786_v5  ;;  %v828_v47 = vmul.f32 %v2726_v63, %v825_v37  ;;  %v759_v62 = vadd.f32 %v757_v10, %v727_v50  ;;  %v767_v4 = vadd.f32 %v765_v48, %v735_v11  ;;  %v849_v39 = vld [vmem:[#allocation3 + $0x7d] sm:$0xff] }
  0xf7   :  { %v2217_v7 = vsel %vm166_vm6, %v371_v43, %v373_v21  ;;  %v790_v21 = vadd.f32 %v788_v38, %v1962_v12  ;;  %v775_v36 = vadd.f32 %v773_v22, %v743_v53  ;;  %v798_v25 = vadd.f32 %v796_v24, %v766_v51  ;;  %v826_v37 = vld [vmem:[#allocation3 + $0x82] sm:$0xff]  ;;  %v873_v24 = vld [vmem:[#allocation3 + $0x91] sm:$0xff] }
  0xf8   :  { %v381_v40 = vpop.permute.xlu1 %380  ;;  %389 = vst [vmem:[#allocation3 + $0xd8] sm:$0xff] %v2217_v7  ;;  %v2728_v14 = vstv %s2722_s21  ;;  %v2729_v30 = vmov %v2724_v55  ;;  %v2730_v44 = vstv %s2723_s3  ;;  %v2733_v12 = vstv %s2727_s30  ;;  %v857_v48 = vld [vmem:[#allocation3 + $0x7e] sm:$0xff]  ;;  %s2737_s21 = sld [smem:[#allocation38_spill]] }
  0xf9   :  { %v804_v20 = vmul.f32 %v2728_v14, %v801_v52  ;;  %v797_v5 = vmul.f32 %v2729_v30, %v794_v18  ;;  %v836_v43 = vmul.f32 %v2730_v44, %v833_v2  ;;  %v2731_v58 = vmov %v2728_v14  ;;  %v834_v22 = vld [vmem:[#allocation3 + $0x83] sm:$0xff] }
  0xfa   :  { %v375_v55 = vpop.permute.xlu0 %374  ;;  %v805_v63 = vmul.f32 %v2731_v58, %v802_v33  ;;  %v822_v50 = vadd.f32 %v820_v9, %v790_v21  ;;  %v844_v38 = vmul.f32 %v2733_v12, %v841_v26  ;;  %v791_v53 = vadd.f32 %v789_v6, %v759_v62  ;;  %v850_v44 = vld [vmem:[#allocation3 + $0x85] sm:$0xff]  ;;  %v874_v12 = vld [vmem:[#allocation3 + $0x99] sm:$0xff] }
  0xfb   :  { %v2238_v10 = vsel %vm166_vm6, %v375_v55, %v377_v17  ;;  %v806_v11 = vadd.f32 %v804_v20, %v774_v27  ;;  %v830_v52 = vadd.f32 %v828_v47, %v798_v25  ;;  %v2736_v18 = vstv %s2716_s20  ;;  %v842_v17 = vld [vmem:[#allocation3 + $0x84] sm:$0xff]  ;;  %v889_v25 = vld [vmem:[#allocation3 + $0x93] sm:$0xff]  ;;  %s2744_s20 = sld [smem:[#allocation39_spill]] }
  0xfc   :  { %v407_v51 = vpop.permute.xlu1 %406  ;;  %v821_v2 = vmul.f32 %v2736_v18, %v818_v31  ;;  %390 = vst [vmem:[#allocation3 + $0xe0] sm:$0xff] %v2238_v10  ;;  %v799_v9 = vadd.f32 %v797_v5, %v767_v4  ;;  %v807_v33 = vadd.f32 %v805_v63, %v775_v36  ;;  %v2738_v26 = vstv %s2732_s18  ;;  %v858_v47 = vld [vmem:[#allocation3 + $0x86] sm:$0xff]  ;;  %v881_v4 = vld [vmem:[#allocation3 + $0x92] sm:$0xff] }
  0xfd   :  { %v852_v21 = vmul.f32 %v2738_v26, %v849_v39  ;;  %v2739_v14 = vstv %s2720_s27  ;;  %v838_v55 = vadd.f32 %v836_v43, %v806_v11  ;;  %v2740_v58 = vstv %s2734_s29  ;;  %s2745_s27 = sld [smem:[#allocation40_spill]]  ;;  %v897_v63 = vld [vmem:[#allocation3 + $0x94] sm:$0xff] }
  0xfe   :  { %v829_v30 = vmul.f32 %v2739_v14, %v826_v37  ;;  %v860_v27 = vmul.f32 %v2740_v58, %v857_v48  ;;  %v2741_v20 = vstv %s2723_s3  ;;  %v2742_v62 = vstv %s2735_s19  ;;  %v379_v36 = vpop.permute.xlu0 %378  ;;  %v882_v48 = vld [vmem:[#allocation3 + $0x9a] sm:$0xff]  ;;  %s2746_s3 = sld [smem:[#allocation41_spill]] }
  0xff   :  { %v837_v6 = vmul.f32 %v2741_v20, %v834_v22  ;;  %v868_v31 = vmul.f32 %v2742_v62, %v2070_v60  ;;  %v846_v5 = vadd.f32 %v844_v38, %v2032_v49  ;;  %v854_v39 = vadd.f32 %v852_v21, %v822_v50  ;;  %v890_v50 = vld [vmem:[#allocation3 + $0x9b] sm:$0xff] }
 0x100   :  { %v2743_v37 = vstv %s2737_s21  ;;  %v384_v22 = vsel %vm166_vm6, %v379_v36, %v381_v40  ;;  %v411_v11 = vpop.permute.xlu1 %410  ;;  %v862_v18 = vadd.f32 %v860_v27, %v830_v52  ;;  %v823_v60 = vadd.f32 %v821_v2, %v791_v53  ;;  %v898_v52 = vld [vmem:[#allocation3 + $0x9c] sm:$0xff]  ;;  %s2759_s21 = sld [smem:[#allocation43_spill]] }
 0x101   :  { %v876_v43 = vmul.f32 %v2743_v37, %v873_v24  ;;  %v2747_v26 = vstv %s2727_s30  ;;  %v2748_v58 = vstv %s2732_s18  ;;  %391 = vst [vmem:[#allocation3 + $0xe8] sm:$0x3f] %v384_v22  ;;  %v831_v38 = vadd.f32 %v829_v30, %v799_v9  ;;  %s2272_s30 = sld [smem:[#allocation4 + $0x3e]]  ;;  %s2756_s18 = sld [smem:[#allocation42_spill]] }
 0x102   :  { %v845_v14 = vmul.f32 %v2747_v26, %v842_v17  ;;  %v853_v49 = vmul.f32 %v2748_v58, %v850_v44  ;;  %v2749_v24 = vstv %s2734_s29  ;;  %v2750_v20 = vstv %s2744_s20  ;;  %v905_v44 = vld [vmem:[#allocation3 + $0x95] sm:$0xff]  ;;  %s2280_s29 = sld [smem:[#allocation4 + $0x45]]  ;;  %s2298_s20 = sld [smem:[#allocation4 + $0x5a]] }
 0x103   :  { %v861_v21 = vmul.f32 %v2749_v24, %v858_v47  ;;  %v884_v40 = vmul.f32 %v2750_v20, %v881_v4  ;;  %v2751_v62 = vstv %s2745_s27  ;;  %v839_v53 = vadd.f32 %v837_v6, %v807_v33  ;;  %v405_v47 = vpop.permute.xlu0 %404  ;;  %v913_v24 = vld [vmem:[#allocation3 + $0x96] sm:$0xff]  ;;  %s2300_s27 = sld [smem:[#allocation4 + $0x61]] }
 0x104   :  { %v892_v36 = vmul.f32 %v2751_v62, %v889_v25  ;;  %v2752_v2 = vstv %s2746_s3  ;;  %v2753_v27 = vmov %v2743_v37  ;;  %v2754_v30 = vmov %v2750_v20  ;;  %v415_v33 = vpop.permute.xlu1 %414  ;;  %s2767_s3 = sld [smem:[#allocation45_spill]] }
 0x105   :  { %v900_v17 = vmul.f32 %v2752_v2, %v897_v63  ;;  %v877_v9 = vmul.f32 %v2753_v27, %v874_v12  ;;  %v885_v37 = vmul.f32 %v2754_v30, %v882_v48  ;;  %v870_v4 = vadd.f32 %v868_v31, %v838_v55 }
 0x106   :  { %v878_v25 = vadd.f32 %v876_v43, %v846_v5  ;;  %v2755_v22 = vmov %v2751_v62  ;;  %v2285_v58 = vsel %vm201_vm7, %v405_v47, %v407_v51  ;;  %v847_v6 = vadd.f32 %v845_v14, %v2044_v61  ;;  %v906_v14 = vld [vmem:[#allocation3 + $0x9d] sm:$0xff] }
 0x107   :  { %v893_v26 = vmul.f32 %v2755_v22, %v890_v50  ;;  %v855_v63 = vadd.f32 %v853_v49, %v823_v60  ;;  %v2757_v12 = vstv %s2735_s19  ;;  %v2758_v55 = vmov %v2752_v2  ;;  %423 = vst [vmem:[#allocation3 + $0xf0] sm:$0xff] %v2285_v58  ;;  %v409_v62 = vpop.permute.xlu0 %408  ;;  %s2764_s19 = sld [smem:[#allocation44_spill]] }
 0x108   :  { %v869_v48 = vmul.f32 %v2757_v12, %v2103_v45  ;;  %v901_v31 = vmul.f32 %v2758_v55, %v898_v52  ;;  %v863_v51 = vadd.f32 %v861_v21, %v831_v38  ;;  %v886_v5 = vadd.f32 %v884_v40, %v854_v39  ;;  %v914_v45 = vld [vmem:[#allocation3 + $0x9e] sm:$0xff]  ;;  %v441_v39 = vpop.permute.xlu1 %440 }
 0x109   :  { %v894_v43 = vadd.f32 %v892_v36, %v862_v18  ;;  %v2760_v61 = vstv %s2756_s18  ;;  %v879_v50 = vadd.f32 %v877_v9, %v847_v6  ;;  %v887_v20 = vadd.f32 %v885_v37, %v855_v63  ;;  %v993_v55 = vld [vmem:[#allocation3 + $0xc2] sm:$0xff]  ;;  %s2771_s18 = sld [smem:[#allocation46_spill]] }
 0x10a   :  { %v908_v60 = vmul.f32 %v2760_v61, %v905_v44  ;;  %v871_v49 = vadd.f32 %v869_v48, %v839_v53  ;;  %v902_v52 = vadd.f32 %v900_v17, %v870_v4  ;;  %v2761_v2 = vstv %s2759_s21 }
 0x10b   :  { %v916_v27 = vmul.f32 %v2761_v2, %v913_v24  ;;  %v895_v30 = vadd.f32 %v893_v26, %v863_v51  ;;  %v2307_v38 = vsel %vm201_vm7, %v409_v62, %v411_v11  ;;  %v2762_v21 = vmov %v2760_v61  ;;  %v985_v11 = vld [vmem:[#allocation3 + $0xc1] sm:$0xff]  ;;  %v413_v22 = vpop.permute.xlu0 %412 }
 0x10c   :  { %v910_v18 = vadd.f32 %v908_v60, %v878_v25  ;;  %v909_v40 = vmul.f32 %v2762_v21, %v906_v14  ;;  %v2763_v36 = vmov %v2761_v2  ;;  %424 = vst [vmem:[#allocation3 + $0xf8] sm:$0xff] %v2307_v38  ;;  %v903_v53 = vadd.f32 %v901_v31, %v871_v49  ;;  %v445_v48 = vpop.permute.xlu1 %444  ;;  %v1001_v49 = vld [vmem:[#allocation3 + $0xc3] sm:$0xff] }
 0x10d   :  { %v917_v44 = vmul.f32 %v2763_v36, %v914_v45  ;;  %v1251_v9 = vstv %s2262_s9  ;;  %v918_v37 = vadd.f32 %v916_v27, %v886_v5  ;;  %v926_v17 = vadd.f32 %v2014_v59, %v894_v43  ;;  %v1002_v27 = vld [vmem:[#allocation3 + $0xcb] sm:$0xff] }
 0x10e   :  { %v1259_v47 = vstv %s2270_s4  ;;  %v1267_v4 = vstv %s2272_s30  ;;  %v911_v25 = vadd.f32 %v909_v40, %v879_v50  ;;  %v934_v6 = vadd.f32 %v2016_v57, %v902_v52  ;;  %v986_v57 = vld [vmem:[#allocation3 + $0xc9] sm:$0xff] }
 0x10f   :  { %v919_v26 = vadd.f32 %v917_v44, %v887_v20  ;;  %v1275_v63 = vstv %s2280_s29  ;;  %v418_v12 = vsel %vm201_vm7, %v413_v22, %v415_v33  ;;  %v927_v24 = vadd.f32 %v2046_v46, %v895_v30  ;;  %v1009_v50 = vld [vmem:[#allocation3 + $0xc4] sm:$0xff]  ;;  %v439_v20 = vpop.permute.xlu0 %438 }
 0x110   :  { %v942_v59 = vadd.f32 %v2034_v42, %v910_v18  ;;  %v1283_v31 = vstv %s2287_s22  ;;  %425 = vst [vmem:[#allocation3 + $0x100] sm:$0x3f] %v418_v12  ;;  %v935_v51 = vadd.f32 %v2048_v54, %v903_v53  ;;  %v1291_v5 = vstv %s2289_s23  ;;  %v994_v52 = vld [vmem:[#allocation3 + $0xca] sm:$0xff]  ;;  %v449_v30 = vpop.permute.xlu1 %448  ;;  %v1041_v12 = vld [vmem:[#allocation3 + $0xd9] sm:$0xff]  ;;  %s1540_s22 = smov [#allocation9]  }
 0x111   :  { %v1299_v43 = vstv %s2298_s20  ;;  %v1307_v61 = vstv %s2300_s27  ;;  %v950_v60 = vadd.f32 %v2036_v3, %v918_v37  ;;  %v958_v14 = vadd.f32 %v2038_v16, %v926_v17  ;;  %v1017_v40 = vld [vmem:[#allocation3 + $0xc5] sm:$0xff]  ;;  %s1337_s23 = sshll.u32 %s1540_s22, 4  ;;  %s1338_s23 = int_to_ptr.vmem [resolvable:$true] %s1337_s23 }
 0x112   :  { %v2765_v33 = vstv %s2764_s19  ;;  %v2766_v45 = vstv %s1956_s15  ;;  %v943_v54 = vadd.f32 %v2056_v32, %v911_v25  ;;  %v951_v62 = vadd.f32 %v2058_v0, %v919_v26  ;;  %v1010_v37 = vld [vmem:[#allocation3 + $0xcc] sm:$0xff]  ;;  %s2822_s15 = sld [smem:[#allocation54_spill]]  ;;  %s1501_s9 = scalar_lea.vmem %s1338_s23, 256 }
 0x113   :  { %v980_v46 = vmul.f32 %v2765_v33, %v2156_v1  ;;  %v988_v42 = vmul.f32 %v2766_v45, %v985_v11  ;;  %v966_v3 = vadd.f32 %v2050_v8, %v934_v6  ;;  %v2768_v16 = vstv %s1958_s26  ;;  %s2826_s26 = sld [smem:[#allocation55_spill]]  ;;  %p1502_p11 = scmp.ne.s32.totalorder %s1338_s23, %s1501_s9 }
 0x114   :  { %v996_v2 = vmul.f32 %v2768_v16, %v993_v55  ;;  %v2341_v1 = vsel %vm236_vm8, %v439_v20, %v441_v39  ;;  %v959_v18 = vadd.f32 %v2060_v34, %v927_v24  ;;  %v974_v21 = vadd.f32 %v2062_v13, %v942_v59  ;;  %v1025_v34 = vld [vmem:[#allocation3 + $0xc6] sm:$0xff]  ;;  %p1506_p12 = scmp.lt.s32.totalorder %s1338_s23, %s1338_s23  ;;  %p1507_p13 = scmp.lt.s32.totalorder %s1501_s9, %s1501_s9 }
 0x115   :  { %v2769_v32 = vmov %v2765_v33  ;;  %457 = vst [vmem:[#allocation3 + $0x108] sm:$0xff] %v2341_v1  ;;  %v967_v8 = vadd.f32 %v2072_v35, %v935_v51  ;;  %v2770_v36 = vmov %v2766_v45  ;;  %v2772_v53 = vstv %s1966_s2  ;;  %v443_v35 = vpop.permute.xlu0 %442  ;;  %v1018_v51 = vld [vmem:[#allocation3 + $0xcd] sm:$0xff]  ;;  %s2802_s2 = sld [smem:[#allocation47_spill]] }
 0x116   :  { %v981_v0 = vmul.f32 %v2769_v32, %v2177_v19  ;;  %v989_v44 = vmul.f32 %v2770_v36, %v986_v57  ;;  %v1004_v39 = vmul.f32 %v2772_v53, %v1001_v49  ;;  %v2773_v17 = vstv %s2767_s3  ;;  %p1508_p0 = por %p1507_p13, %p1506_p12 }
 0x117   :  { %v1012_v11 = vmul.f32 %v2773_v17, %v1009_v50  ;;  %v982_v13 = vadd.f32 %v980_v46, %v950_v60  ;;  %v990_v22 = vadd.f32 %v988_v42, %v958_v14  ;;  %v2774_v19 = vmov %v2768_v16  ;;  %v475_v60 = vpop.permute.xlu1 %474  ;;  %v1026_v42 = vld [vmem:[#allocation3 + $0xce] sm:$0xff] }
 0x118   :  { %v997_v25 = vmul.f32 %v2774_v19, %v994_v52  ;;  %v2775_v26 = vmov %v2772_v53  ;;  %v975_v24 = vadd.f32 %v2074_v56, %v943_v54  ;;  %v983_v59 = vadd.f32 %v981_v0, %v951_v62  ;;  %v1049_v54 = vld [vmem:[#allocation3 + $0xda] sm:$0xff]  ;;  %v1058_v19 = vld [vmem:[#allocation3 + $0xe3] sm:$0xff]  ;;  %p1509_p1 = pnand %p1508_p0, %p1502_p11 }
 0x119   :  { %v1005_v6 = vmul.f32 %v2775_v26, %v1002_v27  ;;  %v998_v55 = vadd.f32 %v996_v2, %v966_v3  ;;  %v2776_v57 = vstv %s2771_s18  ;;  %v2364_v45 = vsel %vm236_vm8, %v443_v35, %v445_v48  ;;  %v1057_v2 = vld [vmem:[#allocation3 + $0xdb] sm:$0xff] }
 0x11a   :  { %v1020_v33 = vmul.f32 %v2776_v57, %v1017_v40  ;;  %v2777_v14 = vmov %v2773_v17  ;;  %v2778_v49 = vstv %s1976_s0  ;;  %v2779_v20 = vstv %s1981_s7  ;;  %458 = vst [vmem:[#allocation3 + $0x110] sm:$0xff] %v2364_v45  ;;  %v1065_v27 = vld [vmem:[#allocation3 + $0xdc] sm:$0xff]  ;;  %s2805_s0 = sld [smem:[#allocation48_spill]] }
 0x11b   :  { %v1013_v46 = vmul.f32 %v2777_v14, %v1010_v37  ;;  %v1028_v50 = vmul.f32 %v2778_v49, %v1025_v34  ;;  %v1036_v56 = vmul.f32 %v2779_v20, %v2217_v7  ;;  %v991_v62 = vadd.f32 %v989_v44, %v959_v18  ;;  %v1042_v7 = vld [vmem:[#allocation3 + $0xe1] sm:$0xff]  ;;  %v447_v37 = vpop.permute.xlu0 %446 }
 0x11c   :  { %v1006_v3 = vadd.f32 %v1004_v39, %v974_v21  ;;  %v1014_v48 = vadd.f32 %v1012_v11, %v982_v13  ;;  %v2780_v52 = vstv %s1983_s6  ;;  %v999_v32 = vadd.f32 %v997_v25, %v967_v8  ;;  %v1050_v39 = vld [vmem:[#allocation3 + $0xe2] sm:$0xff]  ;;  %v479_v25 = vpop.permute.xlu1 %478  ;;  %s2819_s6 = sld [smem:[#allocation51_spill]] }
 0x11d   :  { %v1044_v16 = vmul.f32 %v2780_v52, %v1041_v12  ;;  %v1007_v0 = vadd.f32 %v1005_v6, %v975_v24  ;;  %v2781_v40 = vmov %v2776_v57  ;;  %v1022_v53 = vadd.f32 %v1020_v33, %v990_v22  ;;  %v1066_v12 = vld [vmem:[#allocation3 + $0xe4] sm:$0xff] }
 0x11e   :  { %v1021_v36 = vmul.f32 %v2781_v40, %v1018_v51  ;;  %v2782_v17 = vmov %v2778_v49  ;;  %v1030_v18 = vadd.f32 %v1028_v50, %v998_v55  ;;  %v2783_v21 = vmov %v2779_v20  ;;  %v1073_v55 = vld [vmem:[#allocation3 + $0xdd] sm:$0xff] }
 0x11f   :  { %v1029_v34 = vmul.f32 %v2782_v17, %v1026_v42  ;;  %v1037_v44 = vmul.f32 %v2783_v21, %v2238_v10  ;;  %v2784_v11 = vstv %s1993_s17  ;;  %v452_v8 = vsel %vm236_vm8, %v447_v37, %v449_v30  ;;  %v1081_v42 = vld [vmem:[#allocation3 + $0xde] sm:$0xff]  ;;  %v1113_v21 = vld [vmem:[#allocation3 + $0xf3] sm:$0xff] }
 0x120   :  { %v1052_v13 = vmul.f32 %v2784_v11, %v1049_v54  ;;  %v1015_v26 = vadd.f32 %v1013_v46, %v983_v59  ;;  %v2785_v22 = vstv %s1995_s28  ;;  %v2786_v35 = vstv %s2000_s8  ;;  %459 = vst [vmem:[#allocation3 + $0x118] sm:$0x3f] %v452_v8  ;;  %v1074_v54 = vld [vmem:[#allocation3 + $0xe5] sm:$0xff]  ;;  %v1106_v8 = vld [vmem:[#allocation3 + $0xfa] sm:$0xff]  ;;  %s2810_s28 = sld [smem:[#allocation49_spill]] }
 0x121   :  { %v1060_v6 = vmul.f32 %v2785_v22, %v1057_v2  ;;  %v1068_v24 = vmul.f32 %v2786_v35, %v1065_v27  ;;  %v1023_v10 = vadd.f32 %v1021_v36, %v991_v62  ;;  %v1038_v51 = vadd.f32 %v1036_v56, %v1006_v3  ;;  %v473_v2 = vpop.permute.xlu0 %472  ;;  %v1082_v3 = vld [vmem:[#allocation3 + $0xe6] sm:$0xff] }
 0x122   :  { %v2787_v57 = vmov %v2780_v52  ;;  %v1046_v14 = vadd.f32 %v1044_v16, %v1014_v48  ;;  %v1031_v30 = vadd.f32 %v1029_v34, %v999_v32  ;;  %v1039_v49 = vadd.f32 %v1037_v44, %v1007_v0  ;;  %v1097_v52 = vld [vmem:[#allocation3 + $0xf1] sm:$0xff] }
 0x123   :  { %v1045_v33 = vmul.f32 %v2787_v57, %v1042_v7  ;;  %v2788_v50 = vmov %v2784_v11  ;;  %v2789_v46 = vmov %v2785_v22  ;;  %v1054_v27 = vadd.f32 %v1052_v13, %v1022_v53  ;;  %v1105_v32 = vld [vmem:[#allocation3 + $0xf2] sm:$0xff]  ;;  %v483_v7 = vpop.permute.xlu1 %482 }
 0x124   :  { %v1053_v59 = vmul.f32 %v2788_v50, %v1050_v39  ;;  %v1061_v20 = vmul.f32 %v2789_v46, %v1058_v19  ;;  %v2790_v40 = vmov %v2786_v35  ;;  %v2791_v36 = vstv %s2002_s10  ;;  %v1098_v13 = vld [vmem:[#allocation3 + $0xf9] sm:$0xff] }
 0x125   :  { %v1069_v62 = vmul.f32 %v2790_v40, %v1066_v12  ;;  %v1076_v56 = vmul.f32 %v2791_v36, %v1073_v55  ;;  %v2792_v48 = vstv %s2010_s11  ;;  %v2404_v0 = vsel %vm271_vm9, %v473_v2, %v475_v60  ;;  %v1114_v55 = vld [vmem:[#allocation3 + $0xfb] sm:$0xff]  ;;  %v477_v57 = vpop.permute.xlu0 %476 }
 0x126   :  { %v1092_v16 = vmul.f32 %v2792_v48, %v2285_v58  ;;  %v1062_v37 = vadd.f32 %v1060_v6, %v1030_v18  ;;  %v1070_v17 = vadd.f32 %v1068_v24, %v1038_v51  ;;  %v2793_v34 = vstv %s2008_s1  ;;  %491 = vst [vmem:[#allocation3 + $0x120] sm:$0xff] %v2404_v0  ;;  %v1121_v51 = vld [vmem:[#allocation3 + $0xf4] sm:$0xff]  ;;  %v1122_v2 = vld [vmem:[#allocation3 + $0xfc] sm:$0xff]  ;;  %s2812_s1 = sld [smem:[#allocation50_spill]] }
 0x127   :  { %v1084_v53 = vmul.f32 %v2793_v34, %v1081_v42  ;;  %v1047_v44 = vadd.f32 %v1045_v33, %v1015_v26  ;;  %v2794_v39 = vmov %v2791_v36  ;;  %v1078_v58 = vadd.f32 %v1076_v56, %v1046_v14  ;;  %v1129_v40 = vld [vmem:[#allocation3 + $0xf5] sm:$0xff] }
 0x128   :  { %v1077_v11 = vmul.f32 %v2794_v39, %v1074_v54  ;;  %v2795_v19 = vstv %s2019_s5  ;;  %v1055_v22 = vadd.f32 %v1053_v59, %v1023_v10  ;;  %v1063_v18 = vadd.f32 %v1061_v20, %v1031_v30 }
 0x129   :  { %v1100_v60 = vmul.f32 %v2795_v19, %v1097_v52  ;;  %v2796_v6 = vmov %v2793_v34  ;;  %v2797_v35 = vstv %s2021_s13  ;;  %v1071_v26 = vadd.f32 %v1069_v62, %v1039_v49  ;;  %v1137_v49 = vld [vmem:[#allocation3 + $0xf6] sm:$0xff]  ;;  %v481_v39 = vpop.permute.xlu0 %480 }
 0x12a   :  { %v1085_v12 = vmul.f32 %v2796_v6, %v1082_v3  ;;  %v1108_v24 = vmul.f32 %v2797_v35, %v1105_v32  ;;  %v1086_v33 = vadd.f32 %v1084_v53, %v1054_v27  ;;  %v2798_v14 = vmov %v2792_v48  ;;  %v509_v27 = vpop.permute.xlu1 %508  ;;  %v1153_v48 = vld [vmem:[#allocation3 + $0x109] sm:$0xff]  ;;  %v1130_v34 = vld [vmem:[#allocation3 + $0xfd] sm:$0xff] }
 0x12b   :  { %v1093_v42 = vmul.f32 %v2798_v14, %v2307_v38  ;;  %v2799_v50 = vstv %s2028_s24  ;;  %v2423_v54 = vsel %vm271_vm9, %v477_v57, %v479_v25  ;;  %v1094_v10 = vadd.f32 %v1092_v16, %v1062_v37 }
 0x12c   :  { %v1116_v46 = vmul.f32 %v2799_v50, %v1113_v21  ;;  %v2800_v30 = vmov %v2795_v19  ;;  %v2801_v20 = vmov %v2797_v35  ;;  %492 = vst [vmem:[#allocation3 + $0x128] sm:$0xff] %v2423_v54  ;;  %v1079_v38 = vadd.f32 %v1077_v11, %v1047_v44  ;;  %v1138_v11 = vld [vmem:[#allocation3 + $0xfe] sm:$0xff]  ;;  %v1161_v35 = vld [vmem:[#allocation3 + $0x10a] sm:$0xff] }
 0x12d   :  { %v1101_v59 = vmul.f32 %v2800_v30, %v1098_v13  ;;  %v1109_v52 = vmul.f32 %v2801_v20, %v1106_v8  ;;  %v1102_v62 = vadd.f32 %v1100_v60, %v1070_v17  ;;  %v2803_v36 = vmov %v2799_v50 }
 0x12e   :  { %v1117_v25 = vmul.f32 %v2803_v36, %v1114_v55  ;;  %v2804_v56 = vstv %s2030_s14  ;;  %v1087_v16 = vadd.f32 %v1085_v12, %v1055_v22  ;;  %v1095_v32 = vadd.f32 %v1093_v42, %v1063_v18  ;;  %v1177_v55 = vld [vmem:[#allocation3 + $0x10c] sm:$0xff] }
 0x12f   :  { %v1124_v3 = vmul.f32 %v2804_v56, %v1121_v51  ;;  %v1110_v37 = vadd.f32 %v1108_v24, %v1078_v58  ;;  %v2806_v53 = vstv %s2052_s16  ;;  %v1118_v13 = vadd.f32 %v1116_v46, %v1086_v33  ;;  %v1169_v24 = vld [vmem:[#allocation3 + $0x10b] sm:$0xff] }
 0x130   :  { %v1148_v21 = vmul.f32 %v2806_v53, %v2341_v1  ;;  %v2807_v19 = vmov %v2804_v56  ;;  %v2808_v44 = vstv %s2040_s12  ;;  %v2809_v60 = vstv %s2802_s2 }
 0x131   :  { %v1125_v8 = vmul.f32 %v2807_v19, %v1122_v2  ;;  %v1132_v17 = vmul.f32 %v2808_v44, %v1129_v40  ;;  %v1140_v6 = vmul.f32 %v2809_v60, %v1137_v49  ;;  %v486_v22 = vsel %vm271_vm9, %v481_v39, %v483_v7  ;;  %v1170_v40 = vld [vmem:[#allocation3 + $0x113] sm:$0xff]  ;;  %v507_v49 = vpop.permute.xlu0 %506 }
 0x132   :  { %v1103_v58 = vadd.f32 %v1101_v59, %v1071_v26  ;;  %v1111_v18 = vadd.f32 %v1109_v52, %v1079_v38  ;;  %v2811_v12 = vstv %s2805_s0  ;;  %493 = vst [vmem:[#allocation3 + $0x130] sm:$0x3f] %v486_v22  ;;  %v1119_v51 = vadd.f32 %v1117_v25, %v1087_v16  ;;  %v1154_v26 = vld [vmem:[#allocation3 + $0x111] sm:$0xff]  ;;  %v513_v38 = vpop.permute.xlu1 %512 }
 0x133   :  { %v1156_v1 = vmul.f32 %v2811_v12, %v1153_v48  ;;  %v1126_v57 = vadd.f32 %v1124_v3, %v1094_v10  ;;  %v2813_v33 = vmov %v2808_v44  ;;  %v1134_v42 = vadd.f32 %v1132_v17, %v1102_v62  ;;  %v1162_v59 = vld [vmem:[#allocation3 + $0x112] sm:$0xff] }
 0x134   :  { %v1133_v14 = vmul.f32 %v2813_v33, %v1130_v34  ;;  %v2814_v50 = vmov %v2809_v60  ;;  %v1142_v30 = vadd.f32 %v1140_v6, %v1110_v37  ;;  %v2815_v7 = vmov %v2806_v53  ;;  %v1185_v48 = vld [vmem:[#allocation3 + $0x10d] sm:$0xff]  ;;  %v1217_v60 = vld [vmem:[#allocation3 + $0x122] sm:$0xff] }
 0x135   :  { %v1141_v46 = vmul.f32 %v2814_v50, %v1138_v11  ;;  %v1149_v20 = vmul.f32 %v2815_v7, %v2364_v45  ;;  %v2816_v52 = vstv %s2810_s28  ;;  %v1127_v36 = vadd.f32 %v1125_v8, %v1095_v32  ;;  %v1193_v16 = vld [vmem:[#allocation3 + $0x10e] sm:$0xff]  ;;  %v1209_v32 = vld [vmem:[#allocation3 + $0x121] sm:$0xff] }
 0x136   :  { %v1164_v2 = vmul.f32 %v2816_v52, %v1161_v35  ;;  %v1150_v10 = vadd.f32 %v1148_v21, %v1118_v13  ;;  %v2817_v25 = vstv %s2066_s25  ;;  %v2818_v56 = vstv %s2812_s1  ;;  %v1178_v39 = vld [vmem:[#allocation3 + $0x114] sm:$0xff]  ;;  %v1225_v50 = vld [vmem:[#allocation3 + $0x123] sm:$0xff] }
 0x137   :  { %v1172_v62 = vmul.f32 %v2817_v25, %v1169_v24  ;;  %v1180_v3 = vmul.f32 %v2818_v56, %v1177_v55  ;;  %v2460_v45 = vsel %vm306_vm10, %v507_v49, %v509_v27  ;;  %v1135_v37 = vadd.f32 %v1133_v14, %v1103_v58  ;;  %v1186_v11 = vld [vmem:[#allocation3 + $0x115] sm:$0xff] }
 0x138   :  { %v1143_v34 = vadd.f32 %v1141_v46, %v1111_v18  ;;  %v1158_v53 = vadd.f32 %v1156_v1, %v1126_v57  ;;  %525 = vst [vmem:[#allocation3 + $0x138] sm:$0xff] %v2460_v45  ;;  %v1151_v21 = vadd.f32 %v1149_v20, %v1119_v51  ;;  %v2823_v13 = vmov %v2811_v12  ;;  %v1194_v58 = vld [vmem:[#allocation3 + $0x116] sm:$0xff]  ;;  %v511_v1 = vpop.permute.xlu0 %510 }
 0x139   :  { %v1157_v19 = vmul.f32 %v2823_v13, %v1154_v26  ;;  %v2824_v8 = vmov %v2816_v52  ;;  %v2825_v17 = vmov %v2817_v25  ;;  %v1166_v6 = vadd.f32 %v1164_v2, %v1134_v42  ;;  %v1210_v26 = vld [vmem:[#allocation3 + $0x129] sm:$0xff] }
 0x13a   :  { %v1165_v44 = vmul.f32 %v2824_v8, %v1162_v59  ;;  %v1173_v27 = vmul.f32 %v2825_v17, %v1170_v40  ;;  %v2827_v35 = vstv %s2819_s6  ;;  %v1196_v18 = vmul.f32 %v1195_v23, %v1193_v16  ;;  %v1233_v52 = vld [vmem:[#allocation3 + $0x124] sm:$0xff]  ;;  %v1242_v17 = vld [vmem:[#allocation3 + $0x12d] sm:$0xff] }
 0x13b   :  { %v1188_v22 = vmul.f32 %v2827_v35, %v1185_v48  ;;  %v1204_v12 = vmul.f32 %v1203_v29, %v2404_v0  ;;  %v1174_v24 = vadd.f32 %v1172_v62, %v1142_v30  ;;  %v2828_v55 = vmov %v2818_v56  ;;  %v517_v30 = vpop.permute.xlu1 %516  ;;  %v1218_v25 = vld [vmem:[#allocation3 + $0x12a] sm:$0xff] }
 0x13c   :  { %v1181_v51 = vmul.f32 %v2828_v55, %v1178_v39  ;;  %v1182_v57 = vadd.f32 %v1180_v3, %v1150_v10  ;;  %v2829_v33 = vstv %s2822_s15  ;;  %v519_v42 = vsel %vm306_vm10, %v511_v1, %v513_v38  ;;  %v1226_v38 = vld [vmem:[#allocation3 + $0x12b] sm:$0xff]  ;;  %v515_v39 = vpop.permute.xlu0 %514 }
 0x13d   :  { %v1212_v14 = vmul.f32 %v2829_v33, %v1209_v32  ;;  %v2830_v46 = vmov %v2827_v35  ;;  %v1190_v20 = vadd.f32 %v1188_v22, %v1158_v53  ;;  %v2832_v59 = vstv %s2826_s26  ;;  %526 = vst [vmem:[#allocation3 + $0x140] sm:$0xff] %v519_v42  ;;  %v1241_v53 = vld [vmem:[#allocation3 + $0x125] sm:$0xff] }
 0x13e   :  { %v1189_v7 = vmul.f32 %v2830_v46, %v1186_v11  ;;  %v1220_v0 = vmul.f32 %v2832_v59, %v1217_v60  ;;  %v1159_v2 = vadd.f32 %v1157_v19, %v1127_v36  ;;  %v1167_v40 = vadd.f32 %v1165_v44, %v1135_v37  ;;  %v1234_v32 = vld [vmem:[#allocation3 + $0x12c] sm:$0xff] }
 0x13f   :  { %v1175_v49 = vadd.f32 %v1173_v27, %v1143_v34  ;;  %v1197_v10 = vmul.f32 %v1195_v23, %v1194_v58  ;;  %v1198_v62 = vadd.f32 %v1196_v18, %v1166_v6  ;;  %v1205_v56 = vmul.f32 %v1203_v29, %v2423_v54  ;;  %v1249_v13 = vld [vmem:[#allocation3 + $0x126] sm:$0xff]  ;;  %v1250_v6 = vld [vmem:[#allocation3 + $0x12e] sm:$0xff] }
 0x140   :  { %v2834_v3 = vmov %v2829_v33  ;;  %v1228_v16 = vmul.f32 %v1227_v28, %v1225_v50  ;;  %v1183_v36 = vadd.f32 %v1181_v51, %v1151_v21  ;;  %v1206_v37 = vadd.f32 %v1204_v12, %v1174_v24 }
 0x141   :  { %v1213_v48 = vmul.f32 %v2834_v3, %v1210_v26  ;;  %v1214_v34 = vadd.f32 %v1212_v14, %v1182_v57  ;;  %v1236_v23 = vmul.f32 %v1235_v41, %v1233_v52  ;;  %v520_v19 = vsel %vm306_vm10, %v515_v39, %v517_v30 }
 0x142   :  { %v2836_v8 = vmov %v2832_v59  ;;  %v1222_v54 = vadd.f32 %v1220_v0, %v1190_v20  ;;  %v1229_v44 = vmul.f32 %v1227_v28, %v1226_v38  ;;  %527 = vst [vmem:[#allocation3 + $0x148] sm:$0x3f] %v520_v19  ;;  %v1191_v21 = vadd.f32 %v1189_v7, %v1159_v2 }
 0x143   :  { %v1221_v29 = vmul.f32 %v2836_v8, %v1218_v25  ;;  %v1199_v27 = vadd.f32 %v1197_v10, %v1167_v40  ;;  %v1207_v11 = vadd.f32 %v1205_v56, %v1175_v49  ;;  %v1244_v60 = vmul.f32 %v1243_v15, %v1241_v53 }
 0x144   :  { %v1215_v35 = vadd.f32 %v1213_v48, %v1183_v36  ;;  %v1230_v22 = vadd.f32 %v1228_v16, %v1198_v62  ;;  %v1237_v58 = vmul.f32 %v1235_v41, %v1234_v32  ;;  %v1252_v18 = vmul.f32 %v1251_v9, %v1249_v13  ;;  %v1265_v14 = vld [vmem:[#allocation3 + $0x139] sm:$0xff] }
 0x145   :  { %v1238_v28 = vadd.f32 %v1236_v23, %v1206_v37  ;;  %v1245_v12 = vmul.f32 %v1243_v15, %v1242_v17  ;;  %v1246_v1 = vadd.f32 %v1244_v60, %v1214_v34  ;;  %v1260_v24 = vmul.f32 %v1259_v47, %v2460_v45  ;;  %v1273_v50 = vld [vmem:[#allocation3 + $0x13a] sm:$0xff] }
 0x146   :  { %v1223_v55 = vadd.f32 %v1221_v29, %v1191_v21  ;;  %v1231_v51 = vadd.f32 %v1229_v44, %v1199_v27  ;;  %v1253_v57 = vmul.f32 %v1251_v9, %v1250_v6  ;;  %v1254_v33 = vadd.f32 %v1252_v18, %v1222_v54  ;;  %v1281_v41 = vld [vmem:[#allocation3 + $0x13b] sm:$0xff] }
 0x147   :  { %v1261_v46 = vmul.f32 %v1259_v47, %v519_v42  ;;  %v1268_v7 = vmul.f32 %v1267_v4, %v1265_v14  ;;  %v1276_v15 = vmul.f32 %v1275_v63, %v1273_v50  ;;  %v1284_v20 = vmul.f32 %v1283_v31, %v1281_v41  ;;  %v1289_v26 = vld [vmem:[#allocation3 + $0x13c] sm:$0xff] }
 0x148   :  { %v1297_v45 = vld [vmem:[#allocation3 + $0x13d] sm:$0xff]  ;;  %v1239_v0 = vadd.f32 %v1237_v58, %v1207_v11  ;;  %v1247_v9 = vadd.f32 %v1245_v12, %v1215_v35  ;;  %v1262_v52 = vadd.f32 %v1260_v24, %v1230_v22  ;;  %v1292_v30 = vmul.f32 %v1291_v5, %v1289_v26 }
 0x149   :  { %v1305_v59 = vld [vmem:[#allocation3 + $0x13e] sm:$0xff]  ;;  %v1270_v2 = vadd.f32 %v1268_v7, %v1238_v28  ;;  %v1278_v47 = vadd.f32 %v1276_v15, %v1246_v1  ;;  %v1286_v42 = vadd.f32 %v1284_v20, %v1254_v33  ;;  %v1300_v40 = vmul.f32 %v1299_v43, %v1297_v45  ;;  %v1306_v34 = vld [vmem:[#allocation3 + $0x146] sm:$0xff] }
 0x14a   :  { %v1255_v49 = vadd.f32 %v1253_v57, %v1223_v55  ;;  %v1263_v10 = vadd.f32 %v1261_v46, %v1231_v51  ;;  %v1266_v25 = vld [vmem:[#allocation3 + $0x141] sm:$0xff]  ;;  %v1294_v56 = vadd.f32 %v1292_v30, %v1262_v52  ;;  %v1308_v3 = vmul.f32 %v1307_v61, %v1305_v59 }
 0x14b   :  { %v1274_v38 = vld [vmem:[#allocation3 + $0x142] sm:$0xff]  ;;  %v1269_v48 = vmul.f32 %v1267_v4, %v1266_v25  ;;  %v1302_v37 = vadd.f32 %v1300_v40, %v1270_v2  ;;  %v1309_v13 = vmul.f32 %v1307_v61, %v1306_v34 }
 0x14c   :  { %v1282_v62 = vld [vmem:[#allocation3 + $0x143] sm:$0xff]  ;;  %v1277_v16 = vmul.f32 %v1275_v63, %v1274_v38  ;;  %v1310_v19 = vadd.f32 %v1308_v3, %v1278_v47  ;;  %v1314_v44 = vadd.f32 %v1294_v56, %v1286_v42 }
 0x14d   :  { %v1285_v53 = vmul.f32 %v1283_v31, %v1282_v62  ;;  %v1290_v39 = vld [vmem:[#allocation3 + $0x144] sm:$0xff]  ;;  %v1271_v8 = vadd.f32 %v1269_v48, %v1239_v0 }
 0x14e   :  { %v1298_v36 = vld [vmem:[#allocation3 + $0x145] sm:$0xff]  ;;  %v1293_v32 = vmul.f32 %v1291_v5, %v1290_v39  ;;  %v1279_v29 = vadd.f32 %v1277_v16, %v1247_v9  ;;  %v1312_v17 = vadd.f32 %v1310_v19, %v1302_v37 }
 0x14f   :  { %v1301_v23 = vmul.f32 %v1299_v43, %v1298_v36  ;;  %v1287_v54 = vadd.f32 %v1285_v53, %v1255_v49 }
 0x150   :  { %v1295_v4 = vadd.f32 %v1293_v32, %v1263_v10  ;;  %v1311_v21 = vadd.f32 %v1309_v13, %v1279_v29  ;;  %v1316_v27 = vadd.f32 %v1314_v44, %v1312_v17 }
 0x151   :  { %v1303_v63 = vadd.f32 %v1301_v23, %v1271_v8 }
 0x152   :  { %v1315_v31 = vadd.f32 %v1295_v4, %v1287_v54  ;;  %v1447_v60 = vmul.f32 -1.442695, %v1316_v27 }
 0x153   :  { %v1313_v11 = vadd.f32 %v1311_v21, %v1303_v63 }
 0x154   :  { %1461 = vpow2.f32 %v1447_v60 }
 0x155   :  { %v1317_v6 = vadd.f32 %v1315_v31, %v1313_v11 }
 0x157   :  { %v1448_v5 = vmul.f32 -1.442695, %v1317_v6 }
 0x159   :  { %1463 = vpow2.f32 %v1448_v5 }
 0x15e   :  { %v1462_v43 = vpop.eup %1461 }
 0x15f   :  { %v1324_v35 = vadd.f32 1.0, %v1462_v43 }
 0x161   :  { %1465 = vrcp.f32 %v1324_v35 }
 0x163   :  { %v1464_v61 = vpop.eup %1463 }
 0x164   :  { %v1325_v22 = vadd.f32 1.0, %v1464_v61 }
 0x166   :  { %1467 = vrcp.f32 %v1325_v22 }
 0x16b   :  { %v1466_v58 = vpop.eup %1465 }
 0x16c   :  { %1330 = vst [vmem:[#allocation9] sm:$0xff] %v1466_v58 }
 0x170   :  { %v1468_v18 = vpop.eup %1467 }
 0x171   :  { %1331 = vst [vmem:[#allocation9 + $0x8] sm:$0xff] %v1468_v18 }
 0x172   :  { %1512 = shalt.err (!%p1509_p1)
}
 0x173   :  { %s2837_s5 = sld [smem:[#allocation57_spill]] }
 0x179   :  { %s1513_s13 = scalar_lea.hbm %s2837_s5, 256 }
 0x17a   :  { %p1514_p2 = scmp.ne.s32.totalorder %s2837_s5, %s1513_s13  ;;  %p1517_p3 = scmp.lt.u32.totalorder %s1513_s13, %s2837_s5 }
 0x17c   :  { %p1519_p4 = pnand %p1517_p3, %p1514_p2 }
 0x17e   :  { %1522 = shalt.err (!%p1519_p4)
}
 0x17f   :  { %s2838_s30 = smov 8   ;;  %s2839_s29 = smov 128  }
 0x180   :  { %1343 = dma.vmem_to_hbm [thread:$0]  %s1338_s23, 256, %s2837_s5, [#allocation6], %s2839_s29, %s2839_s29, %s2838_s30  }
 0x181   :  { %1527 = dma.done.wait [#allocation6], 256  }
 0x182   :  { %1528 = vsyncadd [#allocation6], 4294967040 }
 0x183   :  { %1347 = vsyncpa [#allocation5], 1 }
 0x184   :  { %1348 = vsyncpa [#allocation6], 1 }
 0x185   :  { %1349 = vsyncpa [#allocation7], 1 }

</bundles_post_ra>
